<compile_context>
chip_gen: v5e
topology: v5e:2x2
jax: 0.10.0
libtpu: 0.0.40
codegen_flags: <defaults>
</compile_context>

<pallas_src>
import jax
import jax.numpy as jnp
from jax import lax
from jax.experimental import pallas as pl
from jax.experimental.pallas import tpu as pltpu

C1 = 256   # conv1 output channels
C2 = 512   # conv2 output channels


def _round_up(x, m):
    return (x + m - 1) // m * m


def fold_bn(gamma, beta, mean, var, eps=1e-5):
    scale = gamma / jnp.sqrt(var + eps)
    bias = beta - mean * scale
    return scale, bias


# -----------------------------------------------------------------------------
# Fused kernel: y2 = relu(BN2(conv3x3_s2(relu(BN1(conv1x1(x))))))
# -----------------------------------------------------------------------------
def fused_extra_kernel(xp_ref, w1p_ref, w01_ref, wk2_ref, b2_ref, o_ref):
    # xp_ref : [Hp, Wp2, 2*K]   bf16  padded input, width pixel-pair packed, with an
    #                                 extra "ones" channel (bias / valid-pixel flag)
    # w1p_ref: [2*K, 2*C1]      bf16  block-diag pair-packed 1x1 weight (BN+bias folded)
    # w01_ref: [3, 2*C1, Cout]  bf16  3x3 taps kw=0,1 (BN scale folded)
    # wk2_ref: [3, C1, Cout]    bf16  3x3 tap  kw=2
    # b2_ref : [1, Cout]        f32   conv2 folded BN bias
    # o_ref  : [To, Wo, Cout]   bf16  To output rows of this grid step
    To, Wo, Cout = o_ref.shape
    Wp2, CK = xp_ref.shape[1], xp_ref.shape[2]
    C = wk2_ref.shape[1]
    R = 2 * To + 2                                        # padded input rows this step

    # ---- conv1 (1x1) + BN + ReLU, computed in-kernel, pair-packed output --------
    r0 = pl.multiple_of(pl.program_id(1) * (2 * To), 2 * To)
    xblk = xp_ref[pl.ds(r0, R), :, :]                     # (R, Wp2, CK) bf16
    y1 = jnp.dot(xblk.reshape(R * Wp2, CK), w1p_ref[...],
                 preferred_element_type=jnp.float32)      # (R*Wp2, 2*C1)
    y1 = jnp.maximum(y1, 0.0).astype(jnp.bfloat16)
    # Row-pair view: stride-2 row selection becomes plain leading-dim indexing.
    y1 = y1.reshape(To + 1, 2, Wp2, 2 * C)

    # ---- conv2 (3x3 / stride 2 / pad 1) + BN bias + ReLU, f32 accumulation ------
    acc01 = jnp.zeros((To * Wp2, Cout), jnp.float32)      # kw = 0,1 (fused [.,2C] GEMM)
    acc2 = jnp.zeros((To * Wo, Cout), jnp.float32)        # kw = 2
    for kh in range(3):                                   # static, fully unrolled
        # padded rows 2*oh + kh for the To output rows of this step
        a = y1[0:To, kh] if kh < 2 else y1[1:To + 1, 0]   # (To, Wp2, 2*C1)
        acc01 += jnp.dot(a.reshape(To * Wp2, 2 * C), w01_ref[kh],
                         preferred_element_type=jnp.float32)
        a2 = a[:, 1:Wo + 1, 0:C]                          # kw=2: next pair, even phase
        acc2 += jnp.dot(a2.reshape(To * Wo, C), wk2_ref[kh],
                        preferred_element_type=jnp.float32)
    acc = acc01.reshape(To, Wp2, Cout)[:, 0:Wo, :] + acc2.reshape(To, Wo, Cout)
    o_ref[...] = jnp.maximum(acc + b2_ref[...], 0.0).astype(o_ref.dtype)


# -----------------------------------------------------------------------------
# Parameter prep: fold BN, lay out for the fused kernel, cast to bf16.
# Call ONCE (outside the jitted forward) and cache the result.
# -----------------------------------------------------------------------------
def prepare_kernel_params(params, eps=1e-5):
    # conv1: torch [256, Cin, 1, 1] -> [Cin+1, 256] (last row = folded bias), pad K to
    # a multiple of 8, then block-diag pair-pack to [2K, 512] so the 1x1 GEMM emits
    # y1 directly in the width pixel-pair layout that the 3x3/s2 taps consume.
    s1, b1 = fold_bn(params["g1"], params["be1"], params["m1"], params["v1"], eps)
    cout1, cin = params["w1"].shape[:2]
    w1 = params["w1"].reshape(cout1, cin).T * s1[None, :]                 # [Cin, 256]
    w1 = jnp.concatenate([w1, b1[None, :]], axis=0)                       # [Cin+1, 256]
    kpad = _round_up(cin + 1, 8)
    w1 = jnp.pad(w1, ((0, kpad - (cin + 1)), (0, 0)))
    w1p = jnp.kron(jnp.eye(2, dtype=w1.dtype), w1).astype(jnp.bfloat16)   # [2K, 512]

    # conv2: torch [512, 256, 3, 3] -> [kh, kw, Cin, Cout], BN scale folded into Cout.
    s2, b2 = fold_bn(params["g2"], params["be2"], params["m2"], params["v2"], eps)
    w2 = jnp.transpose(params["w2"], (2, 3, 1, 0)) * s2[None, None, None, :]
    w01 = jnp.concatenate([w2[:, 0], w2[:, 1]], axis=1).astype(jnp.bfloat16)  # [3,512,512]
    wk2 = w2[:, 2].astype(jnp.bfloat16)                                       # [3,256,512]
    return {"w1p": w1p, "w01": w01, "wk2": wk2,
            "b2": b2.reshape(1, -1).astype(jnp.float32)}


# -----------------------------------------------------------------------------
# ExtraLayers forward (jit this; pass pre-prepared kernel params)
# -----------------------------------------------------------------------------
def extra_layers_forward(x_nchw, kp, *, to_rows=4):
    """x_nchw:[N,Cin,H,W] -> [N,512,Ho,Wo] (bf16; cast to f32 outside if needed)."""
    N, Cin, H, W = x_nchw.shape
    Cinp = kp["w1p"].shape[0] // 2          # per-pixel K (Cin + ones channel, padded)
    Cout = kp["w01"].shape[-1]
    Ho = (H - 1) // 2 + 1                   # k=3, s=2, p=1
    Wo = (W - 1) // 2 + 1
    To = min(to_rows, Ho)                   # output rows per grid step
    Ho_p = _round_up(Ho, To)
    Wp2 = _round_up(Wo + 1, 8)              # width pixel-pairs, 8-aligned sublane dim
    Hp, Wp = 2 * Ho_p + 2, 2 * Wp2

    # bf16 BEFORE the boundary transpose/pad (half the bytes moved), NCHW -> NHWC.
    x = jnp.transpose(x_nchw.astype(jnp.bfloat16), (0, 2, 3, 1))
    # Ones channel: folds conv1 bias into the GEMM; padded positions give y1 = 0,
    # which is exactly conv2's zero-padding halo.
    xa = jnp.concatenate([x, jnp.ones((N, H, W, 1), jnp.bfloat16)], axis=-1)
    xa = jnp.pad(xa, ((0, 0), (1, Hp - H - 1), (1, Wp - W - 1),
                      (0, Cinp - (Cin + 1))))
    xp = xa.reshape(N, Hp, Wp2, 2 * Cinp)   # width pixel-pair packed, channels last

    nb = Ho_p // To                         # keep N*nb >= 2 (>= 4 ideally) for v7x
    y2 = pl.pallas_call(
        fused_extra_kernel,
        out_shape=jax.ShapeDtypeStruct((N, Ho_p, Wo, Cout), jnp.bfloat16),
        grid=(N, nb),
        in_specs=[
            # Whole (tiny) padded input of batch element n; index map is constant in
            # the row-block axis, so every input row is DMA'd exactly once per n.
            pl.BlockSpec((None, Hp, Wp2, 2 * Cinp), lambda n, b: (n, 0, 0, 0)),
            # Constant-index weight / bias blocks stay resident across the grid.
            pl.BlockSpec((2 * Cinp, 2 * C1), lambda n, b: (0, 0)),
            pl.BlockSpec((3, 2 * C1, Cout), lambda n, b: (0, 0, 0)),
            pl.BlockSpec((3, C1, Cout), lambda n, b: (0, 0, 0)),
            pl.BlockSpec((1, Cout), lambda n, b: (0, 0)),
        ],
        out_specs=pl.BlockSpec((None, To, Wo, Cout), lambda n, b: (n, b, 0, 0)),
        compiler_params=pltpu.CompilerParams(
            dimension_semantics=("parallel", "parallel")),
    )(xp, kp["w1p"], kp["w01"], kp["wk2"], kp["b2"])

    y2 = y2[:, :Ho]                          # drop Ho padding rows, if any
    return jnp.transpose(y2, (0, 3, 1, 2))   # back to PyTorch NCHW (bf16)


# -----------------------------------------------------------------------------
# Pure-JAX f32 reference (lax.conv, same inference-BN semantics)
# -----------------------------------------------------------------------------
def reference_forward(x_nchw, params):
    x = x_nchw.astype(jnp.float32)
    s1, b1 = fold_bn(params["g1"], params["be1"], params["m1"], params["v1"])
    y1 = lax.conv_general_dilated(
        x, params["w1"].astype(jnp.float32), window_strides=(1, 1),
        padding=((0, 0), (0, 0)), dimension_numbers=("NCHW", "OIHW", "NCHW"))
    y1 = jnp.maximum(y1 * s1[None, :, None, None] + b1[None, :, None, None], 0.0)
    s2, b2 = fold_bn(params["g2"], params["be2"], params["m2"], params["v2"])
    y2 = lax.conv_general_dilated(
        y1, params["w2"].astype(jnp.float32), window_strides=(2, 2),
        padding=((1, 1), (1, 1)), dimension_numbers=("NCHW", "OIHW", "NCHW"))
    y2 = jnp.maximum(y2 * s2[None, :, None, None] + b2[None, :, None, None], 0.0)
    return y2


# -----------------------------------------------------------------------------
# Deterministic synthetic parameters (PyTorch layouts; no checkpoint load)
# -----------------------------------------------------------------------------
def make_params(inplanes, key):
    ks = jax.random.split(key, 10)
    return {
        "w1": 0.1 * jax.random.normal(ks[0], (256, inplanes, 1, 1), jnp.float32),
        "g1": 1.0 + 0.1 * jax.random.normal(ks[1], (256,), jnp.float32),
        "be1": 0.1 * jax.random.normal(ks[2], (256,), jnp.float32),
        "m1": 0.05 * jax.random.normal(ks[3], (256,), jnp.float32),
        "v1": 0.5 + jnp.abs(jax.random.normal(ks[4], (256,), jnp.float32)),
        "w2": 0.05 * jax.random.normal(ks[5], (512, 256, 3, 3), jnp.float32),
        "g2": 1.0 + 0.1 * jax.random.normal(ks[6], (512,), jnp.float32),
        "be2": 0.1 * jax.random.normal(ks[7], (512,), jnp.float32),
        "m2": 0.05 * jax.random.normal(ks[8], (512,), jnp.float32),
        "v2": 0.5 + jnp.abs(jax.random.normal(ks[9], (512,), jnp.float32)),
    }


if __name__ == "__main__":
    key = jax.random.PRNGKey(0)
    k_x, k_p = jax.random.split(key)
    inplanes = 4
    x = jax.random.normal(k_x, (2, inplanes, 16, 16), jnp.float32)  # NCHW
    params = make_params(inplanes, k_p)

    kp = prepare_kernel_params(params)          # hoisted: fold/layout/cast ONCE
    fwd = jax.jit(extra_layers_forward)
    out = jax.block_until_ready(fwd(x, kp))
    assert out.shape == (2, 512, 8, 8), out.shape

    ref = reference_forward(x, params)
    out_f32 = out.astype(jnp.float32)
    max_err = float(jnp.max(jnp.abs(out_f32 - ref)))
    # bf16 MXU operands, bf16 y1 intermediate and bf16 output vs. an all-f32 reference.
    assert jnp.allclose(out_f32, ref, rtol=2e-2, atol=2e-2), max_err

    print("KERNEL_OK")
</pallas_src>

<mosaic_0001>
module attributes {stable_mosaic.version = 11 : i64} {
  func.func @fused_extra_kernel(%arg0: i32, %arg1: i32, %arg2: memref<1x18x16x16xbf16, #tpu.memory_space<vmem>>, %arg3: memref<16x512xbf16, #tpu.memory_space<vmem>>, %arg4: memref<3x512x512xbf16, #tpu.memory_space<vmem>>, %arg5: memref<3x256x512xbf16, #tpu.memory_space<vmem>>, %arg6: memref<1x512xf32, #tpu.memory_space<vmem>>, %arg7: memref<1x4x8x512xbf16, #tpu.memory_space<vmem>>) attributes {dimension_semantics = [#tpu.dimension_semantics<parallel>, #tpu.dimension_semantics<parallel>], iteration_bounds = array<i64: 2, 2>, scalar_prefetch = 0 : i64, scratch_operands = 0 : i64, tpu.core_type = #tpu.core_type<tc>, window_params = [{transform_indices = @transform_0, window_bounds = array<i64: 1, 18, 16, 16>}, {pipeline_mode = #tpu.pipeline_mode<synchronous>, transform_indices = @transform_1, window_bounds = array<i64: 16, 512>}, {pipeline_mode = #tpu.pipeline_mode<synchronous>, transform_indices = @transform_2, window_bounds = array<i64: 3, 512, 512>}, {pipeline_mode = #tpu.pipeline_mode<synchronous>, transform_indices = @transform_3, window_bounds = array<i64: 3, 256, 512>}, {pipeline_mode = #tpu.pipeline_mode<synchronous>, transform_indices = @transform_4, window_bounds = array<i64: 1, 512>}, {transform_indices = @transform_5, window_bounds = array<i64: 1, 4, 8, 512>}]} {
    %c8_i32 = arith.constant 8 : i32
    %0 = arith.muli %arg1, %c8_i32 : i32
    %1 = tpu.assume_multiple %0, 8 : i32
    %c0 = arith.constant 0 : index
    %2 = arith.index_cast %1 : i32 to index
    %c0_0 = arith.constant 0 : index
    %c0_1 = arith.constant 0 : index
    %3 = vector.load %arg2[%c0, %2, %c0_0, %c0_1] : memref<1x18x16x16xbf16, #tpu.memory_space<vmem>>, vector<1x10x16x16xbf16>
    %4 = vector.shape_cast %3 : vector<1x10x16x16xbf16> to vector<10x16x16xbf16>
    %5 = vector.shape_cast %4 : vector<10x16x16xbf16> to vector<160x16xbf16>
    %c0_2 = arith.constant 0 : index
    %c0_3 = arith.constant 0 : index
    %6 = vector.load %arg3[%c0_2, %c0_3] : memref<16x512xbf16, #tpu.memory_space<vmem>>, vector<16x512xbf16>
    %cst = arith.constant dense<0.000000e+00> : vector<160x512xf32>
    %7 = tpu.matmul %5, %6, %cst {dimension_numbers = #tpu.dot_dimension_numbers<[1], [0], [0], [1], [0, 0, 1, 1], [], []>} : vector<160x16xbf16>, vector<16x512xbf16>, vector<160x512xf32> -> vector<160x512xf32>
    %cst_4 = arith.constant 0.000000e+00 : f32
    %8 = vector.broadcast %cst_4 : f32 to vector<160x512xf32>
    %9 = arith.maximumf %7, %8 : vector<160x512xf32>
    %10 = arith.truncf %9 : vector<160x512xf32> to vector<160x512xbf16>
    %11 = vector.shape_cast %10 : vector<160x512xbf16> to vector<5x2x16x512xbf16>
    %cst_5 = arith.constant 0.000000e+00 : f32
    %12 = vector.broadcast %cst_5 : f32 to vector<64x512xf32>
    %cst_6 = arith.constant 0.000000e+00 : f32
    %13 = vector.broadcast %cst_6 : f32 to vector<32x512xf32>
    %14 = vector.extract_strided_slice %11 {offsets = [0, 0, 0, 0], sizes = [4, 1, 16, 512], strides = [1, 1, 1, 1]} : vector<5x2x16x512xbf16> to vector<4x1x16x512xbf16>
    %15 = vector.shape_cast %14 : vector<4x1x16x512xbf16> to vector<4x16x512xbf16>
    %16 = vector.shape_cast %15 : vector<4x16x512xbf16> to vector<64x512xbf16>
    %c0_7 = arith.constant 0 : index
    %c0_8 = arith.constant 0 : index
    %c0_9 = arith.constant 0 : index
    %17 = vector.load %arg4[%c0_7, %c0_8, %c0_9] : memref<3x512x512xbf16, #tpu.memory_space<vmem>>, vector<1x512x512xbf16>
    %18 = vector.shape_cast %17 : vector<1x512x512xbf16> to vector<512x512xbf16>
    %cst_10 = arith.constant dense<0.000000e+00> : vector<64x512xf32>
    %19 = tpu.matmul %16, %18, %cst_10 {dimension_numbers = #tpu.dot_dimension_numbers<[1], [0], [0], [1], [0, 0, 1, 1], [], []>} : vector<64x512xbf16>, vector<512x512xbf16>, vector<64x512xf32> -> vector<64x512xf32>
    %20 = arith.addf %12, %19 : vector<64x512xf32>
    %21 = vector.extract_strided_slice %15 {offsets = [0, 1, 0], sizes = [4, 8, 256], strides = [1, 1, 1]} : vector<4x16x512xbf16> to vector<4x8x256xbf16>
    %22 = vector.shape_cast %21 : vector<4x8x256xbf16> to vector<32x256xbf16>
    %c0_11 = arith.constant 0 : index
    %c0_12 = arith.constant 0 : index
    %c0_13 = arith.constant 0 : index
    %23 = vector.load %arg5[%c0_11, %c0_12, %c0_13] : memref<3x256x512xbf16, #tpu.memory_space<vmem>>, vector<1x256x512xbf16>
    %24 = vector.shape_cast %23 : vector<1x256x512xbf16> to vector<256x512xbf16>
    %cst_14 = arith.constant dense<0.000000e+00> : vector<32x512xf32>
    %25 = tpu.matmul %22, %24, %cst_14 {dimension_numbers = #tpu.dot_dimension_numbers<[1], [0], [0], [1], [0, 0, 1, 1], [], []>} : vector<32x256xbf16>, vector<256x512xbf16>, vector<32x512xf32> -> vector<32x512xf32>
    %26 = arith.addf %13, %25 : vector<32x512xf32>
    %27 = vector.extract_strided_slice %11 {offsets = [0, 1, 0, 0], sizes = [4, 1, 16, 512], strides = [1, 1, 1, 1]} : vector<5x2x16x512xbf16> to vector<4x1x16x512xbf16>
    %28 = vector.shape_cast %27 : vector<4x1x16x512xbf16> to vector<4x16x512xbf16>
    %29 = vector.shape_cast %28 : vector<4x16x512xbf16> to vector<64x512xbf16>
    %c1 = arith.constant 1 : index
    %c0_15 = arith.constant 0 : index
    %c0_16 = arith.constant 0 : index
    %30 = vector.load %arg4[%c1, %c0_15, %c0_16] : memref<3x512x512xbf16, #tpu.memory_space<vmem>>, vector<1x512x512xbf16>
    %31 = vector.shape_cast %30 : vector<1x512x512xbf16> to vector<512x512xbf16>
    %cst_17 = arith.constant dense<0.000000e+00> : vector<64x512xf32>
    %32 = tpu.matmul %29, %31, %cst_17 {dimension_numbers = #tpu.dot_dimension_numbers<[1], [0], [0], [1], [0, 0, 1, 1], [], []>} : vector<64x512xbf16>, vector<512x512xbf16>, vector<64x512xf32> -> vector<64x512xf32>
    %33 = arith.addf %20, %32 : vector<64x512xf32>
    %34 = vector.extract_strided_slice %28 {offsets = [0, 1, 0], sizes = [4, 8, 256], strides = [1, 1, 1]} : vector<4x16x512xbf16> to vector<4x8x256xbf16>
    %35 = vector.shape_cast %34 : vector<4x8x256xbf16> to vector<32x256xbf16>
    %c1_18 = arith.constant 1 : index
    %c0_19 = arith.constant 0 : index
    %c0_20 = arith.constant 0 : index
    %36 = vector.load %arg5[%c1_18, %c0_19, %c0_20] : memref<3x256x512xbf16, #tpu.memory_space<vmem>>, vector<1x256x512xbf16>
    %37 = vector.shape_cast %36 : vector<1x256x512xbf16> to vector<256x512xbf16>
    %cst_21 = arith.constant dense<0.000000e+00> : vector<32x512xf32>
    %38 = tpu.matmul %35, %37, %cst_21 {dimension_numbers = #tpu.dot_dimension_numbers<[1], [0], [0], [1], [0, 0, 1, 1], [], []>} : vector<32x256xbf16>, vector<256x512xbf16>, vector<32x512xf32> -> vector<32x512xf32>
    %39 = arith.addf %26, %38 : vector<32x512xf32>
    %40 = vector.extract_strided_slice %11 {offsets = [1, 0, 0, 0], sizes = [4, 1, 16, 512], strides = [1, 1, 1, 1]} : vector<5x2x16x512xbf16> to vector<4x1x16x512xbf16>
    %41 = vector.shape_cast %40 : vector<4x1x16x512xbf16> to vector<4x16x512xbf16>
    %42 = vector.shape_cast %41 : vector<4x16x512xbf16> to vector<64x512xbf16>
    %c2 = arith.constant 2 : index
    %c0_22 = arith.constant 0 : index
    %c0_23 = arith.constant 0 : index
    %43 = vector.load %arg4[%c2, %c0_22, %c0_23] : memref<3x512x512xbf16, #tpu.memory_space<vmem>>, vector<1x512x512xbf16>
    %44 = vector.shape_cast %43 : vector<1x512x512xbf16> to vector<512x512xbf16>
    %cst_24 = arith.constant dense<0.000000e+00> : vector<64x512xf32>
    %45 = tpu.matmul %42, %44, %cst_24 {dimension_numbers = #tpu.dot_dimension_numbers<[1], [0], [0], [1], [0, 0, 1, 1], [], []>} : vector<64x512xbf16>, vector<512x512xbf16>, vector<64x512xf32> -> vector<64x512xf32>
    %46 = arith.addf %33, %45 : vector<64x512xf32>
    %47 = vector.extract_strided_slice %41 {offsets = [0, 1, 0], sizes = [4, 8, 256], strides = [1, 1, 1]} : vector<4x16x512xbf16> to vector<4x8x256xbf16>
    %48 = vector.shape_cast %47 : vector<4x8x256xbf16> to vector<32x256xbf16>
    %c2_25 = arith.constant 2 : index
    %c0_26 = arith.constant 0 : index
    %c0_27 = arith.constant 0 : index
    %49 = vector.load %arg5[%c2_25, %c0_26, %c0_27] : memref<3x256x512xbf16, #tpu.memory_space<vmem>>, vector<1x256x512xbf16>
    %50 = vector.shape_cast %49 : vector<1x256x512xbf16> to vector<256x512xbf16>
    %cst_28 = arith.constant dense<0.000000e+00> : vector<32x512xf32>
    %51 = tpu.matmul %48, %50, %cst_28 {dimension_numbers = #tpu.dot_dimension_numbers<[1], [0], [0], [1], [0, 0, 1, 1], [], []>} : vector<32x256xbf16>, vector<256x512xbf16>, vector<32x512xf32> -> vector<32x512xf32>
    %52 = arith.addf %39, %51 : vector<32x512xf32>
    %53 = vector.shape_cast %46 : vector<64x512xf32> to vector<4x16x512xf32>
    %54 = vector.extract_strided_slice %53 {offsets = [0, 0, 0], sizes = [4, 8, 512], strides = [1, 1, 1]} : vector<4x16x512xf32> to vector<4x8x512xf32>
    %55 = vector.shape_cast %52 : vector<32x512xf32> to vector<4x8x512xf32>
    %56 = arith.addf %54, %55 : vector<4x8x512xf32>
    %c0_29 = arith.constant 0 : index
    %c0_30 = arith.constant 0 : index
    %57 = vector.load %arg6[%c0_29, %c0_30] : memref<1x512xf32, #tpu.memory_space<vmem>>, vector<1x512xf32>
    %58 = vector.shape_cast %57 : vector<1x512xf32> to vector<1x1x512xf32>
    %59 = vector.broadcast %58 : vector<1x1x512xf32> to vector<4x8x512xf32>
    %60 = arith.addf %56, %59 : vector<4x8x512xf32>
    %cst_31 = arith.constant 0.000000e+00 : f32
    %61 = vector.broadcast %cst_31 : f32 to vector<4x8x512xf32>
    %62 = arith.maximumf %60, %61 : vector<4x8x512xf32>
    %63 = arith.truncf %62 : vector<4x8x512xf32> to vector<4x8x512xbf16>
    %c0_32 = arith.constant 0 : index
    %c0_33 = arith.constant 0 : index
    %c0_34 = arith.constant 0 : index
    %c0_35 = arith.constant 0 : index
    %64 = vector.load %arg7[%c0_32, %c0_33, %c0_34, %c0_35] : memref<1x4x8x512xbf16, #tpu.memory_space<vmem>>, vector<1x4x8x512xbf16>
    %65 = vector.shape_cast %64 : vector<1x4x8x512xbf16> to vector<4x8x512xbf16>
    %66 = vector.shape_cast %63 : vector<4x8x512xbf16> to vector<1x4x8x512xbf16>
    tpu.vector_store %arg7[%c0_32, %c0_33, %c0_34, %c0_35], %66 {strides = array<i32>} : memref<1x4x8x512xbf16, #tpu.memory_space<vmem>>, vector<1x4x8x512xbf16>,
    return
  }
  func.func @transform_0(%arg0: i32, %arg1: i32) -> (i32, i32, i32, i32) {
    %c0_i32 = arith.constant 0 : i32
    %c0_i32_0 = arith.constant 0 : i32
    %c0_i32_1 = arith.constant 0 : i32
    %c0_i32_2 = arith.constant 0 : i32
    return %arg0, %c0_i32, %c0_i32_0, %c0_i32_1 : i32, i32, i32, i32
  }
  func.func @transform_1(%arg0: i32, %arg1: i32) -> (i32, i32) {
    %c0_i32 = arith.constant 0 : i32
    %c0_i32_0 = arith.constant 0 : i32
    %c0_i32_1 = arith.constant 0 : i32
    return %c0_i32, %c0_i32_0 : i32, i32
  }
  func.func @transform_2(%arg0: i32, %arg1: i32) -> (i32, i32, i32) {
    %c0_i32 = arith.constant 0 : i32
    %c0_i32_0 = arith.constant 0 : i32
    %c0_i32_1 = arith.constant 0 : i32
    %c0_i32_2 = arith.constant 0 : i32
    return %c0_i32, %c0_i32_0, %c0_i32_1 : i32, i32, i32
  }
  func.func @transform_3(%arg0: i32, %arg1: i32) -> (i32, i32, i32) {
    %c0_i32 = arith.constant 0 : i32
    %c0_i32_0 = arith.constant 0 : i32
    %c0_i32_1 = arith.constant 0 : i32
    %c0_i32_2 = arith.constant 0 : i32
    return %c0_i32, %c0_i32_0, %c0_i32_1 : i32, i32, i32
  }
  func.func @transform_4(%arg0: i32, %arg1: i32) -> (i32, i32) {
    %c0_i32 = arith.constant 0 : i32
    %c0_i32_0 = arith.constant 0 : i32
    %c0_i32_1 = arith.constant 0 : i32
    return %c0_i32, %c0_i32_0 : i32, i32
  }
  func.func @transform_5(%arg0: i32, %arg1: i32) -> (i32, i32, i32, i32) {
    %c0_i32 = arith.constant 0 : i32
    %c0_i32_0 = arith.constant 0 : i32
    %c0_i32_1 = arith.constant 0 : i32
    return %arg0, %arg1, %c0_i32, %c0_i32_0 : i32, i32, i32, i32
  }
}

</mosaic_0001>

<bundles_post_ra>
// kernel: extra_layers_forward.1
= control target key start
LH: loop header
LB: loop body
LE: loop exit
PB: predicated region body
PF: predicated region fallthrough
CT: control target
= control target key end

     0   :  { %s10876_s0 = inlined_call_operand.vmem [shape: bf16[2,18,16,16], index: 0, kind: input, shape index: {}]   ;;  %s10877_s1 = inlined_call_operand.hbm [shape: bf16[16,512], index: 1, kind: input, shape index: {}]   ;;  %s10878_s2 = inlined_call_operand.hbm [shape: bf16[3,512,512], index: 2, kind: input, shape index: {}]   ;;  %s10879_s3 = inlined_call_operand.hbm [shape: bf16[3,256,512], index: 3, kind: input, shape index: {}]   ;;  %s10880_s4 = inlined_call_operand.hbm [shape: f32[1,512], index: 4, kind: input, shape index: {}]   ;;  %s10881_s5 = inlined_call_operand.hbm [shape: bf16[2,8,8,512], index: 5, kind: output, shape index: {}]  }
   0x1   :  { %10902 = sst [smem:[#allocation33_spill]] %s10878_s2 }
   0x2   :  { %10 = vsyncpa [#allocation3], 0 }
   0x3   :  { %11 = vsyncpa [#allocation6], 0 }
   0x4   :  { %12 = vsyncpa [#allocation9], 0 }
   0x5   :  { %13 = vsyncpa [#allocation4], 0 }
   0x6   :  { %15 = vsyncpa [#allocation4 + $0x1], 0  ;;  %s9881_s18 = smov 0   ;;  %s9883_s19 = smov 0  }
   0x7   :  { %s9885_s20 = smov 0   ;;  %s9887_s21 = smov 0  }
   0x8   :  { %s9889_s22 = smov 0   ;;  %s9891_s23 = smov 0  }
   0x9   :  { %s9893_s24 = smov 0   ;;  %s9895_s25 = smov 0  }
   0xa LB: > { %10903 = sst [smem:[#allocation15_spill]] %s9833_s23  ;;  %s6480_s26 = sadd.s32 4294967295, %s9841_s25   ;;  %s9841_s25 = sphi %s9895_s25, %s21_s25   ;;  %s9837_s24 = sphi %s9893_s24, %s10962_s24   ;;  %s9833_s23 = sphi %s9891_s23, %s10961_s23   ;;  %s9829_s22 = sphi %s9889_s22, %s10960_s22   ;;  %s9825_s21 = sphi %s9887_s21, %s10959_s21   ;;  %s9821_s20 = sphi %s9885_s20, %s10965_s20   ;;  %s9817_s19 = sphi %s9883_s19, %s10964_s19   ;;  %s9813_s18 = sphi %s9881_s18, %s10963_s18  }
   0xb   : > { %10904 = sst [smem:[#allocation16_spill]] %s9837_s24  ;;  %s6481_s27 = sadd.s32 4294967294, %s9841_s25  }
   0xc   : > { %s30_s28 = sadd.s32 1, %s9833_s23  ;;  %s33_s29 = sadd.s32 1, %s9837_s24 }
   0xd   : > { %p31_p0 = scmp.ge.s32.totalorder %s30_s28, 2  ;;  %s152_s30 = sadd.s32 1, %s9821_s20 }
   0xe   : > { %p162_p1 = scmp.ne.s32.totalorder %s9821_s20, %s9817_s19  ;;  %p163_p2 = scmp.eq.s32.totalorder %s6480_s26, 3 }
   0xf   : > { %s10967_s28 = smov (%p31_p0, %s30_s28), 0  ;;  %s10969_s29 = smov (!%p31_p0, %s33_s29), %s9837_s24 }
  0x10   : > { %10905 = sst [smem:[#allocation17_spill]] %s10967_s28  ;;  %s148_s6 = ssub.s32 %s9833_s23, %s10967_s28 }
  0x11   : > { %p9933_p3 = por %p163_p2, %p162_p1  ;;  %p35_p4 = scmp.ge.s32.totalorder %s10969_s29, 2 }
  0x12   : > { %p168_p5 = scmp.ne.s32.totalorder %s9817_s19, %s9813_s18  ;;  %p169_p6 = scmp.eq.s32.totalorder %s6481_s27, 3 }
  0x13   : > { %p6482_p7 = scmp.ge.s32.totalorder %s9841_s25, 1  ;;  %s10971_s29 = smov (%p35_p4, %s10969_s29), 0 }
  0x14   : > { %10907 = sst [smem:[#allocation18_spill]] %s10971_s29  ;;  %p9942_p8 = por %p169_p6, %p168_p5 }
  0x15   : > { %p176_p9 = scmp.lt.s32.totalorder %s9841_s25, 5  ;;  %s147_s9 = ssub.s32 %s9837_s24, %s10971_s29 }
  0x16   : > { %s149_s10 = sor.u32 %s148_s6, %s147_s9  ;;  %p9953_p12 = scmp.eq.s32.totalorder %s6480_s26, 0 }
  0x17   : > { %p9949_p10 = pnand %p6482_p7, %p176_p9  ;;  %p150_p11 = scmp.eq.s32.totalorder %s149_s10, 0 }
  0x18   : > { %s10913_s2 = sld [smem:[#allocation33_spill]]  ;;  %s9843_s26 = smov [#allocation5]  }
  0x19   : > { %p9517_p13 = pneg %p9949_p10  ;;  %s203_s27 = sshll.u32 %s9843_s26, 4  ;;  %s204_s27 = int_to_ptr.vmem [resolvable:$true] %s203_s27 }
  0x1a   : > { %s9960_s13 = scalar_select %p150_p11, %s9821_s20, %s152_s30  }
  0x1b   : > { %p9964_p0 = pnand %p9953_p12, %p9517_p13  ;;  %s9844_s6 = smov 256  }
  0x1c   : > { %10911 = sst [smem:[#allocation19_spill]] %s9960_s13  ;;  %s9845_s9 = smov 16  }
  0x1d   : > { %s187_s29 = sshll.u32 %s10877_s1, 4  ;;  %s9846_s28 = smov [#allocation2]   ;;  %s188_s29 = int_to_ptr.hbm [resolvable:$true] %s187_s29 }
  0x1e   : > { %s201_s17 = sshll.u32 %s10913_s2, 4  ;;  %s189_s15 = sshll.u32 %s9846_s28, 4  ;;  %s202_s17 = int_to_ptr.hbm [resolvable:$true] %s201_s17  ;;  %s190_s15 = int_to_ptr.vmem [resolvable:$true] %s189_s15 }
  0x1f   : > { %9523 = dma.hbm_to_vmem [thread:$0]  (!%p9964_p0), %s202_s17, 49152, %s204_s27, [#allocation6], %s9844_s6, %s9844_s6, %s9845_s9  }
  0x20   : > { %s215_s24 = sshll.u32 %s10879_s3, 4  ;;  %s9847_s26 = smov [#allocation7]   ;;  %s216_s24 = int_to_ptr.hbm [resolvable:$true] %s215_s24 }
  0x21   : > { %9520 = dma.hbm_to_vmem [thread:$0]  (!%p9964_p0), %s188_s29, 512, %s190_s15, [#allocation3], %s9844_s6, %s9844_s6, %s9845_s9  }
  0x22   : > { %s217_s23 = sshll.u32 %s9847_s26, 4  ;;  %s230_s27 = sshll.u32 %s10880_s4, 4  ;;  %s218_s23 = int_to_ptr.vmem [resolvable:$true] %s217_s23  ;;  %s231_s27 = int_to_ptr.hbm [resolvable:$true] %s230_s27 }
  0x23   : > { %9526 = dma.hbm_to_vmem [thread:$0]  (!%p9964_p0), %s216_s24, 24576, %s218_s23, [#allocation6], %s9844_s6, %s9844_s6, %s9845_s9  }
  0x24   : > { %s9848_s30 = smov [#allocation8]   ;;  %253 = sbr.rel (%p9949_p10) target bundleno = 1368 (0x558), region = 40 }
  0x25   : > { %s232_s28 = sshll.u32 %s9848_s30, 4  ;;  %s233_s28 = int_to_ptr.vmem [resolvable:$true] %s232_s28 }
  0x26   : > { %9529 = dma.hbm_to_vmem [thread:$0]  (!%p9964_p0), %s231_s27, 64, %s233_s28, [#allocation9]  }
  0x29   : > { %9796 = dma.done.wait (%p9953_p12), [#allocation3], 512  }
  0x2a   : > { %9798 = vsyncadd (%p9953_p12), [#allocation3], 4294966784 }
  0x2b   : > { %9800 = dma.done.wait (%p9953_p12), [#allocation6], 73728  }
  0x2c   : > { %9802 = vsyncadd (%p9953_p12), [#allocation6], 4294893568 }
  0x2d   : > { %9804 = dma.done.wait (%p9953_p12), [#allocation9], 64  }
  0x2e   : > { %9806 = vsyncadd (%p9953_p12), [#allocation9], 4294967232  ;;  %p297_p1 = scmp.lt.s32.totalorder %s9829_s22, 1  ;;  %s8906_s24 = sshll.u32 %s9825_s21, 6  ;;  %v6540_v0 = vld [vmem:[#allocation2] sm:$0xf] }
  0x2f   : > { %v8919_v1 = vld [vmem:[#allocation2 + $0xc] sm:$0xf0]  ;;  %v8917_v2 = vld [vmem:[#allocation2 + $0x4] sm:$0xf]  ;;  %v6542_v4 = vld [vmem:[#allocation2 + $0x10] sm:$0xf0] }
  0x30   : > { %s298_s2 = scalar_select %p297_p1, %s9829_s22, 1  ;;  %v6541_v3 = vor.u32 %v8919_v1, %v6540_v0  ;;  %v6548_v5 = vld [vmem:[#allocation2 + $0x8] sm:$0xf]  ;;  %v8920_v6 = vld [vmem:[#allocation2 + $0x14] sm:$0xf0]  ;;  %v6545_v7 = vor.u32 %v8917_v2, %v6542_v4  ;;  %vm402_vm0 = vcmask 130048  }
  0x31   : > { %v6549_v8 = vor.u32 %v8920_v6, %v6548_v5  ;;  %v8918_v9 = vld [vmem:[#allocation2 + $0xc] sm:$0xf]  ;;  %v6550_v10 = vld [vmem:[#allocation2 + $0x18] sm:$0xf0]  ;;  %v6964_v14 = vld [vmem:[#allocation5 + $0x6e0] sm:$0xf] }
  0x32   : > { %s9498_s23 = smul.u32 144, %s298_s2  ;;  %440 = vmatpush.bf16.msra.mxu0 %v6541_v3  ;;  %v6553_v12 = vor.u32 %v8918_v9, %v6550_v10  ;;  %497 = vmatpush.bf16.msra.mxu1 %v6545_v7  ;;  %v9207_v15 = vld [vmem:[#allocation5 + $0x6ec] sm:$0xf0]  ;;  %v7092_v16 = vld [vmem:[#allocation5 + $0x7e0] sm:$0xf]  ;;  %s294_s12 = sand.u32 1, %s9817_s19  }
  0x33   : > { %554 = vmatpush.bf16.msra.mxu2 %v6549_v8  ;;  %v6965_v17 = vor.u32 %v9207_v15, %v6964_v14  ;;  %v9239_v18 = vld [vmem:[#allocation5 + $0x7ec] sm:$0xf0]  ;;  %v6708_v19 = vld [vmem:[#allocation5 + $0x4e0] sm:$0xf]  ;;  %vm897_vm1 = vsmask.f32 3328 }
  0x34   : > { %s301_s13 = scalar_lea.vmem %s10876_s0, %s9498_s23  ;;  %611 = vmatpush.bf16.msra.mxu3 %v6553_v12  ;;  %v9143_v20 = vld [vmem:[#allocation5 + $0x4ec] sm:$0xf0]  ;;  %v7093_v21 = vor.u32 %v9239_v18, %v7092_v16  ;;  %v6836_v23 = vld [vmem:[#allocation5 + $0x5e0] sm:$0xf]  ;;  %vm898_vm2 = vsmask.f32 7440 }
  0x35   : > { %s10008_s14 = scalar_lea.vmem %s301_s13, %s8906_s24  ;;  %v6709_v22 = vor.u32 %v9143_v20, %v6708_v19  ;;  %v9175_v24 = vld [vmem:[#allocation5 + $0x5ec] sm:$0xf0]  ;;  %v6948_v27 = vld [vmem:[#allocation5 + $0x6c0] sm:$0xf]  ;;  %vm10064_vm3 = vmor %vm897_vm1, %vm898_vm2  ;;  %s6493_s6 = sshll.u32 %s294_s12, 6 }
  0x36   : > { %v8907_v11 = vld [vmem:[%s10008_s14] sm:$0xff]  ;;  %v8908_v13 = vld [vmem:[%s10008_s14 + $0x8] sm:$0xff]  ;;  %v6837_v25 = vor.u32 %v9175_v24, %v6836_v23  ;;  %v8909_v26 = vld [vmem:[%s10008_s14 + $0x10] sm:$0xff]  ;;  %s10795_s9 = scalar_lea.vmem [#allocation10], %s6493_s6  ;;  %s9497_s10 = sshll.u32 %s9825_s21, 4 }
  0x37   : > { %6554 = vmatmul.msk.bf16.vlgmr.msra.gmra.mxu0 %vm402_vm0, %v8907_v11  ;;  %6564 = vmatmul.msk.bf16.vlgmr.msra.gmra.mxu1 %vm402_vm0, %v8907_v11  ;;  %v9203_v28 = vld [vmem:[#allocation5 + $0x6cc] sm:$0xf0]  ;;  %v7076_v29 = vld [vmem:[#allocation5 + $0x7c0] sm:$0xf]  ;;  %v8910_v39 = vld [vmem:[%s10008_s14 + $0x18] sm:$0xff]  ;;  %s8901_s15 = sshll.u32 %s9829_s22, 5 }
  0x38   : > { %6574 = vmatmul.msk.bf16.vlgmr.msra.gmra.mxu2 %vm402_vm0, %v8907_v11  ;;  %6584 = vmatmul.msk.bf16.vlgmr.msra.gmra.mxu3 %vm402_vm0, %v8907_v11  ;;  %v6949_v30 = vor.u32 %v9203_v28, %v6948_v27  ;;  %v9235_v31 = vld [vmem:[#allocation5 + $0x7cc] sm:$0xf0]  ;;  %v6692_v32 = vld [vmem:[#allocation5 + $0x4c0] sm:$0xf]  ;;  %v8912_v53 = vld [vmem:[%s10008_s14 + $0x28] sm:$0xff]  ;;  %s6355_s16 = sadd.s32 %s9497_s10, %s8901_s15  ;;  %s6358_s27 = sshll.u32 %s10795_s9, 4  ;;  %s6359_s27 = int_to_ptr.vmem [resolvable:$true] %s6358_s27 }
  0x39   : > { %1919 = vmatpush.bf16.msrb.mxu2 %v6965_v17  ;;  %1944 = vmatpush.bf16.msrb.mxu3 %v7093_v21  ;;  %v9139_v33 = vld [vmem:[#allocation5 + $0x4cc] sm:$0xf0]  ;;  %v7077_v34 = vor.u32 %v9235_v31, %v7076_v29  ;;  %v6820_v36 = vld [vmem:[#allocation5 + $0x5c0] sm:$0xf]  ;;  %v8914_v8 = vld [vmem:[%s10008_s14 + $0x38] sm:$0xff]  ;;  %s8902_s26 = sshll.u32 %s6355_s16, 2 }
  0x3a   : > { %1869 = vmatpush.bf16.msrb.mxu0 %v6709_v22  ;;  %1894 = vmatpush.bf16.msrb.mxu1 %v6837_v25  ;;  %v6693_v35 = vor.u32 %v9139_v33, %v6692_v32  ;;  %v9171_v37 = vld [vmem:[#allocation5 + $0x5cc] sm:$0xf0]  ;;  %v6932_v40 = vld [vmem:[#allocation5 + $0x6a0] sm:$0xf]  ;;  %s6357_s17 = scalar_lea.hbm %s10881_s5, %s8902_s26  ;;  %s6343_s28 = scalar_lea.sflag [#allocation4], %s294_s12 }
  0x3b   : > { %v6821_v38 = vor.u32 %v9171_v37, %v6820_v36  ;;  %v9199_v41 = vld [vmem:[#allocation5 + $0x6ac] sm:$0xf0]  ;;  %v7060_v42 = vld [vmem:[#allocation5 + $0x7a0] sm:$0xf]  ;;  %s6360_s30 = sshll.u32 %s6357_s17, 4  ;;  %s9755_s11 = scalar_lea.hbm %s10881_s5, 256  ;;  %s6361_s30 = int_to_ptr.hbm [resolvable:$true] %s6360_s30 }
  0x3c   : > { %v6933_v43 = vor.u32 %v9199_v41, %v6932_v40  ;;  %v9231_v44 = vld [vmem:[#allocation5 + $0x7ac] sm:$0xf0]  ;;  %v8911_v46 = vld [vmem:[%s10008_s14 + $0x20] sm:$0xff]  ;;  %s9749_s2 = sshra.s32 %s6361_s30, 4  ;;  %s9750_s2 = int_to_ptr.hbm [resolvable:$true] %s9749_s2 }
  0x3d   : > { %1920 = vmatpush.bf16.msrb.mxu2 %v6949_v30  ;;  %1945 = vmatpush.bf16.msrb.mxu3 %v7077_v34  ;;  %v7061_v45 = vor.u32 %v9231_v44, %v7060_v42  ;;  %v6676_v47 = vld [vmem:[#allocation5 + $0x4a0] sm:$0xf]  ;;  %v9135_v48 = vld [vmem:[#allocation5 + $0x4ac] sm:$0xf0]  ;;  %s9751_s23 = scalar_lea.hbm %s9750_s2, 64  ;;  %p9756_p6 = scmp.lt.s32.totalorder %s9750_s2, %s10881_s5 }
  0x3e   : > { %1870 = vmatpush.bf16.msrb.mxu0 %v6693_v35  ;;  %1895 = vmatpush.bf16.msrb.mxu1 %v6821_v38  ;;  %v6804_v49 = vld [vmem:[#allocation5 + $0x5a0] sm:$0xf]  ;;  %v6677_v50 = vor.u32 %v9135_v48, %v6676_v47  ;;  %v9167_v51 = vld [vmem:[#allocation5 + $0x5ac] sm:$0xf0]  ;;  %p9752_p2 = scmp.ne.s32.totalorder %s9750_s2, %s9751_s23  ;;  %p9757_p7 = scmp.lt.s32.totalorder %s9755_s11, %s9751_s23 }
  0x3f   : > { %v6805_v52 = vor.u32 %v9167_v51, %v6804_v49  ;;  %v6916_v54 = vld [vmem:[#allocation5 + $0x680] sm:$0xf]  ;;  %v9195_v55 = vld [vmem:[#allocation5 + $0x68c] sm:$0xf0] }
  0x40   : > { %v7044_v56 = vld [vmem:[#allocation5 + $0x780] sm:$0xf]  ;;  %v6917_v57 = vor.u32 %v9195_v55, %v6916_v54  ;;  %v9227_v58 = vld [vmem:[#allocation5 + $0x78c] sm:$0xf0]  ;;  %p9753_p4 = pnand %p9752_p2, %p9933_p3  ;;  %p9758_p9 = por %p9757_p7, %p9756_p6 }
  0x41   : > { %1921 = vmatpush.bf16.msrb.mxu2 %v6933_v43  ;;  %1946 = vmatpush.bf16.msrb.mxu3 %v7061_v45  ;;  %v6660_v59 = vld [vmem:[#allocation5 + $0x480] sm:$0xf]  ;;  %v9131_v60 = vld [vmem:[#allocation5 + $0x48c] sm:$0xf0]  ;;  %v7045_v61 = vor.u32 %v9227_v58, %v7044_v56 }
  0x42   : > { %1871 = vmatpush.bf16.msrb.mxu0 %v6677_v50  ;;  %1896 = vmatpush.bf16.msrb.mxu1 %v6805_v52  ;;  %v6661_v62 = vor.u32 %v9131_v60, %v6660_v59  ;;  %v6788_v63 = vld [vmem:[#allocation5 + $0x580] sm:$0xf]  ;;  %v9163_v0 = vld [vmem:[#allocation5 + $0x58c] sm:$0xf0]  ;;  %p9754_p5 = pneg %p9753_p4 }
  0x43   : > { %v6789_v1 = vor.u32 %v9163_v0, %v6788_v63  ;;  %v8913_v2 = vld [vmem:[%s10008_s14 + $0x30] sm:$0xff]  ;;  %v6900_v3 = vld [vmem:[#allocation5 + $0x660] sm:$0xf] }
  0x44   : > { %v9191_v4 = vld [vmem:[#allocation5 + $0x66c] sm:$0xf0]  ;;  %v7028_v5 = vld [vmem:[#allocation5 + $0x760] sm:$0xf]  ;;  %p9759_p10 = pnand %p9758_p9, %p9754_p5 }
  0x45   : > { %1922 = vmatpush.bf16.msrb.mxu2 %v6917_v57  ;;  %1947 = vmatpush.bf16.msrb.mxu3 %v7045_v61  ;;  %v6901_v6 = vor.u32 %v9191_v4, %v6900_v3  ;;  %v9223_v7 = vld [vmem:[#allocation5 + $0x76c] sm:$0xf0]  ;;  %v6644_v10 = vld [vmem:[#allocation5 + $0x460] sm:$0xf] }
  0x46   : > { %1872 = vmatpush.bf16.msrb.mxu0 %v6661_v62  ;;  %1897 = vmatpush.bf16.msrb.mxu1 %v6789_v1  ;;  %v7029_v9 = vor.u32 %v9223_v7, %v7028_v5  ;;  %v9127_v11 = vld [vmem:[#allocation5 + $0x46c] sm:$0xf0]  ;;  %v6772_v12 = vld [vmem:[#allocation5 + $0x560] sm:$0xf] }
  0x47   : > { %6555 = vmatmul.msk.bf16.gmra.mxu0 %vm402_vm0, %v8908_v13  ;;  %6565 = vmatmul.msk.bf16.gmra.mxu1 %vm402_vm0, %v8908_v13  ;;  %v9159_v14 = vld [vmem:[#allocation5 + $0x56c] sm:$0xf0]  ;;  %v6628_v16 = vld [vmem:[#allocation5 + $0x440] sm:$0xf] }
  0x48   : > { %6575 = vmatmul.msk.bf16.gmra.mxu2 %vm402_vm0, %v8908_v13  ;;  %6585 = vmatmul.msk.bf16.gmra.mxu3 %vm402_vm0, %v8908_v13  ;;  %v6645_v13 = vor.u32 %v9127_v11, %v6644_v10  ;;  %v6773_v15 = vor.u32 %v9159_v14, %v6772_v12  ;;  %v9123_v17 = vld [vmem:[#allocation5 + $0x44c] sm:$0xf0]  ;;  %v6756_v18 = vld [vmem:[#allocation5 + $0x540] sm:$0xf] }
  0x49   : > { %1923 = vmatpush.bf16.msrb.mxu2 %v6901_v6  ;;  %1948 = vmatpush.bf16.msrb.mxu3 %v7029_v9  ;;  %v6629_v19 = vor.u32 %v9123_v17, %v6628_v16  ;;  %v9155_v20 = vld [vmem:[#allocation5 + $0x54c] sm:$0xf0]  ;;  %v6884_v22 = vld [vmem:[#allocation5 + $0x640] sm:$0xf] }
  0x4a   : > { %1873 = vmatpush.bf16.msrb.mxu0 %v6645_v13  ;;  %1898 = vmatpush.bf16.msrb.mxu1 %v6773_v15  ;;  %v6757_v21 = vor.u32 %v9155_v20, %v6756_v18  ;;  %v9187_v23 = vld [vmem:[#allocation5 + $0x64c] sm:$0xf0]  ;;  %v7012_v24 = vld [vmem:[#allocation5 + $0x740] sm:$0xf]  ;;  %v8916_v13 = vld [vmem:[%s10008_s14 + $0x48] sm:$0xff] }
  0x4b   : > { %v6885_v25 = vor.u32 %v9187_v23, %v6884_v22  ;;  %v6612_v27 = vld [vmem:[#allocation5 + $0x420] sm:$0xf]  ;;  %v9119_v28 = vld [vmem:[#allocation5 + $0x42c] sm:$0xf0] }
  0x4c   : > { %v6613_v30 = vor.u32 %v9119_v28, %v6612_v27  ;;  %v6740_v31 = vld [vmem:[#allocation5 + $0x520] sm:$0xf]  ;;  %v9151_v32 = vld [vmem:[#allocation5 + $0x52c] sm:$0xf0] }
  0x4d   : > { %v8915_v33 = vld [vmem:[%s10008_s14 + $0x40] sm:$0xff]  ;;  %1924 = vmatpush.bf16.msrb.mxu2 %v6885_v25  ;;  %v6741_v34 = vor.u32 %v9151_v32, %v6740_v31  ;;  %v9115_v36 = vld [vmem:[#allocation5 + $0x40c] sm:$0xf0] }
  0x4e   : > { %1874 = vmatpush.bf16.msrb.mxu0 %v6629_v19  ;;  %1899 = vmatpush.bf16.msrb.mxu1 %v6757_v21  ;;  %v6596_v35 = vld [vmem:[#allocation5 + $0x400] sm:$0xf]  ;;  %v9183_v41 = vld [vmem:[#allocation5 + $0x62c] sm:$0xf0] }
  0x4f   : > { %v6724_v37 = vld [vmem:[#allocation5 + $0x500] sm:$0xf]  ;;  %v6597_v44 = vor.u32 %v9115_v36, %v6596_v35  ;;  %v9215_v47 = vld [vmem:[#allocation5 + $0x72c] sm:$0xf0] }
  0x50   : > { %v6868_v40 = vld [vmem:[#allocation5 + $0x620] sm:$0xf]  ;;  %v9179_v52 = vld [vmem:[#allocation5 + $0x60c] sm:$0xf0] }
  0x51   : > { %v6869_v45 = vor.u32 %v9183_v41, %v6868_v40  ;;  %v6852_v51 = vld [vmem:[#allocation5 + $0x600] sm:$0xf]  ;;  %v9211_v56 = vld [vmem:[#allocation5 + $0x70c] sm:$0xf0] }
  0x52   : > { %1875 = vmatpush.bf16.msrb.mxu0 %v6613_v30  ;;  %1900 = vmatpush.bf16.msrb.mxu1 %v6741_v34  ;;  %v6853_v55 = vor.u32 %v9179_v52, %v6852_v51 }
  0x53   : > { %1925 = vmatpush.bf16.msrb.mxu2 %v6869_v45 }
  0x56   : > { %1876 = vmatpush.bf16.msrb.mxu0 %v6597_v44 }
  0x57   : > { %6556 = vmatmul.msk.bf16.gmra.mxu0 %vm402_vm0, %v8909_v26  ;;  %6566 = vmatmul.msk.bf16.gmra.mxu1 %vm402_vm0, %v8909_v26 }
  0x58   : > { %6576 = vmatmul.msk.bf16.gmra.mxu2 %vm402_vm0, %v8909_v26  ;;  %6586 = vmatmul.msk.bf16.gmra.mxu3 %vm402_vm0, %v8909_v26  ;;  %v9219_v26 = vld [vmem:[#allocation5 + $0x74c] sm:$0xf0] }
  0x59   : > { %v7013_v29 = vor.u32 %v9219_v26, %v7012_v24  ;;  %1926 = vmatpush.bf16.msrb.mxu2 %v6853_v55 }
  0x5b   : > { %1949 = vmatpush.bf16.msrb.mxu3 %v7013_v29 }
  0x67   : > { %6557 = vmatmul.msk.bf16.gmra.mxu0 %vm402_vm0, %v8910_v39  ;;  %6567 = vmatmul.msk.bf16.gmra.mxu1 %vm402_vm0, %v8910_v39 }
  0x68   : > { %6577 = vmatmul.msk.bf16.gmra.mxu2 %vm402_vm0, %v8910_v39  ;;  %6587 = vmatmul.msk.bf16.gmra.mxu3 %vm402_vm0, %v8910_v39  ;;  %v9147_v39 = vld [vmem:[#allocation5 + $0x50c] sm:$0xf0] }
  0x69   : > { %v6725_v49 = vor.u32 %v9147_v39, %v6724_v37 }
  0x6b   : > { %1901 = vmatpush.bf16.msrb.mxu1 %v6725_v49 }
  0x77   : > { %6558 = vmatmul.msk.bf16.gmra.mxu0 %vm402_vm0, %v8911_v46  ;;  %6568 = vmatmul.msk.bf16.gmra.mxu1 %vm402_vm0, %v8911_v46 }
  0x78   : > { %6578 = vmatmul.msk.bf16.gmra.mxu2 %vm402_vm0, %v8911_v46  ;;  %6588 = vmatmul.msk.bf16.gmra.mxu3 %vm402_vm0, %v8911_v46  ;;  %v6996_v46 = vld [vmem:[#allocation5 + $0x720] sm:$0xf] }
  0x79   : > { %v6997_v50 = vor.u32 %v9215_v47, %v6996_v46 }
  0x7b   : > { %1950 = vmatpush.bf16.msrb.mxu3 %v6997_v50 }
  0x87   : > { %6559 = vmatmul.msk.bf16.gmra.mxu0 %vm402_vm0, %v8912_v53  ;;  %6569 = vmatmul.msk.bf16.gmra.mxu1 %vm402_vm0, %v8912_v53 }
  0x88   : > { %6579 = vmatmul.msk.bf16.gmra.mxu2 %vm402_vm0, %v8912_v53  ;;  %6589 = vmatmul.msk.bf16.gmra.mxu3 %vm402_vm0, %v8912_v53  ;;  %v6980_v53 = vld [vmem:[#allocation5 + $0x700] sm:$0xf] }
  0x89   : > { %v6981_v59 = vor.u32 %v9211_v56, %v6980_v53 }
  0x8b   : > { %1951 = vmatpush.bf16.msrb.mxu3 %v6981_v59 }
  0x97   : > { %6560 = vmatmul.msk.bf16.gmra.mxu0 %vm402_vm0, %v8913_v2  ;;  %6570 = vmatmul.msk.bf16.gmra.mxu1 %vm402_vm0, %v8913_v2 }
  0x98   : > { %6580 = vmatmul.msk.bf16.gmra.mxu2 %vm402_vm0, %v8913_v2  ;;  %6590 = vmatmul.msk.bf16.gmra.mxu3 %vm402_vm0, %v8913_v2 }
  0xa7   : > { %6561 = vmatmul.msk.bf16.gmra.mxu0 %vm402_vm0, %v8914_v8  ;;  %6571 = vmatmul.msk.bf16.gmra.mxu1 %vm402_vm0, %v8914_v8 }
  0xa8   : > { %6581 = vmatmul.msk.bf16.gmra.mxu2 %vm402_vm0, %v8914_v8  ;;  %6591 = vmatmul.msk.bf16.gmra.mxu3 %vm402_vm0, %v8914_v8 }
  0xb4   : > { %v442_v38 = vpop.f32.mrf.mxu0  ;;  %v499_v43 = vpop.f32.mrf.mxu1 }
  0xb5   : > { %v661_v42 = vmax.f32 %v442_v38, 0.0  ;;  %v662_v48 = vmax.f32 %v499_v43, 0.0 }
  0xb7   : > { %6562 = vmatmul.msk.bf16.gmra.mxu0 %vm402_vm0, %v8915_v33  ;;  %v10052_v54 = vpack.c.bf16 %v662_v48, %v661_v42  ;;  %6572 = vmatmul.msk.bf16.gmra.mxu1 %vm402_vm0, %v8915_v33 }
  0xb8   : > { %6582 = vmatmul.msk.bf16.gmra.mxu2 %vm402_vm0, %v8915_v33  ;;  %6592 = vmatmul.msk.bf16.gmra.mxu3 %vm402_vm0, %v8915_v33 }
  0xb9   : > { %v901_v57 = vshrl.u32 %v10052_v54, 16  ;;  %v904_v58 = vshll.u32 %v10052_v54, 16 }
  0xbb   : > { %v556_v60 = vpop.f32.mrf.mxu2  ;;  %v903_v61 = vrot.slane %v901_v57, 4  ;;  %v906_v62 = vrot.slane %v904_v58, 5  ;;  %v613_v0 = vpop.f32.mrf.mxu3 }
  0xbc   : > { %v663_v63 = vmax.f32 %v556_v60, 0.0  ;;  %v444_v1 = vpop.f32.mrf.mxu0  ;;  %v664_v2 = vmax.f32 %v613_v0, 0.0  ;;  %v501_v4 = vpop.f32.mrf.mxu1 }
  0xbd   : > { %v665_v3 = vmax.f32 %v444_v1, 0.0  ;;  %v907_v5 = vor.u32 %v906_v62, %v903_v61  ;;  %v666_v6 = vmax.f32 %v501_v4, 0.0 }
  0xbe   : > { %v10059_v7 = vpack.c.bf16 %v664_v2, %v663_v63 }
  0xbf   : > { %v10061_v8 = vpack.c.bf16 %v666_v6, %v665_v3  ;;  %v908_v9 = vrot.slane %v907_v5, 4 }
  0xc1   : > { %v910_v10 = vshll.u32 %v10061_v8, 16 }
  0xc3   : > { %v10068_v12 = vpop.f32.mrf.mxu2  ;;  %v912_v14 = vrot.slane %v910_v10, 5  ;;  %v10071_v15 = vpop.f32.mrf.mxu3 }
  0xc4   : > { %v447_v16 = vpop.f32.mrf.mxu0  ;;  %v504_v18 = vpop.f32.mrf.mxu1 }
  0xc5   : > { %v669_v17 = vmax.f32 %v447_v16, 0.0  ;;  %v10075_v19 = vsel %vm10064_vm3, %v908_v9, %v912_v14  ;;  %v670_v20 = vmax.f32 %v504_v18, 0.0 }
  0xc7   : > { %6563 = vmatmul.msk.bf16.gmra.mxu0 %vm402_vm0, %v8916_v13  ;;  %v737_v21 = vpack.c.bf16 %v670_v20, %v669_v17  ;;  %6573 = vmatmul.msk.bf16.gmra.mxu1 %vm402_vm0, %v8916_v13 }
  0xc8   : > { %6583 = vmatmul.msk.bf16.gmra.mxu2 %vm402_vm0, %v8916_v13  ;;  %6593 = vmatmul.msk.bf16.gmra.mxu3 %vm402_vm0, %v8916_v13 }
  0xc9   : > { %v3390_v22 = vshrl.u32 %v737_v21, 16  ;;  %v3393_v23 = vshll.u32 %v737_v21, 16  ;;  %v1165_v34 = vunpack.c.l.b16 %v737_v21  ;;  %v1166_v35 = vunpack.c.h.b16 %v737_v21 }
  0xcb   : > { %v561_v24 = vpop.f32.mrf.mxu2  ;;  %v3392_v25 = vrot.slane %v3390_v22, 4  ;;  %v3395_v26 = vrot.slane %v3393_v23, 5  ;;  %v618_v27 = vpop.f32.mrf.mxu3 }
  0xcc   : > { %v449_v28 = vpop.f32.mrf.mxu0  ;;  %v506_v30 = vpop.f32.mrf.mxu1  ;;  %v671_v36 = vmax.f32 %v561_v24, 0.0  ;;  %v672_v37 = vmax.f32 %v618_v27, 0.0 }
  0xcd   : > { %v673_v29 = vmax.f32 %v449_v28, 0.0  ;;  %v3396_v31 = vor.u32 %v3395_v26, %v3392_v25  ;;  %v674_v32 = vmax.f32 %v506_v30, 0.0 }
  0xce   : > { %v738_v49 = vpack.c.bf16 %v672_v37, %v671_v36 }
  0xcf   : > { %v739_v33 = vpack.c.bf16 %v674_v32, %v673_v29  ;;  %v3397_v38 = vrot.slane %v3396_v31, 4  ;;  %v3998_v31 = vunpack.c.l.b16 %v10075_v19 }
  0xd0   : > { %v1167_v58 = vunpack.c.l.b16 %v738_v49  ;;  %v1168_v59 = vunpack.c.h.b16 %v738_v49 }
  0xd1   : > { %v1169_v39 = vunpack.c.l.b16 %v739_v33  ;;  %v1170_v40 = vunpack.c.h.b16 %v739_v33  ;;  %v3399_v41 = vshll.u32 %v739_v33, 16  ;;  %v3999_v33 = vunpack.c.h.b16 %v10075_v19 }
  0xd3   : > { %v563_v42 = vpop.f32.mrf.mxu2  ;;  %v3401_v43 = vrot.slane %v3399_v41, 5  ;;  %v620_v45 = vpop.f32.mrf.mxu3  ;;  %v10081_v47 = vpack.c.b16 %v1169_v39, %v1165_v34  ;;  %v10083_v48 = vpack.c.b16 %v1170_v40, %v1166_v35 }
  0xd4   : > { %v675_v44 = vmax.f32 %v563_v42, 0.0  ;;  %v452_v46 = vpop.f32.mrf.mxu0  ;;  %v676_v50 = vmax.f32 %v620_v45, 0.0  ;;  %v509_v52 = vpop.f32.mrf.mxu1 }
  0xd5   : > { %v677_v51 = vmax.f32 %v452_v46, 0.0  ;;  %v10087_v53 = vsel %vm10064_vm3, %v3397_v38, %v3401_v43  ;;  %v678_v55 = vmax.f32 %v509_v52, 0.0 }
  0xd6   : > { %v740_v56 = vpack.c.bf16 %v676_v50, %v675_v44 }
  0xd7   : > { %1877 = vmatmul.bf16.vlgmr.msrb.gmra.mxu0 %v10081_v47  ;;  %v10090_v57 = vpack.c.bf16 %v678_v55, %v677_v51  ;;  %1902 = vmatmul.bf16.vlgmr.msrb.gmra.mxu1 %v10083_v48 }
  0xd8   : > { %v1171_v60 = vunpack.c.l.b16 %v740_v56  ;;  %v1172_v61 = vunpack.c.h.b16 %v740_v56 }
  0xd9   : > { %v915_v62 = vshrl.u32 %v10090_v57, 16  ;;  %v918_v63 = vshll.u32 %v10090_v57, 16 }
  0xda   : > { %v10095_v1 = vpack.c.b16 %v1171_v60, %v1167_v58  ;;  %v10097_v2 = vpack.c.b16 %v1172_v61, %v1168_v59  ;;  %v9205_v59 = vld [vmem:[#allocation5 + $0x6e4] sm:$0xf]  ;;  %v6966_v60 = vld [vmem:[#allocation5 + $0x6f0] sm:$0xf0] }
  0xdb   : > { %v566_v0 = vpop.f32.mrf.mxu2  ;;  %v917_v3 = vrot.slane %v915_v62, 4  ;;  %v920_v4 = vrot.slane %v918_v63, 5  ;;  %v623_v6 = vpop.f32.mrf.mxu3  ;;  %v9237_v61 = vld [vmem:[#allocation5 + $0x7e4] sm:$0xf] }
  0xdc   : > { %v679_v5 = vmax.f32 %v566_v0, 0.0  ;;  %v454_v9 = vpop.f32.mrf.mxu0  ;;  %v680_v10 = vmax.f32 %v623_v6, 0.0  ;;  %1927 = vmatmul.bf16.vlgmr.msrb.gmra.mxu2 %v10095_v1  ;;  %1952 = vmatmul.bf16.vlgmr.msrb.gmra.mxu3 %v10097_v2  ;;  %v511_v14 = vpop.f32.mrf.mxu1 }
  0xdd   : > { %v681_v13 = vmax.f32 %v454_v9, 0.0  ;;  %v921_v16 = vor.u32 %v920_v4, %v917_v3  ;;  %v682_v17 = vmax.f32 %v511_v14, 0.0  ;;  %v6969_v3 = vor.u32 %v9205_v59, %v6966_v60  ;;  %v7094_v4 = vld [vmem:[#allocation5 + $0x7f0] sm:$0xf0] }
  0xde   : > { %v10101_v18 = vpack.c.bf16 %v680_v10, %v679_v5  ;;  %v7097_v9 = vor.u32 %v9237_v61, %v7094_v4 }
  0xdf   : > { %v10103_v20 = vpack.c.bf16 %v682_v17, %v681_v13  ;;  %v922_v21 = vrot.slane %v921_v16, 4  ;;  %2019 = vmatpush.bf16.msra.mxu2 %v6969_v3 }
  0xe0   : > { %2044 = vmatpush.bf16.msra.mxu3 %v7097_v9 }
  0xe1   : > { %v924_v22 = vshll.u32 %v10103_v20, 16 }
  0xe3   : > { %v10106_v23 = vpop.f32.mrf.mxu2  ;;  %v926_v24 = vrot.slane %v924_v22, 5  ;;  %v10108_v25 = vpop.f32.mrf.mxu3  ;;  %v9141_v22 = vld [vmem:[#allocation5 + $0x4e4] sm:$0xf] }
  0xe4   : > { %v457_v26 = vpop.f32.mrf.mxu0  ;;  %v514_v28 = vpop.f32.mrf.mxu1 }
  0xe5   : > { %v685_v27 = vmax.f32 %v457_v26, 0.0  ;;  %v10112_v29 = vsel %vm10064_vm3, %v922_v21, %v926_v24  ;;  %v686_v30 = vmax.f32 %v514_v28, 0.0  ;;  %v6710_v24 = vld [vmem:[#allocation5 + $0x4f0] sm:$0xf0] }
  0xe6   : > { %v4000_v32 = vunpack.c.l.b16 %v10112_v29  ;;  %v4001_v34 = vunpack.c.h.b16 %v10112_v29 }
  0xe7   : > { %v745_v35 = vpack.c.bf16 %v686_v30, %v685_v27  ;;  %v6713_v30 = vor.u32 %v9141_v22, %v6710_v24 }
  0xe8   : > { %v10120_v36 = vpack.c.b16 %v4000_v32, %v3998_v31  ;;  %v10124_v37 = vpack.c.b16 %v4001_v34, %v3999_v33  ;;  %v9173_v31 = vld [vmem:[#allocation5 + $0x5e4] sm:$0xf]  ;;  %v6838_v33 = vld [vmem:[#allocation5 + $0x5f0] sm:$0xf0] }
  0xe9   : > { %v3404_v38 = vshrl.u32 %v745_v35, 16  ;;  %v3407_v39 = vshll.u32 %v745_v35, 16  ;;  %v1173_v56 = vunpack.c.l.b16 %v745_v35  ;;  %v1174_v58 = vunpack.c.h.b16 %v745_v35  ;;  %1969 = vmatpush.bf16.msra.mxu0 %v6713_v30  ;;  %v6694_v30 = vld [vmem:[#allocation5 + $0x4d0] sm:$0xf0] }
  0xea   : > { %10916 = vst [vmem:[#allocation20_spill] sm:$0xff] %v10120_v36 }
  0xeb   : > { %10917 = vst [vmem:[#allocation21_spill] sm:$0xff] %v10124_v37  ;;  %v571_v40 = vpop.f32.mrf.mxu2  ;;  %v3406_v41 = vrot.slane %v3404_v38, 4  ;;  %v3409_v42 = vrot.slane %v3407_v39, 5  ;;  %v628_v43 = vpop.f32.mrf.mxu3  ;;  %v6841_v39 = vor.u32 %v9173_v31, %v6838_v33  ;;  %v9169_v33 = vld [vmem:[#allocation5 + $0x5c4] sm:$0xf] }
  0xec   : > { %v459_v44 = vpop.f32.mrf.mxu0  ;;  %v516_v19 = vpop.f32.mrf.mxu1  ;;  %v687_v50 = vmax.f32 %v571_v40, 0.0  ;;  %v688_v51 = vmax.f32 %v628_v43, 0.0  ;;  %v3510_v40 = vunpack.c.l.b16 %v10087_v53  ;;  %v3511_v43 = vunpack.c.h.b16 %v10087_v53  ;;  %v7078_v53 = vld [vmem:[#allocation5 + $0x7d0] sm:$0xf0]  ;;  %v6956_v37 = vld [vmem:[#allocation5 + $0x6c8] sm:$0xf] }
  0xed   : > { %v689_v45 = vmax.f32 %v459_v44, 0.0  ;;  %v3410_v46 = vor.u32 %v3409_v42, %v3406_v41  ;;  %v690_v49 = vmax.f32 %v516_v19, 0.0  ;;  %1994 = vmatpush.bf16.msra.mxu1 %v6841_v39 }
  0xee   : > { %v746_v5 = vpack.c.bf16 %v688_v51, %v687_v50  ;;  %v9201_v51 = vld [vmem:[#allocation5 + $0x6c4] sm:$0xf] }
  0xef   : > { %v3411_v52 = vrot.slane %v3410_v46, 4  ;;  %v747_v55 = vpack.c.bf16 %v690_v49, %v689_v45 }
  0xf0   : > { %v1175_v45 = vunpack.c.l.b16 %v746_v5  ;;  %v1176_v19 = vunpack.c.h.b16 %v746_v5 }
  0xf1   : > { %v1177_v62 = vunpack.c.l.b16 %v747_v55  ;;  %v1178_v63 = vunpack.c.h.b16 %v747_v55  ;;  %v3413_v0 = vshll.u32 %v747_v55, 16  ;;  %v9233_v55 = vld [vmem:[#allocation5 + $0x7c4] sm:$0xf] }
  0xf2   : > { %v7081_v3 = vor.u32 %v9233_v55, %v7078_v53  ;;  %v6678_v55 = vld [vmem:[#allocation5 + $0x4b0] sm:$0xf0] }
  0xf3   : > { %v573_v6 = vpop.f32.mrf.mxu2  ;;  %v3415_v10 = vrot.slane %v3413_v0, 5  ;;  %v630_v14 = vpop.f32.mrf.mxu3  ;;  %v10126_v17 = vpack.c.b16 %v1177_v62, %v1173_v56  ;;  %v10128_v21 = vpack.c.b16 %v1178_v63, %v1174_v58 }
  0xf4   : > { %v691_v13 = vmax.f32 %v573_v6, 0.0  ;;  %v462_v16 = vpop.f32.mrf.mxu0  ;;  %v692_v26 = vmax.f32 %v630_v14, 0.0  ;;  %v519_v28 = vpop.f32.mrf.mxu1  ;;  %2045 = vmatpush.bf16.msra.mxu3 %v7081_v3  ;;  %v6806_v3 = vld [vmem:[#allocation5 + $0x5b0] sm:$0xf0] }
  0xf5   : > { %v693_v27 = vmax.f32 %v462_v16, 0.0  ;;  %v3416_v35 = vsel %vm10064_vm3, %v3411_v52, %v3415_v10  ;;  %v694_v38 = vmax.f32 %v519_v28, 0.0  ;;  %1881 = vmatmul.bf16.gmra.mxu0 %v10126_v17  ;;  %1906 = vmatmul.bf16.gmra.mxu1 %v10128_v21  ;;  %v6950_v52 = vld [vmem:[#allocation5 + $0x6d0] sm:$0xf0]  ;;  %v9137_v28 = vld [vmem:[#allocation5 + $0x4c4] sm:$0xf] }
  0xf6   : > { %v748_v41 = vpack.c.bf16 %v692_v26, %v691_v13  ;;  %v3512_v42 = vunpack.c.l.b16 %v3416_v35  ;;  %v3513_v44 = vunpack.c.h.b16 %v3416_v35  ;;  %v6953_v0 = vor.u32 %v9201_v51, %v6950_v52  ;;  %v6822_v35 = vld [vmem:[#allocation5 + $0x5d0] sm:$0xf0]  ;;  %v9133_v52 = vld [vmem:[#allocation5 + $0x4a4] sm:$0xf] }
  0xf7   : > { %v10136_v46 = vpack.c.bf16 %v694_v38, %v693_v27  ;;  %v6697_v31 = vor.u32 %v9137_v28, %v6694_v30  ;;  %v9197_v38 = vld [vmem:[#allocation5 + $0x6a4] sm:$0xf] }
  0xf8   : > { %v1179_v49 = vunpack.c.l.b16 %v748_v41  ;;  %v1180_v50 = vunpack.c.h.b16 %v748_v41  ;;  %v10138_v56 = vpack.c.b16 %v3512_v42, %v3510_v40  ;;  %v10140_v58 = vpack.c.b16 %v3513_v44, %v3511_v43  ;;  %2020 = vmatpush.bf16.msra.mxu2 %v6953_v0  ;;  %v6934_v42 = vld [vmem:[#allocation5 + $0x6b0] sm:$0xf0]  ;;  %v9229_v43 = vld [vmem:[#allocation5 + $0x7a4] sm:$0xf] }
  0xf9   : > { %v929_v59 = vshrl.u32 %v10136_v46, 16  ;;  %v932_v60 = vshll.u32 %v10136_v46, 16  ;;  %v6825_v41 = vor.u32 %v9169_v33, %v6822_v35  ;;  %1970 = vmatpush.bf16.msra.mxu0 %v6697_v31  ;;  %v9165_v0 = vld [vmem:[#allocation5 + $0x5a4] sm:$0xf]  ;;  %v6918_v31 = vld [vmem:[#allocation5 + $0x690] sm:$0xf0] }
  0xfa   : > { %10918 = vst [vmem:[#allocation22_spill] sm:$0xff] %v10140_v58  ;;  %v10144_v62 = vpack.c.b16 %v1179_v49, %v1175_v45  ;;  %v10146_v63 = vpack.c.b16 %v1180_v50, %v1176_v19  ;;  %v6937_v45 = vor.u32 %v9197_v38, %v6934_v42  ;;  %v7062_v19 = vld [vmem:[#allocation5 + $0x7b0] sm:$0xf0]  ;;  %v9193_v30 = vld [vmem:[#allocation5 + $0x684] sm:$0xf] }
  0xfb   : > { %v576_v61 = vpop.f32.mrf.mxu2  ;;  %v931_v4 = vrot.slane %v929_v59, 4  ;;  %v934_v5 = vrot.slane %v932_v60, 5  ;;  %v633_v9 = vpop.f32.mrf.mxu3  ;;  %1995 = vmatpush.bf16.msra.mxu1 %v6825_v41  ;;  %v7065_v53 = vor.u32 %v9229_v43, %v7062_v19  ;;  %v9225_v33 = vld [vmem:[#allocation5 + $0x784] sm:$0xf]  ;;  %v6921_v41 = vor.u32 %v9193_v30, %v6918_v31  ;;  %v7046_v42 = vld [vmem:[#allocation5 + $0x790] sm:$0xf0] }
  0xfc   : > { %v695_v6 = vmax.f32 %v576_v61, 0.0  ;;  %v464_v10 = vpop.f32.mrf.mxu0  ;;  %v696_v13 = vmax.f32 %v633_v9, 0.0  ;;  %1931 = vmatmul.bf16.gmra.mxu2 %v10144_v62  ;;  %1956 = vmatmul.bf16.gmra.mxu3 %v10146_v63  ;;  %v521_v16 = vpop.f32.mrf.mxu1  ;;  %v6681_v61 = vor.u32 %v9133_v52, %v6678_v55  ;;  %v6902_v31 = vld [vmem:[#allocation5 + $0x670] sm:$0xf0] }
  0xfd   : > { %v697_v14 = vmax.f32 %v464_v10, 0.0  ;;  %v935_v22 = vor.u32 %v934_v5, %v931_v4  ;;  %v698_v24 = vmax.f32 %v521_v16, 0.0  ;;  %2021 = vmatpush.bf16.msra.mxu2 %v6937_v45  ;;  %v6809_v5 = vor.u32 %v9165_v0, %v6806_v3  ;;  %2046 = vmatpush.bf16.msra.mxu3 %v7065_v53  ;;  %v6662_v53 = vld [vmem:[#allocation5 + $0x490] sm:$0xf0]  ;;  %v9161_v0 = vld [vmem:[#allocation5 + $0x584] sm:$0xf] }
  0xfe   : > { %v10150_v26 = vpack.c.bf16 %v696_v13, %v695_v6  ;;  %1971 = vmatpush.bf16.msra.mxu0 %v6681_v61  ;;  %v7049_v45 = vor.u32 %v9225_v33, %v7046_v42  ;;  %v6790_v3 = vld [vmem:[#allocation5 + $0x590] sm:$0xf0]  ;;  %v9221_v33 = vld [vmem:[#allocation5 + $0x764] sm:$0xf] }
  0xff   : > { %v10152_v27 = vpack.c.bf16 %v698_v24, %v697_v14  ;;  %v936_v39 = vrot.slane %v935_v22, 4  ;;  %1996 = vmatpush.bf16.msra.mxu1 %v6809_v5  ;;  %v6793_v30 = vor.u32 %v9161_v0, %v6790_v3 }
 0x101   : > { %v938_v40 = vshll.u32 %v10152_v27, 16  ;;  %2022 = vmatpush.bf16.msra.mxu2 %v6921_v41  ;;  %2047 = vmatpush.bf16.msra.mxu3 %v7049_v45  ;;  %v9125_v45 = vld [vmem:[#allocation5 + $0x464] sm:$0xf] }
 0x103   : > { %v10155_v44 = vpop.f32.mrf.mxu2  ;;  %v940_v49 = vrot.slane %v938_v40, 5  ;;  %v10157_v50 = vpop.f32.mrf.mxu3  ;;  %1997 = vmatpush.bf16.msra.mxu1 %v6793_v30 }
 0x104   : > { %v467_v51 = vpop.f32.mrf.mxu0  ;;  %v524_v60 = vpop.f32.mrf.mxu1 }
 0x105   : > { %v701_v59 = vmax.f32 %v467_v51, 0.0  ;;  %v702_v4 = vmax.f32 %v524_v60, 0.0  ;;  %v10161_v6 = vsel %vm10064_vm3, %v936_v39, %v940_v49  ;;  %v9129_v60 = vld [vmem:[#allocation5 + $0x484] sm:$0xf] }
 0x106   : > { %v10887_v9 = vunpack.c.l.b16 %v10161_v6  ;;  %v10886_v10 = vunpack.c.h.b16 %v10161_v6  ;;  %v6665_v61 = vor.u32 %v9129_v60, %v6662_v53  ;;  %v9157_v53 = vld [vmem:[#allocation5 + $0x564] sm:$0xf] }
 0x107   : > { %v753_v13 = vpack.c.bf16 %v702_v4, %v701_v59  ;;  %v9189_v4 = vld [vmem:[#allocation5 + $0x664] sm:$0xf] }
 0x108   : > { %v10169_v14 = vpack.c.b16 %v10887_v9, %v4000_v32  ;;  %v10175_v16 = vpack.c.b16 %v10886_v10, %v4001_v34  ;;  %1972 = vmatpush.bf16.msra.mxu0 %v6665_v61  ;;  %v6774_v61 = vld [vmem:[#allocation5 + $0x570] sm:$0xf0]  ;;  %v9113_v10 = vld [vmem:[#allocation5 + $0x404] sm:$0xf] }
 0x109   : > { %v3418_v22 = vshrl.u32 %v753_v13, 16  ;;  %v3421_v24 = vshll.u32 %v753_v13, 16  ;;  %v1181_v55 = vunpack.c.l.b16 %v753_v13  ;;  %v1182_v59 = vunpack.c.h.b16 %v753_v13 }
 0x10a   : > { %10919 = vst [vmem:[#allocation23_spill] sm:$0xff] %v10169_v14  ;;  %v9144_v14 = vld [vmem:[#allocation5 + $0x4f4] sm:$0xf0] }
 0x10b   : > { %10920 = vst [vmem:[#allocation24_spill] sm:$0xff] %v10175_v16  ;;  %v581_v28 = vpop.f32.mrf.mxu2  ;;  %v3420_v35 = vrot.slane %v3418_v22, 4  ;;  %v3423_v38 = vrot.slane %v3421_v24, 5  ;;  %v638_v39 = vpop.f32.mrf.mxu3  ;;  %v6716_v16 = vld [vmem:[#allocation5 + $0x4e8] sm:$0xf] }
 0x10c   : > { %v469_v40 = vpop.f32.mrf.mxu0  ;;  %v526_v43 = vpop.f32.mrf.mxu1  ;;  %v703_v34 = vmax.f32 %v581_v28, 0.0  ;;  %v704_v49 = vmax.f32 %v638_v39, 0.0  ;;  %v7030_v39 = vld [vmem:[#allocation5 + $0x770] sm:$0xf0] }
 0x10d   : > { %v705_v32 = vmax.f32 %v469_v40, 0.0  ;;  %v3424_v29 = vor.u32 %v3423_v38, %v3420_v35  ;;  %v706_v19 = vmax.f32 %v526_v43, 0.0  ;;  %v6905_v38 = vor.u32 %v9189_v4, %v6902_v31  ;;  %v9185_v31 = vld [vmem:[#allocation5 + $0x644] sm:$0xf] }
 0x10e   : > { %v754_v35 = vpack.c.bf16 %v704_v49, %v703_v34  ;;  %v7033_v34 = vor.u32 %v9221_v33, %v7030_v39  ;;  %v6886_v33 = vld [vmem:[#allocation5 + $0x650] sm:$0xf0] }
 0x10f   : > { %v3425_v51 = vrot.slane %v3424_v29, 4  ;;  %v755_v52 = vpack.c.bf16 %v706_v19, %v705_v32  ;;  %v6646_v29 = vld [vmem:[#allocation5 + $0x470] sm:$0xf0]  ;;  %2023 = vmatpush.bf16.msra.mxu2 %v6905_v38 }
 0x110   : > { %v6649_v49 = vor.u32 %v9125_v45, %v6646_v29  ;;  %2048 = vmatpush.bf16.msra.mxu3 %v7033_v34  ;;  %v6889_v45 = vor.u32 %v9185_v31, %v6886_v33 }
 0x111   : > { %v1185_v5 = vunpack.c.l.b16 %v755_v52  ;;  %v1186_v22 = vunpack.c.h.b16 %v755_v52  ;;  %v3427_v24 = vshll.u32 %v755_v52, 16 }
 0x112   : > { %1973 = vmatpush.bf16.msra.mxu0 %v6649_v49 }
 0x113   : > { %v583_v28 = vpop.f32.mrf.mxu2  ;;  %v3429_v40 = vrot.slane %v3427_v24, 5  ;;  %v640_v13 = vpop.f32.mrf.mxu3  ;;  %v10177_v32 = vpack.c.b16 %v1185_v5, %v1181_v55  ;;  %v10179_v43 = vpack.c.b16 %v1186_v22, %v1182_v59  ;;  %v6777_v55 = vor.u32 %v9157_v53, %v6774_v61  ;;  %2024 = vmatpush.bf16.msra.mxu2 %v6889_v45 }
 0x114   : > { %v707_v41 = vmax.f32 %v583_v28, 0.0  ;;  %v472_v42 = vpop.f32.mrf.mxu0  ;;  %v708_v19 = vmax.f32 %v640_v13, 0.0  ;;  %v529_v60 = vpop.f32.mrf.mxu1  ;;  %v1183_v5 = vunpack.c.l.b16 %v754_v35  ;;  %v1184_v22 = vunpack.c.h.b16 %v754_v35  ;;  %v9217_v28 = vld [vmem:[#allocation5 + $0x744] sm:$0xf]  ;;  %v7014_v13 = vld [vmem:[#allocation5 + $0x750] sm:$0xf0] }
 0x115   : > { %v709_v52 = vmax.f32 %v472_v42, 0.0  ;;  %v710_v0 = vmax.f32 %v529_v60, 0.0  ;;  %1885 = vmatmul.bf16.gmra.mxu0 %v10177_v32  ;;  %1910 = vmatmul.bf16.gmra.mxu1 %v10179_v43  ;;  %v10185_v59 = vsel %vm10064_vm3, %v3425_v51, %v3429_v40  ;;  %v9121_v51 = vld [vmem:[#allocation5 + $0x444] sm:$0xf]  ;;  %v7017_v29 = vor.u32 %v9217_v28, %v7014_v13 }
 0x116   : > { %v756_v3 = vpack.c.bf16 %v708_v19, %v707_v41  ;;  %1998 = vmatpush.bf16.msra.mxu1 %v6777_v55  ;;  %v6630_v19 = vld [vmem:[#allocation5 + $0x450] sm:$0xf0]  ;;  %v9153_v35 = vld [vmem:[#allocation5 + $0x544] sm:$0xf] }
 0x117   : > { %v10187_v4 = vpack.c.bf16 %v710_v0, %v709_v52  ;;  %v6758_v52 = vld [vmem:[#allocation5 + $0x550] sm:$0xf0]  ;;  %v6633_v0 = vor.u32 %v9121_v51, %v6630_v19  ;;  %2049 = vmatpush.bf16.msra.mxu3 %v7017_v29  ;;  %v9149_v28 = vld [vmem:[#allocation5 + $0x524] sm:$0xf] }
 0x118   : > { %v1187_v24 = vunpack.c.l.b16 %v756_v3  ;;  %v1188_v30 = vunpack.c.h.b16 %v756_v3  ;;  %v6870_v19 = vld [vmem:[#allocation5 + $0x630] sm:$0xf0] }
 0x119   : > { %v943_v38 = vshrl.u32 %v10187_v4, 16  ;;  %v946_v39 = vshll.u32 %v10187_v4, 16  ;;  %1974 = vmatpush.bf16.msra.mxu0 %v6633_v0 }
 0x11a   : > { %v10191_v41 = vpack.c.b16 %v1187_v24, %v1183_v5  ;;  %v10193_v42 = vpack.c.b16 %v1188_v30, %v1184_v22  ;;  %v6761_v22 = vor.u32 %v9153_v35, %v6758_v52  ;;  %v9117_v24 = vld [vmem:[#allocation5 + $0x424] sm:$0xf]  ;;  %v6614_v30 = vld [vmem:[#allocation5 + $0x430] sm:$0xf0] }
 0x11b   : > { %v586_v40 = vpop.f32.mrf.mxu2  ;;  %v945_v60 = vrot.slane %v943_v38, 4  ;;  %v948_v34 = vrot.slane %v946_v39, 5  ;;  %v643_v53 = vpop.f32.mrf.mxu3  ;;  %v6742_v38 = vld [vmem:[#allocation5 + $0x530] sm:$0xf0]  ;;  %v6617_v13 = vor.u32 %v9117_v24, %v6614_v30  ;;  %v9213_v35 = vld [vmem:[#allocation5 + $0x724] sm:$0xf] }
 0x11c   : > { %v711_v49 = vmax.f32 %v586_v40, 0.0  ;;  %v474_v61 = vpop.f32.mrf.mxu0  ;;  %v712_v55 = vmax.f32 %v643_v53, 0.0  ;;  %1935 = vmatmul.bf16.gmra.mxu2 %v10191_v41  ;;  %1960 = vmatmul.bf16.gmra.mxu3 %v10193_v42  ;;  %v531_v5 = vpop.f32.mrf.mxu1  ;;  %v9181_v40 = vld [vmem:[#allocation5 + $0x624] sm:$0xf]  ;;  %v6745_v53 = vor.u32 %v9149_v28, %v6742_v38  ;;  %v6998_v52 = vld [vmem:[#allocation5 + $0x730] sm:$0xf0] }
 0x11d   : > { %v713_v3 = vmax.f32 %v474_v61, 0.0  ;;  %v949_v31 = vor.u32 %v948_v34, %v945_v60  ;;  %v714_v33 = vmax.f32 %v531_v5, 0.0  ;;  %1999 = vmatpush.bf16.msra.mxu1 %v6761_v22  ;;  %v6873_v61 = vor.u32 %v9181_v40, %v6870_v19  ;;  %v6598_v34 = vld [vmem:[#allocation5 + $0x410] sm:$0xf0]  ;;  %v9145_v5 = vld [vmem:[#allocation5 + $0x504] sm:$0xf]  ;;  %1975 = vmatpush.bf16.msra.mxu0 %v6617_v13 }
 0x11e   : > { %v10197_v39 = vpack.c.bf16 %v712_v55, %v711_v49  ;;  %v7001_v29 = vor.u32 %v9213_v35, %v6998_v52  ;;  %v6601_v0 = vor.u32 %v9113_v10, %v6598_v34  ;;  %v6726_v55 = vld [vmem:[#allocation5 + $0x510] sm:$0xf0]  ;;  %v9177_v30 = vld [vmem:[#allocation5 + $0x604] sm:$0xf]  ;;  %v10923_v34 = vunpack.c.h.b16 %v10161_v6 }
 0x11f   : > { %v10199_v51 = vpack.c.bf16 %v714_v33, %v713_v3  ;;  %v950_v60 = vrot.slane %v949_v31, 4  ;;  %2025 = vmatpush.bf16.msra.mxu2 %v6873_v61  ;;  %v6854_v33 = vld [vmem:[#allocation5 + $0x610] sm:$0xf0]  ;;  %v6729_v38 = vor.u32 %v9145_v5, %v6726_v55  ;;  %v9209_v19 = vld [vmem:[#allocation5 + $0x704] sm:$0xf] }
 0x120   : > { %2050 = vmatpush.bf16.msra.mxu3 %v7001_v29  ;;  %v6857_v40 = vor.u32 %v9177_v30, %v6854_v33  ;;  %v6982_v35 = vld [vmem:[#allocation5 + $0x710] sm:$0xf0] }
 0x121   : > { %v952_v45 = vshll.u32 %v10199_v51, 16  ;;  %2000 = vmatpush.bf16.msra.mxu1 %v6745_v53  ;;  %v6985_v9 = vor.u32 %v9209_v19, %v6982_v35  ;;  %1976 = vmatpush.bf16.msra.mxu0 %v6601_v0 }
 0x123   : > { %v10202_v49 = vpop.f32.mrf.mxu2  ;;  %v954_v3 = vrot.slane %v952_v45, 5  ;;  %v10204_v22 = vpop.f32.mrf.mxu3  ;;  %2026 = vmatpush.bf16.msra.mxu2 %v6857_v40  ;;  %v10921_v45 = vunpack.c.l.b16 %v10161_v6  ;;  %v9208_v40 = vld [vmem:[#allocation5 + $0x6f4] sm:$0xf0] }
 0x124   : > { %v477_v24 = vpop.f32.mrf.mxu0  ;;  %v534_v28 = vpop.f32.mrf.mxu1  ;;  %2051 = vmatpush.bf16.msra.mxu3 %v6985_v9 }
 0x125   : > { %v717_v31 = vmax.f32 %v477_v24, 0.0  ;;  %v718_v52 = vmax.f32 %v534_v28, 0.0  ;;  %v10208_v10 = vsel %vm10064_vm3, %v950_v60, %v954_v3  ;;  %2001 = vmatpush.bf16.msra.mxu1 %v6729_v38  ;;  %v6972_v38 = vld [vmem:[#allocation5 + $0x6e8] sm:$0xf] }
 0x126   : > { %v10888_v13 = vunpack.c.l.b16 %v10208_v10  ;;  %v10889_v53 = vunpack.c.h.b16 %v10208_v10  ;;  %v6973_v6 = vor.u32 %v9208_v40, %v6972_v38  ;;  %v10931_v11 = vunpack.c.h.b16 %v10208_v10 }
 0x127   : > { %v761_v61 = vpack.c.bf16 %v718_v52, %v717_v31 }
 0x128   : > { %v10216_v29 = vpack.c.b16 %v10888_v13, %v10921_v45  ;;  %v10222_v60 = vpack.c.b16 %v10889_v53, %v10923_v34  ;;  %v7100_v45 = vld [vmem:[#allocation5 + $0x7e8] sm:$0xf]  ;;  %v9240_v13 = vld [vmem:[#allocation5 + $0x7f4] sm:$0xf0]  ;;  %2119 = vmatpush.bf16.msrb.mxu2 %v6973_v6 }
 0x129   : > { %v3432_v5 = vshrl.u32 %v761_v61, 16  ;;  %v3435_v0 = vshll.u32 %v761_v61, 16  ;;  %v1189_v34 = vunpack.c.l.b16 %v761_v61  ;;  %v7101_v53 = vor.u32 %v9240_v13, %v7100_v45 }
 0x12a   : > { %10922 = vst [vmem:[#allocation25_spill] sm:$0xff] %v10216_v29  ;;  %v1190_v29 = vunpack.c.h.b16 %v761_v61 }
 0x12b   : > { %10924 = vst [vmem:[#allocation26_spill] sm:$0xff] %v10222_v60  ;;  %v591_v55 = vpop.f32.mrf.mxu2  ;;  %v3434_v3 = vrot.slane %v3432_v5, 4  ;;  %v3437_v24 = vrot.slane %v3435_v0, 5  ;;  %v648_v30 = vpop.f32.mrf.mxu3  ;;  %v6844_v60 = vld [vmem:[#allocation5 + $0x5e8] sm:$0xf]  ;;  %2144 = vmatpush.bf16.msrb.mxu3 %v7101_v53 }
 0x12c   : > { %v479_v33 = vpop.f32.mrf.mxu0  ;;  %v719_v9 = vmax.f32 %v591_v55, 0.0  ;;  %v536_v28 = vpop.f32.mrf.mxu1  ;;  %v720_v35 = vmax.f32 %v648_v30, 0.0  ;;  %v6717_v55 = vor.u32 %v9144_v14, %v6716_v16  ;;  %v9236_v30 = vld [vmem:[#allocation5 + $0x7d4] sm:$0xf0] }
 0x12d   : > { %v721_v31 = vmax.f32 %v479_v33, 0.0  ;;  %v3438_v19 = vor.u32 %v3437_v24, %v3434_v3  ;;  %v722_v52 = vmax.f32 %v536_v28, 0.0  ;;  %v9176_v33 = vld [vmem:[#allocation5 + $0x5f4] sm:$0xf0]  ;;  %v7084_v24 = vld [vmem:[#allocation5 + $0x7c8] sm:$0xf] }
 0x12e   : > { %v6845_v36 = vor.u32 %v9176_v33, %v6844_v60  ;;  %v9204_v3 = vld [vmem:[#allocation5 + $0x6d4] sm:$0xf0]  ;;  %2069 = vmatpush.bf16.msrb.mxu0 %v6717_v55  ;;  %v762_v45 = vpack.c.bf16 %v720_v35, %v719_v9  ;;  %v3514_v9 = vunpack.c.l.b16 %v10185_v59  ;;  %v6828_v55 = vld [vmem:[#allocation5 + $0x5c8] sm:$0xf] }
 0x12f   : > { %v3439_v5 = vrot.slane %v3438_v19, 4  ;;  %v763_v0 = vpack.c.bf16 %v722_v52, %v721_v31  ;;  %v6957_v13 = vor.u32 %v9204_v3, %v6956_v37  ;;  %v7085_v19 = vor.u32 %v9236_v30, %v7084_v24  ;;  %v9140_v37 = vld [vmem:[#allocation5 + $0x4d4] sm:$0xf0] }
 0x130   : > { %2094 = vmatpush.bf16.msrb.mxu1 %v6845_v36  ;;  %v6700_v36 = vld [vmem:[#allocation5 + $0x4c8] sm:$0xf]  ;;  %v9172_v3 = vld [vmem:[#allocation5 + $0x5d4] sm:$0xf0] }
 0x131   : > { %v1193_v28 = vunpack.c.l.b16 %v763_v0  ;;  %v1194_v38 = vunpack.c.h.b16 %v763_v0  ;;  %v3441_v40 = vshll.u32 %v763_v0, 16  ;;  %2120 = vmatpush.bf16.msrb.mxu2 %v6957_v13  ;;  %2145 = vmatpush.bf16.msrb.mxu3 %v7085_v19  ;;  %v6829_v13 = vor.u32 %v9172_v3, %v6828_v55 }
 0x133   : > { %v593_v58 = vpop.f32.mrf.mxu2  ;;  %v3443_v31 = vrot.slane %v3441_v40, 5  ;;  %v650_v52 = vpop.f32.mrf.mxu3  ;;  %v10224_v16 = vpack.c.b16 %v1193_v28, %v1189_v34  ;;  %v10226_v53 = vpack.c.b16 %v1194_v38, %v1190_v29  ;;  %v3515_v29 = vunpack.c.h.b16 %v10185_v59 }
 0x134   : > { %v723_v61 = vmax.f32 %v593_v58, 0.0  ;;  %v482_v14 = vpop.f32.mrf.mxu0  ;;  %v724_v60 = vmax.f32 %v650_v52, 0.0  ;;  %v539_v33 = vpop.f32.mrf.mxu1  ;;  %v6701_v34 = vor.u32 %v9140_v37, %v6700_v36  ;;  %v1191_v28 = vunpack.c.l.b16 %v762_v45  ;;  %2095 = vmatpush.bf16.msrb.mxu1 %v6829_v13 }
 0x135   : > { %v725_v6 = vmax.f32 %v482_v14, 0.0  ;;  %v726_v0 = vmax.f32 %v539_v33, 0.0  ;;  %1889 = vmatmul.bf16.gmra.mxu0 %v10224_v16  ;;  %1914 = vmatmul.bf16.gmra.mxu1 %v10226_v53  ;;  %v3444_v58 = vsel %vm10064_vm3, %v3439_v5, %v3443_v31  ;;  %v1192_v38 = vunpack.c.h.b16 %v762_v45 }
 0x136   : > { %v764_v35 = vpack.c.bf16 %v724_v60, %v723_v61  ;;  %v3516_v24 = vunpack.c.l.b16 %v3444_v58  ;;  %v3517_v30 = vunpack.c.h.b16 %v3444_v58  ;;  %2070 = vmatpush.bf16.msrb.mxu0 %v6701_v34  ;;  %v9200_v34 = vld [vmem:[#allocation5 + $0x6b4] sm:$0xf0] }
 0x137   : > { %v10234_v40 = vpack.c.bf16 %v726_v0, %v725_v6 }
 0x138   : > { %v1195_v19 = vunpack.c.l.b16 %v764_v35  ;;  %v1196_v52 = vunpack.c.h.b16 %v764_v35  ;;  %v10236_v14 = vpack.c.b16 %v3516_v24, %v3514_v9  ;;  %v10238_v5 = vpack.c.b16 %v3517_v30, %v3515_v29  ;;  %v6940_v35 = vld [vmem:[#allocation5 + $0x6a8] sm:$0xf] }
 0x139   : > { %10925 = vst [vmem:[#allocation27_spill] sm:$0xff] %v10234_v40  ;;  %v5692_v59 = vshrl.u32 %v10234_v40, 16  ;;  %v5695_v31 = vshll.u32 %v10234_v40, 16  ;;  %v6941_v24 = vor.u32 %v9200_v34, %v6940_v35  ;;  %v7068_v30 = vld [vmem:[#allocation5 + $0x7a8] sm:$0xf] }
 0x13a   : > { %v10242_v61 = vpack.c.b16 %v1195_v19, %v1191_v28  ;;  %v10244_v60 = vpack.c.b16 %v1196_v52, %v1192_v38  ;;  %v9232_v28 = vld [vmem:[#allocation5 + $0x7b4] sm:$0xf0] }
 0x13b   : > { %v596_v45 = vpop.f32.mrf.mxu2  ;;  %v5694_v6 = vrot.slane %v5692_v59, 4  ;;  %v5697_v33 = vrot.slane %v5695_v31, 5  ;;  %v653_v37 = vpop.f32.mrf.mxu3  ;;  %v7069_v13 = vor.u32 %v9232_v28, %v7068_v30  ;;  %2121 = vmatpush.bf16.msrb.mxu2 %v6941_v24  ;;  %v7052_v24 = vld [vmem:[#allocation5 + $0x788] sm:$0xf]  ;;  %v9228_v30 = vld [vmem:[#allocation5 + $0x794] sm:$0xf0] }
 0x13c   : > { %v484_v0 = vpop.f32.mrf.mxu0  ;;  %v727_v36 = vmax.f32 %v596_v45, 0.0  ;;  %1939 = vmatmul.bf16.gmra.mxu2 %v10242_v61  ;;  %1964 = vmatmul.bf16.gmra.mxu3 %v10244_v60  ;;  %v541_v9 = vpop.f32.mrf.mxu1  ;;  %v728_v29 = vmax.f32 %v653_v37, 0.0  ;;  %v6684_v45 = vld [vmem:[#allocation5 + $0x4a8] sm:$0xf] }
 0x13d   : > { %v729_v58 = vmax.f32 %v484_v0, 0.0  ;;  %v5698_v55 = vor.u32 %v5697_v33, %v5694_v6  ;;  %v730_v3 = vmax.f32 %v541_v9, 0.0  ;;  %2146 = vmatpush.bf16.msrb.mxu3 %v7069_v13  ;;  %v9136_v0 = vld [vmem:[#allocation5 + $0x4b4] sm:$0xf0]  ;;  %v6812_v37 = vld [vmem:[#allocation5 + $0x5a8] sm:$0xf]  ;;  %v7053_v13 = vor.u32 %v9228_v30, %v7052_v24 }
 0x13e   : > { %v10248_v38 = vpack.c.bf16 %v728_v29, %v727_v36  ;;  %v6685_v35 = vor.u32 %v9136_v0, %v6684_v45  ;;  %v9168_v36 = vld [vmem:[#allocation5 + $0x5b4] sm:$0xf0]  ;;  %v6924_v29 = vld [vmem:[#allocation5 + $0x688] sm:$0xf] }
 0x13f   : > { %v10250_v19 = vpack.c.bf16 %v730_v3, %v729_v58  ;;  %v5699_v52 = vrot.slane %v5698_v55, 4  ;;  %v6813_v58 = vor.u32 %v9168_v36, %v6812_v37  ;;  %v9196_v3 = vld [vmem:[#allocation5 + $0x694] sm:$0xf0]  ;;  %v6668_v0 = vld [vmem:[#allocation5 + $0x488] sm:$0xf] }
 0x140   : > { %10926 = vst [vmem:[#allocation28_spill] sm:$0xff] %v10248_v38  ;;  %v6925_v55 = vor.u32 %v9196_v3, %v6924_v29  ;;  %2071 = vmatpush.bf16.msrb.mxu0 %v6685_v35  ;;  %v6796_v37 = vld [vmem:[#allocation5 + $0x588] sm:$0xf]  ;;  %v10929_v38 = vunpack.c.l.b16 %v10208_v10 }
 0x141   : > { %v5701_v59 = vshll.u32 %v10250_v19, 16  ;;  %2096 = vmatpush.bf16.msrb.mxu1 %v6813_v58  ;;  %2147 = vmatpush.bf16.msrb.mxu3 %v7053_v13  ;;  %v6908_v24 = vld [vmem:[#allocation5 + $0x668] sm:$0xf] }
 0x142   : > { %2122 = vmatpush.bf16.msrb.mxu2 %v6925_v55  ;;  %v9192_v55 = vld [vmem:[#allocation5 + $0x674] sm:$0xf0]  ;;  %v7036_v30 = vld [vmem:[#allocation5 + $0x768] sm:$0xf] }
 0x143   : > { %v10253_v31 = vpop.f32.mrf.mxu2  ;;  %v5703_v6 = vrot.slane %v5701_v59, 5  ;;  %v10255_v9 = vpop.f32.mrf.mxu3  ;;  %v6652_v13 = vld [vmem:[#allocation5 + $0x468] sm:$0xf] }
 0x144   : > { %10927 = vst [vmem:[#allocation29_spill] sm:$0xff] %v10253_v31  ;;  %v487_v33 = vpop.f32.mrf.mxu0  ;;  %v544_v34 = vpop.f32.mrf.mxu1  ;;  %v6990_v31 = vld [vmem:[#allocation5 + $0x718] sm:$0xf0] }
 0x145   : > { %10928 = vst [vmem:[#allocation30_spill] sm:$0xff] %v10255_v9  ;;  %1977 = vmatmul.bf16.vlgmr.msra.gmra.mxu0 %v10081_v47  ;;  %2002 = vmatmul.bf16.vlgmr.msra.gmra.mxu1 %v10083_v48  ;;  %v5704_v28 = vsel %vm10064_vm3, %v5699_v52, %v5703_v6  ;;  %v9132_v33 = vld [vmem:[#allocation5 + $0x494] sm:$0xf0] }
 0x146   : > { %v5770_v59 = vunpack.c.l.b16 %v5704_v28  ;;  %v5771_v45 = vunpack.c.h.b16 %v5704_v28  ;;  %v6669_v36 = vor.u32 %v9132_v33, %v6668_v0  ;;  %v9164_v34 = vld [vmem:[#allocation5 + $0x594] sm:$0xf0]  ;;  %v6780_v0 = vld [vmem:[#allocation5 + $0x568] sm:$0xf] }
 0x147   : > { %v6797_v29 = vor.u32 %v9164_v34, %v6796_v37  ;;  %v9224_v28 = vld [vmem:[#allocation5 + $0x774] sm:$0xf0] }
 0x148   : > { %v10263_v40 = vpack.c.b16 %v5770_v59, %v10929_v38  ;;  %v10267_v52 = vpack.c.b16 %v5771_v45, %v10931_v11  ;;  %2072 = vmatpush.bf16.msrb.mxu0 %v6669_v36  ;;  %v6909_v38 = vor.u32 %v9192_v55, %v6908_v24  ;;  %v9128_v59 = vld [vmem:[#allocation5 + $0x474] sm:$0xf0]  ;;  %v7037_v10 = vor.u32 %v9224_v28, %v7036_v30  ;;  %v6892_v11 = vld [vmem:[#allocation5 + $0x648] sm:$0xf] }
 0x149   : > { %2097 = vmatpush.bf16.msrb.mxu1 %v6797_v29  ;;  %v6653_v45 = vor.u32 %v9128_v59, %v6652_v13  ;;  %v9160_v33 = vld [vmem:[#allocation5 + $0x574] sm:$0xf0]  ;;  %v6764_v13 = vld [vmem:[#allocation5 + $0x548] sm:$0xf] }
 0x14a   : > { %10930 = vst [vmem:[#allocation31_spill] sm:$0xff] %v10263_v40  ;;  %2123 = vmatpush.bf16.msrb.mxu2 %v6909_v38  ;;  %v6781_v37 = vor.u32 %v9160_v33, %v6780_v0  ;;  %2148 = vmatpush.bf16.msrb.mxu3 %v7037_v10  ;;  %v9220_v24 = vld [vmem:[#allocation5 + $0x754] sm:$0xf0]  ;;  %v6636_v38 = vld [vmem:[#allocation5 + $0x448] sm:$0xf] }
 0x14b   : > { %10932 = vst [vmem:[#allocation32_spill] sm:$0xff] %v10267_v52  ;;  %v601_v6 = vpop.f32.mrf.mxu2  ;;  %v658_v58 = vpop.f32.mrf.mxu3  ;;  %v9124_v28 = vld [vmem:[#allocation5 + $0x454] sm:$0xf0] }
 0x14c   : > { %v488_v35 = vpop.f32.mrf.mxu0  ;;  %2027 = vmatmul.bf16.vlgmr.msra.gmra.mxu2 %v10095_v1  ;;  %2052 = vmatmul.bf16.vlgmr.msra.gmra.mxu3 %v10097_v2  ;;  %v545_v3 = vpop.f32.mrf.mxu1  ;;  %v9188_v6 = vld [vmem:[#allocation5 + $0x654] sm:$0xf0]  ;;  %v6637_v59 = vor.u32 %v9124_v28, %v6636_v38 }
 0x14d   : > { %2073 = vmatpush.bf16.msrb.mxu0 %v6653_v45  ;;  %2098 = vmatpush.bf16.msrb.mxu1 %v6781_v37  ;;  %v7020_v35 = vld [vmem:[#allocation5 + $0x748] sm:$0xf]  ;;  %v6893_v3 = vor.u32 %v9188_v6, %v6892_v11  ;;  %v9156_v10 = vld [vmem:[#allocation5 + $0x554] sm:$0xf0] }
 0x14e   : > { %v7021_v30 = vor.u32 %v9220_v24, %v7020_v35  ;;  %v6765_v45 = vor.u32 %v9156_v10, %v6764_v13  ;;  %v6876_v37 = vld [vmem:[#allocation5 + $0x628] sm:$0xf]  ;;  %v9216_v11 = vld [vmem:[#allocation5 + $0x734] sm:$0xf0] }
 0x14f   : > { %2124 = vmatpush.bf16.msrb.mxu2 %v6893_v3  ;;  %v6620_v6 = vld [vmem:[#allocation5 + $0x428] sm:$0xf]  ;;  %v9120_v35 = vld [vmem:[#allocation5 + $0x434] sm:$0xf0] }
 0x150   : > { %2149 = vmatpush.bf16.msrb.mxu3 %v7021_v30  ;;  %v6621_v3 = vor.u32 %v9120_v35, %v6620_v6  ;;  %v6748_v24 = vld [vmem:[#allocation5 + $0x528] sm:$0xf]  ;;  %v9152_v30 = vld [vmem:[#allocation5 + $0x534] sm:$0xf0] }
 0x151   : > { %2074 = vmatpush.bf16.msrb.mxu0 %v6637_v59  ;;  %2099 = vmatpush.bf16.msrb.mxu1 %v6765_v45  ;;  %v6749_v13 = vor.u32 %v9152_v30, %v6748_v24  ;;  %v6604_v10 = vld [vmem:[#allocation5 + $0x408] sm:$0xf]  ;;  %v9116_v45 = vld [vmem:[#allocation5 + $0x414] sm:$0xf0]  ;;  %v6974_v24 = vld [vmem:[#allocation5 + $0x6f8] sm:$0xf0] }
 0x152   : > { %v6988_v6 = vld [vmem:[#allocation5 + $0x708] sm:$0xf]  ;;  %v9212_v40 = vld [vmem:[#allocation5 + $0x714] sm:$0xf0]  ;;  %v9238_v30 = vld [vmem:[#allocation5 + $0x7ec] sm:$0xf] }
 0x153   : > { %v602_v36 = vpop.f32.mrf.mxu2  ;;  %v659_v29 = vpop.f32.mrf.mxu3 }
 0x154   : > { %v1878_v34 = vpop.f32.mrf.mxu0  ;;  %v1903_v58 = vpop.f32.mrf.mxu1  ;;  %v9184_v36 = vld [vmem:[#allocation5 + $0x634] sm:$0xf0] }
 0x155   : > { %v1904_v55 = vadd.f32 %v1903_v58, %v1878_v34  ;;  %1981 = vmatmul.bf16.gmra.mxu0 %v10126_v17  ;;  %2006 = vmatmul.bf16.gmra.mxu1 %v10128_v21  ;;  %v7004_v34 = vld [vmem:[#allocation5 + $0x728] sm:$0xf]  ;;  %v6877_v29 = vor.u32 %v9184_v36, %v6876_v37  ;;  %v9148_v37 = vld [vmem:[#allocation5 + $0x514] sm:$0xf0] }
 0x156   : > { %v7005_v58 = vor.u32 %v9216_v11, %v7004_v34  ;;  %2075 = vmatpush.bf16.msrb.mxu0 %v6621_v3  ;;  %2100 = vmatpush.bf16.msrb.mxu1 %v6749_v13  ;;  %v6860_v34 = vld [vmem:[#allocation5 + $0x608] sm:$0xf]  ;;  %v9180_v11 = vld [vmem:[#allocation5 + $0x614] sm:$0xf0]  ;;  %v9206_v3 = vld [vmem:[#allocation5 + $0x6ec] sm:$0xf] }
 0x157   : > { %2125 = vmatpush.bf16.msrb.mxu2 %v6877_v29  ;;  %v6861_v35 = vor.u32 %v9180_v11, %v6860_v34  ;;  %v6989_v29 = vor.u32 %v9212_v40, %v6988_v6  ;;  %v9142_v13 = vld [vmem:[#allocation5 + $0x4ec] sm:$0xf]  ;;  %v6718_v40 = vld [vmem:[#allocation5 + $0x4f8] sm:$0xf0] }
 0x158   : > { %2150 = vmatpush.bf16.msrb.mxu3 %v7005_v58  ;;  %v9202_v11 = vld [vmem:[#allocation5 + $0x6cc] sm:$0xf]  ;;  %v6958_v6 = vld [vmem:[#allocation5 + $0x6d8] sm:$0xf0] }
 0x15b   : > { %2126 = vmatpush.bf16.msrb.mxu2 %v6861_v35  ;;  %v9234_v35 = vld [vmem:[#allocation5 + $0x7cc] sm:$0xf] }
 0x15c   : > { %v1880_v0 = vpop.f32.mrf.mxu0  ;;  %2031 = vmatmul.bf16.gmra.mxu2 %v10144_v62  ;;  %2056 = vmatmul.bf16.gmra.mxu3 %v10146_v63  ;;  %v1905_v33 = vpop.f32.mrf.mxu1 }
 0x15d   : > { %v6732_v0 = vld [vmem:[#allocation5 + $0x508] sm:$0xf]  ;;  %v6605_v33 = vor.u32 %v9116_v45, %v6604_v10  ;;  %2151 = vmatpush.bf16.msrb.mxu3 %v6989_v29  ;;  %v6721_v10 = vor.u32 %v9142_v13, %v6718_v40  ;;  %v9174_v45 = vld [vmem:[#allocation5 + $0x5ec] sm:$0xf]  ;;  %v6961_v29 = vor.u32 %v9202_v11, %v6958_v6 }
 0x15e   : > { %v6733_v52 = vor.u32 %v9148_v37, %v6732_v0  ;;  %v6846_v0 = vld [vmem:[#allocation5 + $0x5f8] sm:$0xf0] }
 0x15f   : > { %v1928_v38 = vpop.f32.mrf.mxu2  ;;  %v1953_v28 = vpop.f32.mrf.mxu3  ;;  %2076 = vmatpush.bf16.msrb.mxu0 %v6605_v33 }
 0x160   : > { %v1929_v59 = vadd.f32 %v1928_v38, %v1904_v55  ;;  %2101 = vmatpush.bf16.msrb.mxu1 %v6733_v52  ;;  %v6977_v38 = vor.u32 %v9206_v3, %v6974_v24  ;;  %v6849_v52 = vor.u32 %v9174_v45, %v6846_v0  ;;  %v9138_v3 = vld [vmem:[#allocation5 + $0x4cc] sm:$0xf]  ;;  %v6702_v24 = vld [vmem:[#allocation5 + $0x4d8] sm:$0xf0] }
 0x161   : > { %v6942_v45 = vld [vmem:[#allocation5 + $0x6b8] sm:$0xf0]  ;;  %v9230_v0 = vld [vmem:[#allocation5 + $0x7ac] sm:$0xf] }
 0x162   : > { %v10275_v36 = vadd.f32 %v1953_v28, %v1929_v59  ;;  %v7102_v28 = vld [vmem:[#allocation5 + $0x7f8] sm:$0xf0]  ;;  %2219 = vmatpush.bf16.msra.mxu2 %v6977_v38  ;;  %v6705_v38 = vor.u32 %v9138_v3, %v6702_v24  ;;  %v9166_v3 = vld [vmem:[#allocation5 + $0x5ac] sm:$0xf] }
 0x163   : > { %v7105_v59 = vor.u32 %v9238_v30, %v7102_v28  ;;  %2169 = vmatpush.bf16.msra.mxu0 %v6721_v10  ;;  %v9170_v30 = vld [vmem:[#allocation5 + $0x5cc] sm:$0xf]  ;;  %v6830_v28 = vld [vmem:[#allocation5 + $0x5d8] sm:$0xf0] }
 0x164   : > { %2194 = vmatpush.bf16.msra.mxu1 %v6849_v52  ;;  %v6833_v13 = vor.u32 %v9170_v30, %v6830_v28  ;;  %v9198_v10 = vld [vmem:[#allocation5 + $0x6ac] sm:$0xf]  ;;  %v6814_v30 = vld [vmem:[#allocation5 + $0x5b8] sm:$0xf0] }
 0x165   : > { %1985 = vmatmul.bf16.gmra.mxu0 %v10177_v32  ;;  %2010 = vmatmul.bf16.gmra.mxu1 %v10179_v43  ;;  %v6945_v52 = vor.u32 %v9198_v10, %v6942_v45  ;;  %v6926_v28 = vld [vmem:[#allocation5 + $0x698] sm:$0xf0] }
 0x166   : > { %2244 = vmatpush.bf16.msra.mxu3 %v7105_v59  ;;  %2220 = vmatpush.bf16.msra.mxu2 %v6961_v29  ;;  %v7054_v10 = vld [vmem:[#allocation5 + $0x798] sm:$0xf0] }
 0x167   : > { %v1930_v55 = vpop.f32.mrf.mxu2  ;;  %v1955_v58 = vpop.f32.mrf.mxu3  ;;  %2170 = vmatpush.bf16.msra.mxu0 %v6705_v38  ;;  %v9194_v38 = vld [vmem:[#allocation5 + $0x68c] sm:$0xf] }
 0x168   : > { %v7086_v55 = vld [vmem:[#allocation5 + $0x7d8] sm:$0xf0]  ;;  %2195 = vmatpush.bf16.msra.mxu1 %v6833_v13  ;;  %v6817_v13 = vor.u32 %v9166_v3, %v6814_v30  ;;  %v9222_v3 = vld [vmem:[#allocation5 + $0x76c] sm:$0xf] }
 0x169   : > { %v7089_v58 = vor.u32 %v9234_v35, %v7086_v55  ;;  %v9134_v55 = vld [vmem:[#allocation5 + $0x4ac] sm:$0xf]  ;;  %v7038_v30 = vld [vmem:[#allocation5 + $0x778] sm:$0xf0] }
 0x16a   : > { %2221 = vmatpush.bf16.msra.mxu2 %v6945_v52  ;;  %v9130_v52 = vld [vmem:[#allocation5 + $0x48c] sm:$0xf] }
 0x16b   : > { %2245 = vmatpush.bf16.msra.mxu3 %v7089_v58  ;;  %v6686_v58 = vld [vmem:[#allocation5 + $0x4b8] sm:$0xf0] }
 0x16c   : > { %2035 = vmatmul.bf16.gmra.mxu2 %v10191_v41  ;;  %2060 = vmatmul.bf16.gmra.mxu3 %v10193_v42  ;;  %v6689_v24 = vor.u32 %v9134_v55, %v6686_v58  ;;  %v9190_v55 = vld [vmem:[#allocation5 + $0x66c] sm:$0xf]  ;;  %v6910_v58 = vld [vmem:[#allocation5 + $0x678] sm:$0xf0] }
 0x16d   : > { %2196 = vmatpush.bf16.msra.mxu1 %v6817_v13  ;;  %v7041_v13 = vor.u32 %v9222_v3, %v7038_v30  ;;  %v6638_v3 = vld [vmem:[#allocation5 + $0x458] sm:$0xf0] }
 0x16e   : > { %2171 = vmatpush.bf16.msra.mxu0 %v6689_v24  ;;  %v6913_v24 = vor.u32 %v9190_v55, %v6910_v58  ;;  %v9122_v58 = vld [vmem:[#allocation5 + $0x44c] sm:$0xf] }
 0x16f   : > { %v6641_v30 = vor.u32 %v9122_v58, %v6638_v3 }
 0x172   : > { %v1882_v33 = vpop.f32.mrf.mxu0  ;;  %v1907_v37 = vpop.f32.mrf.mxu1 }
 0x173   : > { %v1908_v34 = vadd.f32 %v1907_v37, %v1882_v33  ;;  %v7070_v33 = vld [vmem:[#allocation5 + $0x7b8] sm:$0xf0] }
 0x174   : > { %v7073_v37 = vor.u32 %v9230_v0, %v7070_v33  ;;  %v6670_v33 = vld [vmem:[#allocation5 + $0x498] sm:$0xf0] }
 0x175   : > { %1989 = vmatmul.bf16.gmra.mxu0 %v10224_v16  ;;  %2014 = vmatmul.bf16.gmra.mxu1 %v10226_v53 }
 0x176   : > { %2246 = vmatpush.bf16.msra.mxu3 %v7073_v37  ;;  %v9162_v37 = vld [vmem:[#allocation5 + $0x58c] sm:$0xf] }
 0x17a   : > { %v1884_v40 = vpop.f32.mrf.mxu0  ;;  %v1909_v59 = vpop.f32.mrf.mxu1 }
 0x17b   : > { %v6929_v40 = vor.u32 %v9194_v38, %v6926_v28  ;;  %v9226_v59 = vld [vmem:[#allocation5 + $0x78c] sm:$0xf]  ;;  %v6654_v28 = vld [vmem:[#allocation5 + $0x478] sm:$0xf0] }
 0x17c   : > { %2039 = vmatmul.bf16.gmra.mxu2 %v10242_v61  ;;  %2064 = vmatmul.bf16.gmra.mxu3 %v10244_v60  ;;  %v7057_v45 = vor.u32 %v9226_v59, %v7054_v10  ;;  %v9126_v38 = vld [vmem:[#allocation5 + $0x46c] sm:$0xf]  ;;  %v6782_v10 = vld [vmem:[#allocation5 + $0x578] sm:$0xf0] }
 0x17d   : > { %2222 = vmatpush.bf16.msra.mxu2 %v6929_v40  ;;  %v6657_v40 = vor.u32 %v9126_v38, %v6654_v28  ;;  %v9158_v59 = vld [vmem:[#allocation5 + $0x56c] sm:$0xf]  ;;  %v6766_v38 = vld [vmem:[#allocation5 + $0x558] sm:$0xf0] }
 0x17e   : > { %2247 = vmatpush.bf16.msra.mxu3 %v7057_v45  ;;  %v6785_v45 = vor.u32 %v9158_v59, %v6782_v10  ;;  %v9182_v59 = vld [vmem:[#allocation5 + $0x62c] sm:$0xf]  ;;  %v6878_v10 = vld [vmem:[#allocation5 + $0x638] sm:$0xf0] }
 0x17f   : > { %v1932_v11 = vpop.f32.mrf.mxu2  ;;  %v1957_v6 = vpop.f32.mrf.mxu3 }
 0x180   : > { %v1933_v35 = vadd.f32 %v1932_v11, %v1908_v34  ;;  %v6673_v11 = vor.u32 %v9130_v52, %v6670_v33  ;;  %v9186_v33 = vld [vmem:[#allocation5 + $0x64c] sm:$0xf] }
 0x181   : > { %2223 = vmatpush.bf16.msra.mxu2 %v6913_v24  ;;  %v9154_v24 = vld [vmem:[#allocation5 + $0x54c] sm:$0xf] }
 0x182   : > { %v10285_v29 = vadd.f32 %v1957_v6, %v1933_v35  ;;  %v6798_v6 = vld [vmem:[#allocation5 + $0x598] sm:$0xf0]  ;;  %2172 = vmatpush.bf16.msra.mxu0 %v6673_v11  ;;  %2248 = vmatpush.bf16.msra.mxu3 %v7041_v13  ;;  %v9218_v11 = vld [vmem:[#allocation5 + $0x74c] sm:$0xf]  ;;  %v6769_v28 = vor.u32 %v9154_v24, %v6766_v38 }
 0x183   : > { %v6801_v35 = vor.u32 %v9162_v37, %v6798_v6  ;;  %v6894_v37 = vld [vmem:[#allocation5 + $0x658] sm:$0xf0]  ;;  %v9114_v38 = vld [vmem:[#allocation5 + $0x40c] sm:$0xf] }
 0x184   : > { %v6897_v6 = vor.u32 %v9186_v33, %v6894_v37  ;;  %v9118_v33 = vld [vmem:[#allocation5 + $0x42c] sm:$0xf]  ;;  %v6622_v37 = vld [vmem:[#allocation5 + $0x438] sm:$0xf0] }
 0x185   : > { %2077 = vmatmul.bf16.vlgmr.msrb.gmra.mxu0 %v10081_v47  ;;  %2102 = vmatmul.bf16.vlgmr.msrb.gmra.mxu1 %v10083_v48 }
 0x186   : > { %2197 = vmatpush.bf16.msra.mxu1 %v6801_v35  ;;  %2173 = vmatpush.bf16.msra.mxu0 %v6657_v40  ;;  %v7022_v35 = vld [vmem:[#allocation5 + $0x758] sm:$0xf0] }
 0x187   : > { %v1934_v34 = vpop.f32.mrf.mxu2  ;;  %v1959_v0 = vpop.f32.mrf.mxu3  ;;  %v7025_v55 = vor.u32 %v9218_v11, %v7022_v35  ;;  %2224 = vmatpush.bf16.msra.mxu2 %v6897_v6  ;;  %v6625_v6 = vor.u32 %v9118_v33, %v6622_v37  ;;  %v9150_v35 = vld [vmem:[#allocation5 + $0x52c] sm:$0xf] }
 0x188   : > { %v9210_v33 = vld [vmem:[#allocation5 + $0x70c] sm:$0xf] }
 0x189   : > { %2249 = vmatpush.bf16.msra.mxu3 %v7025_v55  ;;  %v6750_v55 = vld [vmem:[#allocation5 + $0x538] sm:$0xf0] }
 0x18a   : > { %2198 = vmatpush.bf16.msra.mxu1 %v6785_v45  ;;  %2174 = vmatpush.bf16.msra.mxu0 %v6641_v30  ;;  %v9214_v45 = vld [vmem:[#allocation5 + $0x72c] sm:$0xf]  ;;  %v6753_v24 = vor.u32 %v9150_v35, %v6750_v55  ;;  %v9015_v35 = vld [vmem:[#allocation5 + $0x2ec] sm:$0xf0]  ;;  %v7604_v55 = vld [vmem:[#allocation5 + $0x3e0] sm:$0xf] }
 0x18c   : > { %2127 = vmatmul.bf16.vlgmr.msrb.gmra.mxu2 %v10095_v1  ;;  %2152 = vmatmul.bf16.vlgmr.msrb.gmra.mxu3 %v10097_v2 }
 0x18e   : > { %2199 = vmatpush.bf16.msra.mxu1 %v6769_v28  ;;  %2175 = vmatpush.bf16.msra.mxu0 %v6625_v6  ;;  %v6606_v28 = vld [vmem:[#allocation5 + $0x418] sm:$0xf0]  ;;  %v7476_v6 = vld [vmem:[#allocation5 + $0x2e0] sm:$0xf] }
 0x192   : > { %v1886_v34 = vpop.f32.mrf.mxu0  ;;  %v1911_v0 = vpop.f32.mrf.mxu1  ;;  %2200 = vmatpush.bf16.msra.mxu1 %v6753_v24 }
 0x193   : > { %v1912_v52 = vadd.f32 %v1911_v0, %v1886_v34  ;;  %v6881_v34 = vor.u32 %v9182_v59, %v6878_v10  ;;  %v7006_v0 = vld [vmem:[#allocation5 + $0x738] sm:$0xf0] }
 0x194   : > { %v7009_v11 = vor.u32 %v9214_v45, %v7006_v0  ;;  %v6734_v59 = vld [vmem:[#allocation5 + $0x518] sm:$0xf0]  ;;  %v9178_v45 = vld [vmem:[#allocation5 + $0x60c] sm:$0xf] }
 0x195   : > { %2081 = vmatmul.bf16.gmra.mxu0 %v10126_v17  ;;  %2106 = vmatmul.bf16.gmra.mxu1 %v10128_v21  ;;  %v6862_v0 = vld [vmem:[#allocation5 + $0x618] sm:$0xf0] }
 0x196   : > { %2225 = vmatpush.bf16.msra.mxu2 %v6881_v34  ;;  %2250 = vmatpush.bf16.msra.mxu3 %v7009_v11  ;;  %v6865_v37 = vor.u32 %v9178_v45, %v6862_v0  ;;  %v7460_v45 = vld [vmem:[#allocation5 + $0x2c0] sm:$0xf]  ;;  %v9011_v0 = vld [vmem:[#allocation5 + $0x2cc] sm:$0xf0] }
 0x19a   : > { %v1888_v13 = vpop.f32.mrf.mxu0  ;;  %v1913_v40 = vpop.f32.mrf.mxu1  ;;  %2226 = vmatpush.bf16.msra.mxu2 %v6865_v37  ;;  %v7461_v37 = vor.u32 %v9011_v0, %v7460_v45 }
 0x19b   : > { %v9146_v13 = vld [vmem:[#allocation5 + $0x50c] sm:$0xf]  ;;  %v6609_v40 = vor.u32 %v9114_v38, %v6606_v28  ;;  %v7348_v28 = vld [vmem:[#allocation5 + $0x1e0] sm:$0xf] }
 0x19c   : > { %2131 = vmatmul.bf16.gmra.mxu2 %v10144_v62  ;;  %2156 = vmatmul.bf16.gmra.mxu3 %v10146_v63  ;;  %v6737_v9 = vor.u32 %v9146_v13, %v6734_v59  ;;  %v8983_v59 = vld [vmem:[#allocation5 + $0x1ec] sm:$0xf0] }
 0x19d   : > { %2176 = vmatpush.bf16.msra.mxu0 %v6609_v40 }
 0x19e   : > { %2201 = vmatpush.bf16.msra.mxu1 %v6737_v9  ;;  %v8951_v9 = vld [vmem:[#allocation5 + $0xec] sm:$0xf0] }
 0x19f   : > { %v1936_v58 = vpop.f32.mrf.mxu2  ;;  %v1961_v3 = vpop.f32.mrf.mxu3 }
 0x1a0   : > { %v1937_v30 = vadd.f32 %v1936_v58, %v1912_v52  ;;  %v6993_v52 = vor.u32 %v9210_v33, %v6990_v31  ;;  %v7477_v58 = vor.u32 %v9015_v35, %v7476_v6  ;;  %v7220_v31 = vld [vmem:[#allocation5 + $0xe0] sm:$0xf]  ;;  %v7349_v33 = vor.u32 %v8983_v59, %v7348_v28  ;;  %v8947_v35 = vld [vmem:[#allocation5 + $0xcc] sm:$0xf0] }
 0x1a1   : > { %v7221_v40 = vor.u32 %v8951_v9, %v7220_v31  ;;  %v7204_v6 = vld [vmem:[#allocation5 + $0xc0] sm:$0xf]  ;;  %v9007_v9 = vld [vmem:[#allocation5 + $0x2ac] sm:$0xf0] }
 0x1a2   : > { %v10295_v10 = vadd.f32 %v1961_v3, %v1937_v30  ;;  %2251 = vmatpush.bf16.msra.mxu3 %v6993_v52  ;;  %v9047_v3 = vld [vmem:[#allocation5 + $0x3ec] sm:$0xf0]  ;;  %3039 = vmatpush.bf16.msrb.mxu2 %v7477_v58  ;;  %v7588_v52 = vld [vmem:[#allocation5 + $0x3c0] sm:$0xf]  ;;  %v7205_v58 = vor.u32 %v8947_v35, %v7204_v6 }
 0x1a3   : > { %v7605_v24 = vor.u32 %v9047_v3, %v7604_v55  ;;  %2989 = vmatpush.bf16.msrb.mxu0 %v7221_v40  ;;  %3014 = vmatpush.bf16.msrb.mxu1 %v7349_v33  ;;  %v7332_v55 = vld [vmem:[#allocation5 + $0x1c0] sm:$0xf]  ;;  %v8979_v3 = vld [vmem:[#allocation5 + $0x1cc] sm:$0xf0] }
 0x1a4   : > { %v7444_v31 = vld [vmem:[#allocation5 + $0x2a0] sm:$0xf]  ;;  %v9039_v59 = vld [vmem:[#allocation5 + $0x3ac] sm:$0xf0] }
 0x1a5   : > { %2085 = vmatmul.bf16.gmra.mxu0 %v10177_v32  ;;  %2110 = vmatmul.bf16.gmra.mxu1 %v10179_v43  ;;  %v7572_v28 = vld [vmem:[#allocation5 + $0x3a0] sm:$0xf]  ;;  %v7445_v40 = vor.u32 %v9007_v9, %v7444_v31  ;;  %v8943_v35 = vld [vmem:[#allocation5 + $0xac] sm:$0xf0] }
 0x1a6   : > { %3064 = vmatpush.bf16.msrb.mxu3 %v7605_v24  ;;  %3040 = vmatpush.bf16.msrb.mxu2 %v7461_v37  ;;  %v7333_v24 = vor.u32 %v8979_v3, %v7332_v55  ;;  %v7573_v45 = vor.u32 %v9039_v59, %v7572_v28  ;;  %v7188_v6 = vld [vmem:[#allocation5 + $0xa0] sm:$0xf]  ;;  %v9035_v59 = vld [vmem:[#allocation5 + $0x38c] sm:$0xf0] }
 0x1a7   : > { %v1938_v34 = vpop.f32.mrf.mxu2  ;;  %v1963_v11 = vpop.f32.mrf.mxu3  ;;  %2990 = vmatpush.bf16.msrb.mxu0 %v7205_v58  ;;  %v7316_v55 = vld [vmem:[#allocation5 + $0x1a0] sm:$0xf]  ;;  %v7189_v3 = vor.u32 %v8943_v35, %v7188_v6 }
 0x1a8   : > { %v9043_v34 = vld [vmem:[#allocation5 + $0x3cc] sm:$0xf0]  ;;  %3015 = vmatpush.bf16.msrb.mxu1 %v7333_v24  ;;  %v7556_v28 = vld [vmem:[#allocation5 + $0x380] sm:$0xf] }
 0x1a9   : > { %v7589_v11 = vor.u32 %v9043_v34, %v7588_v52  ;;  %v8975_v24 = vld [vmem:[#allocation5 + $0x1ac] sm:$0xf0] }
 0x1aa   : > { %3041 = vmatpush.bf16.msrb.mxu2 %v7445_v40  ;;  %v7317_v31 = vor.u32 %v8975_v24, %v7316_v55 }
 0x1ab   : > { %3065 = vmatpush.bf16.msrb.mxu3 %v7589_v11  ;;  %2991 = vmatpush.bf16.msrb.mxu0 %v7189_v3  ;;  %v7540_v3 = vld [vmem:[#allocation5 + $0x360] sm:$0xf] }
 0x1ac   : > { %2135 = vmatmul.bf16.gmra.mxu2 %v10191_v41  ;;  %2160 = vmatmul.bf16.gmra.mxu3 %v10193_v42 }
 0x1ad   : > { %3016 = vmatpush.bf16.msrb.mxu1 %v7317_v31 }
 0x1af   : > { %3066 = vmatpush.bf16.msrb.mxu3 %v7573_v45 }
 0x1b2   : > { %v1890_v30 = vpop.f32.mrf.mxu0  ;;  %v1915_v38 = vpop.f32.mrf.mxu1 }
 0x1b3   : > { %v1916_v13 = vadd.f32 %v1915_v38, %v1890_v30 }
 0x1b5   : > { %2089 = vmatmul.bf16.gmra.mxu0 %v10224_v16  ;;  %2114 = vmatmul.bf16.gmra.mxu1 %v10226_v53 }
 0x1ba   : > { %v1892_v30 = vpop.f32.mrf.mxu0  ;;  %v1917_v38 = vpop.f32.mrf.mxu1 }
 0x1bb   : > { %v7428_v30 = vld [vmem:[#allocation5 + $0x280] sm:$0xf]  ;;  %v9003_v38 = vld [vmem:[#allocation5 + $0x28c] sm:$0xf0] }
 0x1bc   : > { %2139 = vmatmul.bf16.gmra.mxu2 %v10242_v61  ;;  %2164 = vmatmul.bf16.gmra.mxu3 %v10244_v60  ;;  %v7429_v9 = vor.u32 %v9003_v38, %v7428_v30  ;;  %v9031_v30 = vld [vmem:[#allocation5 + $0x36c] sm:$0xf0] }
 0x1bd   : > { %v7541_v38 = vor.u32 %v9031_v30, %v7540_v3  ;;  %v8931_v30 = vld [vmem:[#allocation5 + $0x4c] sm:$0xf0] }
 0x1be   : > { %3042 = vmatpush.bf16.msrb.mxu2 %v7429_v9 }
 0x1bf   : > { %v1940_v0 = vpop.f32.mrf.mxu2  ;;  %v1965_v33 = vpop.f32.mrf.mxu3 }
 0x1c0   : > { %v1941_v37 = vadd.f32 %v1940_v0, %v1916_v13  ;;  %v7557_v13 = vor.u32 %v9035_v59, %v7556_v28  ;;  %v7172_v0 = vld [vmem:[#allocation5 + $0x80] sm:$0xf] }
 0x1c2   : > { %v10305_v52 = vadd.f32 %v1965_v33, %v1941_v37  ;;  %v1978_v34 = vpop.f32.mrf.mxu0  ;;  %v2003_v11 = vpop.f32.mrf.mxu1  ;;  %3067 = vmatpush.bf16.msrb.mxu3 %v7557_v13  ;;  %v8939_v33 = vld [vmem:[#allocation5 + $0x8c] sm:$0xf0]  ;;  %v7300_v37 = vld [vmem:[#allocation5 + $0x180] sm:$0xf] }
 0x1c3   : > { %v2004_v58 = vadd.f32 %v2003_v11, %v1978_v34  ;;  %v7173_v34 = vor.u32 %v8939_v33, %v7172_v0  ;;  %v8971_v11 = vld [vmem:[#allocation5 + $0x18c] sm:$0xf0] }
 0x1c4   : > { %v7301_v6 = vor.u32 %v8971_v11, %v7300_v37  ;;  %v8935_v0 = vld [vmem:[#allocation5 + $0x6c] sm:$0xf0] }
 0x1c5   : > { %2177 = vmatmul.bf16.vlgmr.msra.gmra.mxu0 %v10081_v47  ;;  %2202 = vmatmul.bf16.vlgmr.msra.gmra.mxu1 %v10083_v48  ;;  %v7412_v47 = vld [vmem:[#allocation5 + $0x260] sm:$0xf]  ;;  %v8999_v48 = vld [vmem:[#allocation5 + $0x26c] sm:$0xf0] }
 0x1c6   : > { %2992 = vmatpush.bf16.msrb.mxu0 %v7173_v34  ;;  %3017 = vmatpush.bf16.msrb.mxu1 %v7301_v6  ;;  %v7413_v24 = vor.u32 %v8999_v48, %v7412_v47  ;;  %v8967_v37 = vld [vmem:[#allocation5 + $0x16c] sm:$0xf0]  ;;  %v7396_v34 = vld [vmem:[#allocation5 + $0x240] sm:$0xf] }
 0x1c7   : > { %v1942_v40 = vpop.f32.mrf.mxu2  ;;  %v1967_v45 = vpop.f32.mrf.mxu3  ;;  %3068 = vmatpush.bf16.msrb.mxu3 %v7541_v38  ;;  %v8995_v11 = vld [vmem:[#allocation5 + $0x24c] sm:$0xf0]  ;;  %v7268_v38 = vld [vmem:[#allocation5 + $0x140] sm:$0xf] }
 0x1c8   : > { %3043 = vmatpush.bf16.msrb.mxu2 %v7413_v24  ;;  %v7156_v45 = vld [vmem:[#allocation5 + $0x60] sm:$0xf]  ;;  %v9027_v47 = vld [vmem:[#allocation5 + $0x34c] sm:$0xf0] }
 0x1c9   : > { %v7140_v24 = vld [vmem:[#allocation5 + $0x40] sm:$0xf] }
 0x1ca   : > { %v1980_v35 = vpop.f32.mrf.mxu0  ;;  %v2005_v55 = vpop.f32.mrf.mxu1 }
 0x1cb   : > { %v7397_v35 = vor.u32 %v8995_v11, %v7396_v34  ;;  %v7524_v55 = vld [vmem:[#allocation5 + $0x340] sm:$0xf] }
 0x1cc   : > { %2227 = vmatmul.bf16.vlgmr.msra.gmra.mxu2 %v10095_v1  ;;  %2252 = vmatmul.bf16.vlgmr.msra.gmra.mxu3 %v10097_v2  ;;  %v7284_v1 = vld [vmem:[#allocation5 + $0x160] sm:$0xf]  ;;  %v7157_v2 = vor.u32 %v8935_v0, %v7156_v45 }
 0x1cd   : > { %v7285_v6 = vor.u32 %v8967_v37, %v7284_v1  ;;  %3044 = vmatpush.bf16.msrb.mxu2 %v7397_v35  ;;  %v7508_v45 = vld [vmem:[#allocation5 + $0x320] sm:$0xf]  ;;  %v9023_v1 = vld [vmem:[#allocation5 + $0x32c] sm:$0xf0] }
 0x1ce   : > { %2993 = vmatpush.bf16.msrb.mxu0 %v7157_v2  ;;  %v7124_v2 = vld [vmem:[#allocation5 + $0x20] sm:$0xf]  ;;  %v8927_v37 = vld [vmem:[#allocation5 + $0x2c] sm:$0xf0]  ;;  %v7509_v34 = vor.u32 %v9023_v1, %v7508_v45 }
 0x1cf   : > { %v2028_v31 = vpop.f32.mrf.mxu2  ;;  %v2053_v9 = vpop.f32.mrf.mxu3  ;;  %3018 = vmatpush.bf16.msrb.mxu1 %v7285_v6  ;;  %v7125_v11 = vor.u32 %v8927_v37, %v7124_v2  ;;  %v7252_v6 = vld [vmem:[#allocation5 + $0x120] sm:$0xf]  ;;  %v8959_v35 = vld [vmem:[#allocation5 + $0x12c] sm:$0xf0] }
 0x1d0   : > { %v2029_v28 = vadd.f32 %v2028_v31, %v2004_v58  ;;  %v7525_v58 = vor.u32 %v9027_v47, %v7524_v55  ;;  %v7141_v31 = vor.u32 %v8931_v30, %v7140_v24  ;;  %v8955_v30 = vld [vmem:[#allocation5 + $0x10c] sm:$0xf0] }
 0x1d2   : > { %v10311_v59 = vadd.f32 %v2053_v9, %v2029_v28  ;;  %v1982_v13 = vpop.f32.mrf.mxu0  ;;  %v2007_v40 = vpop.f32.mrf.mxu1  ;;  %3069 = vmatpush.bf16.msrb.mxu3 %v7525_v58  ;;  %v8963_v9 = vld [vmem:[#allocation5 + $0x14c] sm:$0xf0]  ;;  %2994 = vmatpush.bf16.msrb.mxu0 %v7141_v31  ;;  %v7253_v58 = vor.u32 %v8959_v35, %v7252_v6  ;;  %v7478_v6 = vld [vmem:[#allocation5 + $0x2f0] sm:$0xf0]  ;;  %v9045_v35 = vld [vmem:[#allocation5 + $0x3e4] sm:$0xf] }
 0x1d3   : > { %v2008_v33 = vadd.f32 %v2007_v40, %v1982_v13  ;;  %v7269_v28 = vor.u32 %v8963_v9, %v7268_v38 }
 0x1d5   : > { %2181 = vmatmul.bf16.gmra.mxu0 %v10126_v17  ;;  %2206 = vmatmul.bf16.gmra.mxu1 %v10128_v21  ;;  %v7380_v17 = vld [vmem:[#allocation5 + $0x220] sm:$0xf]  ;;  %v8991_v21 = vld [vmem:[#allocation5 + $0x22c] sm:$0xf0] }
 0x1d6   : > { %3019 = vmatpush.bf16.msrb.mxu1 %v7269_v28  ;;  %v7381_v0 = vor.u32 %v8991_v21, %v7380_v17  ;;  %3070 = vmatpush.bf16.msrb.mxu3 %v7509_v34  ;;  %v8987_v17 = vld [vmem:[#allocation5 + $0x20c] sm:$0xf0]  ;;  %v7492_v21 = vld [vmem:[#allocation5 + $0x300] sm:$0xf] }
 0x1d7   : > { %v2030_v48 = vpop.f32.mrf.mxu2  ;;  %v2055_v3 = vpop.f32.mrf.mxu3  ;;  %2995 = vmatpush.bf16.msrb.mxu0 %v7125_v11  ;;  %v9013_v11 = vld [vmem:[#allocation5 + $0x2e4] sm:$0xf] }
 0x1d8   : > { %3045 = vmatpush.bf16.msrb.mxu2 %v7381_v0  ;;  %v7236_v3 = vld [vmem:[#allocation5 + $0x100] sm:$0xf] }
 0x1d9   : > { %v7237_v28 = vor.u32 %v8955_v30, %v7236_v3  ;;  %v7222_v30 = vld [vmem:[#allocation5 + $0xf0] sm:$0xf0] }
 0x1da   : > { %v1984_v13 = vpop.f32.mrf.mxu0  ;;  %v2009_v40 = vpop.f32.mrf.mxu1  ;;  %3020 = vmatpush.bf16.msrb.mxu1 %v7253_v58 }
 0x1db   : > { %v7364_v40 = vld [vmem:[#allocation5 + $0x200] sm:$0xf] }
 0x1dc   : > { %2231 = vmatmul.bf16.gmra.mxu2 %v10144_v62  ;;  %2256 = vmatmul.bf16.gmra.mxu3 %v10146_v63  ;;  %v7108_v62 = vld [vmem:[#allocation5] sm:$0xf]  ;;  %v8923_v63 = vld [vmem:[#allocation5 + $0xc] sm:$0xf0]  ;;  %v7365_v45 = vor.u32 %v8987_v17, %v7364_v40  ;;  %v7462_v40 = vld [vmem:[#allocation5 + $0x2d0] sm:$0xf0] }
 0x1dd   : > { %v7109_v24 = vor.u32 %v8923_v63, %v7108_v62 }
 0x1de   : > { %3021 = vmatpush.bf16.msrb.mxu1 %v7237_v28  ;;  %3046 = vmatpush.bf16.msrb.mxu2 %v7365_v45  ;;  %v9009_v28 = vld [vmem:[#allocation5 + $0x2c4] sm:$0xf] }
 0x1df   : > { %v2032_v55 = vpop.f32.mrf.mxu2  ;;  %v2057_v47 = vpop.f32.mrf.mxu3  ;;  %2996 = vmatpush.bf16.msrb.mxu0 %v7109_v24  ;;  %v8949_v24 = vld [vmem:[#allocation5 + $0xe4] sm:$0xf] }
 0x1e0   : > { %v2033_v48 = vadd.f32 %v2032_v55, %v2008_v33  ;;  %v9019_v33 = vld [vmem:[#allocation5 + $0x30c] sm:$0xf0]  ;;  %v7481_v55 = vor.u32 %v9013_v11, %v7478_v6  ;;  %v9041_v45 = vld [vmem:[#allocation5 + $0x3c4] sm:$0xf]  ;;  %v7334_v6 = vld [vmem:[#allocation5 + $0x1d0] sm:$0xf0] }
 0x1e1   : > { %v7493_v0 = vor.u32 %v9019_v33, %v7492_v21  ;;  %v7465_v21 = vor.u32 %v9009_v28, %v7462_v40  ;;  %v7590_v33 = vld [vmem:[#allocation5 + $0x3d0] sm:$0xf0] }
 0x1e2   : > { %v10317_v38 = vadd.f32 %v2057_v47, %v2033_v48  ;;  %v1986_v31 = vpop.f32.mrf.mxu0  ;;  %v2011_v9 = vpop.f32.mrf.mxu1  ;;  %v7606_v47 = vld [vmem:[#allocation5 + $0x3f0] sm:$0xf0]  ;;  %3139 = vmatpush.bf16.msra.mxu2 %v7481_v55 }
 0x1e3   : > { %v2012_v13 = vadd.f32 %v2011_v9, %v1986_v31  ;;  %3071 = vmatpush.bf16.msrb.mxu3 %v7493_v0  ;;  %v7350_v9 = vld [vmem:[#allocation5 + $0x1f0] sm:$0xf0] }
 0x1e5   : > { %2185 = vmatmul.bf16.gmra.mxu0 %v10177_v32  ;;  %2210 = vmatmul.bf16.gmra.mxu1 %v10179_v43  ;;  %v7609_v32 = vor.u32 %v9045_v35, %v7606_v47 }
 0x1e6   : > { %3140 = vmatpush.bf16.msra.mxu2 %v7465_v21  ;;  %v7190_v21 = vld [vmem:[#allocation5 + $0xb0] sm:$0xf0] }
 0x1e7   : > { %v2034_v1 = vpop.f32.mrf.mxu2  ;;  %v2059_v2 = vpop.f32.mrf.mxu3  ;;  %3164 = vmatpush.bf16.msra.mxu3 %v7609_v32  ;;  %v9037_v32 = vld [vmem:[#allocation5 + $0x3a4] sm:$0xf] }
 0x1e8   : > { %v8945_v2 = vld [vmem:[#allocation5 + $0xc4] sm:$0xf] }
 0x1ea   : > { %v1988_v37 = vpop.f32.mrf.mxu0  ;;  %v2013_v34 = vpop.f32.mrf.mxu1 }
 0x1eb   : > { %v7206_v37 = vld [vmem:[#allocation5 + $0xd0] sm:$0xf0]  ;;  %v8977_v34 = vld [vmem:[#allocation5 + $0x1c4] sm:$0xf] }
 0x1ec   : > { %2235 = vmatmul.bf16.gmra.mxu2 %v10191_v41  ;;  %2260 = vmatmul.bf16.gmra.mxu3 %v10193_v42  ;;  %v8981_v41 = vld [vmem:[#allocation5 + $0x1e4] sm:$0xf]  ;;  %v7225_v42 = vor.u32 %v8949_v24, %v7222_v30  ;;  %v7209_v11 = vor.u32 %v8945_v2, %v7206_v37  ;;  %v7337_v35 = vor.u32 %v8977_v34, %v7334_v6  ;;  %v2285_v24 = vunpack.c.l.b16 %v10052_v54  ;;  %v7430_v2 = vld [vmem:[#allocation5 + $0x290] sm:$0xf0] }
 0x1ed   : > { %v7353_v17 = vor.u32 %v8981_v41, %v7350_v9  ;;  %v2286_v30 = vunpack.c.h.b16 %v10052_v54  ;;  %v2289_v41 = vunpack.c.l.b16 %v10061_v8  ;;  %v9033_v34 = vld [vmem:[#allocation5 + $0x384] sm:$0xf] }
 0x1ee   : > { %3089 = vmatpush.bf16.msra.mxu0 %v7225_v42 }
 0x1ef   : > { %v2036_v58 = vpop.f32.mrf.mxu2  ;;  %v2061_v43 = vpop.f32.mrf.mxu3  ;;  %3114 = vmatpush.bf16.msra.mxu1 %v7353_v17 }
 0x1f0   : > { %v2037_v48 = vadd.f32 %v2036_v58, %v2012_v13  ;;  %v7593_v13 = vor.u32 %v9041_v45, %v7590_v33  ;;  %v8973_v45 = vld [vmem:[#allocation5 + $0x1a4] sm:$0xf]  ;;  %v10337_v33 = vpack.c.b16 %v2289_v41, %v2285_v24 }
 0x1f2   : > { %v10323_v62 = vadd.f32 %v2061_v43, %v2037_v48  ;;  %v1990_v63 = vpop.f32.mrf.mxu0  ;;  %v2015_v3 = vpop.f32.mrf.mxu1  ;;  %3165 = vmatpush.bf16.msra.mxu3 %v7593_v13  ;;  %3090 = vmatpush.bf16.msra.mxu0 %v7209_v11  ;;  %v7574_v43 = vld [vmem:[#allocation5 + $0x3b0] sm:$0xf0]  ;;  %v667_v48 = vmax.f32 %v10068_v12, 0.0 }
 0x1f3   : > { %v2016_v31 = vadd.f32 %v2015_v3, %v1990_v63  ;;  %3115 = vmatpush.bf16.msra.mxu1 %v7337_v35  ;;  %v668_v63 = vmax.f32 %v10071_v15, 0.0  ;;  %v7577_v3 = vor.u32 %v9037_v32, %v7574_v43  ;;  %v8941_v15 = vld [vmem:[#allocation5 + $0xa4] sm:$0xf]  ;;  %v7558_v11 = vld [vmem:[#allocation5 + $0x390] sm:$0xf0]  ;;  %v2287_v43 = vunpack.c.l.b16 %v10059_v7 }
 0x1f4   : > { %v7561_v6 = vor.u32 %v9033_v34, %v7558_v11  ;;  %v7174_v32 = vld [vmem:[#allocation5 + $0x90] sm:$0xf0] }
 0x1f5   : > { %2189 = vmatmul.bf16.gmra.mxu0 %v10224_v16  ;;  %2214 = vmatmul.bf16.gmra.mxu1 %v10226_v53  ;;  %v9005_v16 = vld [vmem:[#allocation5 + $0x2a4] sm:$0xf]  ;;  %v7446_v53 = vld [vmem:[#allocation5 + $0x2b0] sm:$0xf0]  ;;  %v736_v28 = vpack.c.bf16 %v668_v63, %v667_v48  ;;  %v2288_v48 = vunpack.c.h.b16 %v10059_v7 }
 0x1f6   : > { %v7449_v58 = vor.u32 %v9005_v16, %v7446_v53  ;;  %3166 = vmatpush.bf16.msra.mxu3 %v7577_v3  ;;  %v8937_v53 = vld [vmem:[#allocation5 + $0x84] sm:$0xf]  ;;  %v7302_v3 = vld [vmem:[#allocation5 + $0x190] sm:$0xf0] }
 0x1f7   : > { %v2038_v0 = vpop.f32.mrf.mxu2  ;;  %v2063_v1 = vpop.f32.mrf.mxu3  ;;  %v2291_v35 = vunpack.c.l.b16 %v736_v28  ;;  %v7177_v63 = vor.u32 %v8937_v53, %v7174_v32  ;;  %v7542_v7 = vld [vmem:[#allocation5 + $0x370] sm:$0xf0]  ;;  %v8993_v32 = vld [vmem:[#allocation5 + $0x244] sm:$0xf] }
 0x1f8   : > { %3141 = vmatpush.bf16.msra.mxu2 %v7449_v58  ;;  %v7193_v0 = vor.u32 %v8941_v15, %v7190_v21  ;;  %v9001_v1 = vld [vmem:[#allocation5 + $0x284] sm:$0xf]  ;;  %v684_v15 = vmax.f32 %v10108_v25, 0.0 }
 0x1f9   : > { %v8969_v58 = vld [vmem:[#allocation5 + $0x184] sm:$0xf] }
 0x1fa   : > { %v1992_v55 = vpop.f32.mrf.mxu0  ;;  %v2017_v47 = vpop.f32.mrf.mxu1  ;;  %3091 = vmatpush.bf16.msra.mxu0 %v7193_v0  ;;  %3167 = vmatpush.bf16.msra.mxu3 %v7561_v6  ;;  %v7305_v24 = vor.u32 %v8969_v58, %v7302_v3  ;;  %v2294_v0 = vunpack.c.h.b16 %v10090_v57  ;;  %v8933_v25 = vld [vmem:[#allocation5 + $0x64] sm:$0xf]  ;;  %v7398_v58 = vld [vmem:[#allocation5 + $0x250] sm:$0xf0] }
 0x1fb   : > { %v2292_v55 = vunpack.c.h.b16 %v736_v28  ;;  %v9029_v28 = vld [vmem:[#allocation5 + $0x364] sm:$0xf] }
 0x1fc   : > { %2239 = vmatmul.bf16.gmra.mxu2 %v10242_v61  ;;  %2264 = vmatmul.bf16.gmra.mxu3 %v10244_v60  ;;  %v2290_v61 = vunpack.c.h.b16 %v10061_v8  ;;  %v7318_v8 = vld [vmem:[#allocation5 + $0x1b0] sm:$0xf0]  ;;  %v7545_v21 = vor.u32 %v9029_v28, %v7542_v7  ;;  %v2295_v7 = vunpack.c.l.b16 %v10101_v18 }
 0x1fd   : > { %v7321_v37 = vor.u32 %v8973_v45, %v7318_v8  ;;  %v10347_v41 = vpack.c.b16 %v2292_v55, %v2288_v48  ;;  %v2293_v45 = vunpack.c.l.b16 %v10090_v57  ;;  %v2297_v8 = vunpack.c.l.b16 %v10103_v20  ;;  %v8965_v55 = vld [vmem:[#allocation5 + $0x164] sm:$0xf]  ;;  %v7142_v28 = vld [vmem:[#allocation5 + $0x50] sm:$0xf0] }
 0x1fe   : > { %v10339_v54 = vpack.c.b16 %v2290_v61, %v2286_v30  ;;  %v10345_v30 = vpack.c.b16 %v2291_v35, %v2287_v43  ;;  %3092 = vmatpush.bf16.msra.mxu0 %v7177_v63  ;;  %3168 = vmatpush.bf16.msra.mxu3 %v7545_v21  ;;  %v7158_v35 = vld [vmem:[#allocation5 + $0x70] sm:$0xf0]  ;;  %v9025_v48 = vld [vmem:[#allocation5 + $0x344] sm:$0xf] }
 0x1ff   : > { %v2040_v42 = vpop.f32.mrf.mxu2  ;;  %v2065_v60 = vpop.f32.mrf.mxu3  ;;  %3116 = vmatpush.bf16.msra.mxu1 %v7321_v37  ;;  %v7161_v53 = vor.u32 %v8933_v25, %v7158_v35  ;;  %v7526_v63 = vld [vmem:[#allocation5 + $0x350] sm:$0xf0]  ;;  %v8925_v25 = vld [vmem:[#allocation5 + $0x24] sm:$0xf] }
 0x200   : > { %v2041_v9 = vadd.f32 %v2040_v42, %v2016_v31  ;;  %v7433_v31 = vor.u32 %v9001_v1, %v7430_v2  ;;  %v2298_v1 = vunpack.c.h.b16 %v10103_v20  ;;  %v7286_v20 = vld [vmem:[#allocation5 + $0x170] sm:$0xf0]  ;;  %v7529_v3 = vor.u32 %v9025_v48, %v7526_v63 }
 0x201   : > { %v7289_v43 = vor.u32 %v8965_v55, %v7286_v20  ;;  %v7270_v21 = vld [vmem:[#allocation5 + $0x150] sm:$0xf0]  ;;  %v699_v55 = vmax.f32 %v10155_v44, 0.0  ;;  %v2305_v48 = vunpack.c.l.b16 %v10152_v27  ;;  %v2306_v63 = vunpack.c.h.b16 %v10152_v27  ;;  %v8921_v44 = vld [vmem:[#allocation5 + $0x4] sm:$0xf] }
 0x202   : > { %v10335_v40 = vadd.f32 %v2065_v60, %v2041_v9  ;;  %v2078_v12 = vpop.f32.mrf.mxu0  ;;  %v2103_v17 = vpop.f32.mrf.mxu1  ;;  %3142 = vmatpush.bf16.msra.mxu2 %v7433_v31  ;;  %v8997_v60 = vld [vmem:[#allocation5 + $0x264] sm:$0xf]  ;;  %v7414_v9 = vld [vmem:[#allocation5 + $0x270] sm:$0xf0]  ;;  %v10361_v57 = vpack.c.b16 %v2298_v1, %v2294_v0  ;;  %3093 = vmatpush.bf16.msra.mxu0 %v7161_v53  ;;  %v700_v53 = vmax.f32 %v10157_v50, 0.0 }
 0x203   : > { %v2104_v13 = vadd.f32 %v2103_v17, %v2078_v12  ;;  %3117 = vmatpush.bf16.msra.mxu1 %v7305_v24  ;;  %v7417_v12 = vor.u32 %v8997_v60, %v7414_v9  ;;  %v683_v17 = vmax.f32 %v10106_v23, 0.0  ;;  %3169 = vmatpush.bf16.msra.mxu3 %v7529_v3  ;;  %v8929_v9 = vld [vmem:[#allocation5 + $0x44] sm:$0xf]  ;;  %v7126_v35 = vld [vmem:[#allocation5 + $0x30] sm:$0xf0] }
 0x204   : > { %v8953_v50 = vld [vmem:[#allocation5 + $0x104] sm:$0xf] }
 0x205   : > { %2997 = vmatmul.bf16.vlgmr.msrb.gmra.mxu0 %v10337_v33  ;;  %3022 = vmatmul.bf16.vlgmr.msrb.gmra.mxu1 %v10339_v54  ;;  %v744_v34 = vpack.c.bf16 %v684_v15, %v683_v17  ;;  %v2296_v17 = vunpack.c.h.b16 %v10101_v18  ;;  %v7145_v15 = vor.u32 %v8929_v9, %v7142_v28  ;;  %v2301_v18 = vunpack.c.l.b16 %v10136_v46  ;;  %v7238_v28 = vld [vmem:[#allocation5 + $0x110] sm:$0xf0] }
 0x206   : > { %3143 = vmatpush.bf16.msra.mxu2 %v7417_v12  ;;  %v8961_v12 = vld [vmem:[#allocation5 + $0x144] sm:$0xf] }
 0x207   : > { %v2042_v47 = vpop.f32.mrf.mxu2  ;;  %v2067_v16 = vpop.f32.mrf.mxu3  ;;  %v2299_v24 = vunpack.c.l.b16 %v744_v34  ;;  %3118 = vmatpush.bf16.msra.mxu1 %v7289_v43  ;;  %3094 = vmatpush.bf16.msra.mxu0 %v7145_v15  ;;  %v7254_v43 = vld [vmem:[#allocation5 + $0x130] sm:$0xf0]  ;;  %v7241_v15 = vor.u32 %v8953_v50, %v7238_v28  ;;  %v10381_v27 = vpack.c.b16 %v2305_v48, %v2301_v18  ;;  %v7612_v48 = vld [vmem:[#allocation5 + $0x3e8] sm:$0xf]  ;;  %v2314_v50 = vunpack.c.h.b16 %v10199_v51 }
 0x208   : > { %v10359_v47 = vpack.c.b16 %v2297_v8, %v2293_v45  ;;  %v7273_v45 = vor.u32 %v8961_v12, %v7270_v21  ;;  %v752_v12 = vpack.c.bf16 %v700_v53, %v699_v55  ;;  %v2304_v55 = vunpack.c.h.b16 %v10150_v26 }
 0x209   : > { %v10367_v0 = vpack.c.b16 %v2299_v24, %v2295_v7 }
 0x20a   : > { %v2080_v61 = vpop.f32.mrf.mxu0  ;;  %v2105_v42 = vpop.f32.mrf.mxu1 }
 0x20b   : > { %v2300_v61 = vunpack.c.h.b16 %v744_v34  ;;  %3119 = vmatpush.bf16.msra.mxu1 %v7273_v45  ;;  %v9021_v34 = vld [vmem:[#allocation5 + $0x324] sm:$0xf] }
 0x20c   : > { %3047 = vmatmul.bf16.vlgmr.msrb.gmra.mxu2 %v10345_v30  ;;  %3072 = vmatmul.bf16.vlgmr.msrb.gmra.mxu3 %v10347_v41 }
 0x20d   : > { %v10369_v8 = vpack.c.b16 %v2300_v61, %v2296_v17 }
 0x20f   : > { %v2128_v2 = vpop.f32.mrf.mxu2  ;;  %v2153_v37 = vpop.f32.mrf.mxu3 }
 0x210   : > { %v2129_v31 = vadd.f32 %v2128_v2, %v2104_v13  ;;  %v7401_v13 = vor.u32 %v8993_v32, %v7398_v58  ;;  %v7129_v32 = vor.u32 %v8925_v25, %v7126_v35  ;;  %v8957_v58 = vld [vmem:[#allocation5 + $0x124] sm:$0xf]  ;;  %v2303_v35 = vunpack.c.l.b16 %v10150_v26 }
 0x211   : > { %v7257_v61 = vor.u32 %v8957_v58, %v7254_v43  ;;  %v7484_v43 = vld [vmem:[#allocation5 + $0x2e8] sm:$0xf] }
 0x212   : > { %v10357_v11 = vadd.f32 %v2153_v37, %v2129_v31  ;;  %v2082_v23 = vpop.f32.mrf.mxu0  ;;  %v2107_v6 = vpop.f32.mrf.mxu1  ;;  %3144 = vmatpush.bf16.msra.mxu2 %v7401_v13  ;;  %v8989_v37 = vld [vmem:[#allocation5 + $0x224] sm:$0xf]  ;;  %v7382_v31 = vld [vmem:[#allocation5 + $0x230] sm:$0xf0]  ;;  %v2302_v13 = vunpack.c.h.b16 %v10136_v46  ;;  %3095 = vmatpush.bf16.msra.mxu0 %v7129_v32 }
 0x213   : > { %v2108_v16 = vadd.f32 %v2107_v6, %v2082_v23  ;;  %v7385_v23 = vor.u32 %v8989_v37, %v7382_v31  ;;  %v7510_v6 = vld [vmem:[#allocation5 + $0x330] sm:$0xf0]  ;;  %3120 = vmatpush.bf16.msra.mxu1 %v7257_v61  ;;  %v716_v61 = vmax.f32 %v10204_v22, 0.0  ;;  %v7228_v22 = vld [vmem:[#allocation5 + $0xe8] sm:$0xf] }
 0x214   : > { %v7513_v20 = vor.u32 %v9021_v34, %v7510_v6  ;;  %v10383_v21 = vpack.c.b16 %v2306_v63, %v2302_v13  ;;  %v7494_v31 = vld [vmem:[#allocation5 + $0x310] sm:$0xf0]  ;;  %v2308_v6 = vunpack.c.h.b16 %v752_v12  ;;  %v9016_v13 = vld [vmem:[#allocation5 + $0x2f4] sm:$0xf0] }
 0x215   : > { %3001 = vmatmul.bf16.gmra.mxu0 %v10359_v47  ;;  %3026 = vmatmul.bf16.gmra.mxu1 %v10361_v57  ;;  %v7485_v63 = vor.u32 %v9016_v13, %v7484_v43  ;;  %v7212_v13 = vld [vmem:[#allocation5 + $0xc8] sm:$0xf] }
 0x216   : > { %3145 = vmatpush.bf16.msra.mxu2 %v7385_v23  ;;  %3170 = vmatpush.bf16.msra.mxu3 %v7513_v20  ;;  %v2307_v23 = vunpack.c.l.b16 %v752_v12  ;;  %v10391_v20 = vpack.c.b16 %v2308_v6, %v2304_v55 }
 0x217   : > { %v2130_v42 = vpop.f32.mrf.mxu2  ;;  %v2155_v60 = vpop.f32.mrf.mxu3  ;;  %3121 = vmatpush.bf16.msra.mxu1 %v7241_v15 }
 0x218   : > { %v7110_v60 = vld [vmem:[#allocation5 + $0x10] sm:$0xf0]  ;;  %v10389_v53 = vpack.c.b16 %v2307_v23, %v2303_v35  ;;  %v9012_v23 = vld [vmem:[#allocation5 + $0x2d4] sm:$0xf0] }
 0x219   : > { %v7113_v9 = vor.u32 %v8921_v44, %v7110_v60  ;;  %v2310_v44 = vunpack.c.h.b16 %v10187_v4  ;;  %v2313_v60 = vunpack.c.l.b16 %v10199_v51  ;;  %v8984_v51 = vld [vmem:[#allocation5 + $0x1f4] sm:$0xf0] }
 0x21a   : > { %v2084_v1 = vpop.f32.mrf.mxu0  ;;  %v2109_v2 = vpop.f32.mrf.mxu1 }
 0x21b   : > { %v7366_v1 = vld [vmem:[#allocation5 + $0x210] sm:$0xf0]  ;;  %v9017_v2 = vld [vmem:[#allocation5 + $0x304] sm:$0xf]  ;;  %3096 = vmatpush.bf16.msra.mxu0 %v7113_v9 }
 0x21c   : > { %3051 = vmatmul.bf16.gmra.mxu2 %v10367_v0  ;;  %3076 = vmatmul.bf16.gmra.mxu3 %v10369_v8  ;;  %v7497_v34 = vor.u32 %v9017_v2, %v7494_v31 }
 0x21e   : > { %3171 = vmatpush.bf16.msra.mxu3 %v7497_v34  ;;  %v7468_v34 = vld [vmem:[#allocation5 + $0x2c8] sm:$0xf] }
 0x21f   : > { %v2132_v3 = vpop.f32.mrf.mxu2  ;;  %v2157_v24 = vpop.f32.mrf.mxu3 }
 0x220   : > { %v2133_v42 = vadd.f32 %v2132_v3, %v2108_v16  ;;  %v8985_v16 = vld [vmem:[#allocation5 + $0x204] sm:$0xf]  ;;  %v9048_v3 = vld [vmem:[#allocation5 + $0x3f4] sm:$0xf0] }
 0x221   : > { %v7369_v37 = vor.u32 %v8985_v16, %v7366_v1  ;;  %v7613_v26 = vor.u32 %v9048_v3, %v7612_v48  ;;  %v8952_v16 = vld [vmem:[#allocation5 + $0xf4] sm:$0xf0]  ;;  %v7356_v1 = vld [vmem:[#allocation5 + $0x1e8] sm:$0xf]  ;;  %v2311_v3 = vunpack.c.l.b16 %v10197_v39 }
 0x222   : > { %v10379_v7 = vadd.f32 %v2157_v24, %v2133_v42  ;;  %v2086_v46 = vpop.f32.mrf.mxu0  ;;  %v2111_v17 = vpop.f32.mrf.mxu1  ;;  %v715_v24 = vmax.f32 %v10202_v49, 0.0  ;;  %v2309_v42 = vunpack.c.l.b16 %v10187_v4  ;;  %v10405_v4 = vpack.c.b16 %v2314_v50, %v2310_v44  ;;  %v8948_v48 = vld [vmem:[#allocation5 + $0xd4] sm:$0xf0] }
 0x223   : > { %v2112_v45 = vadd.f32 %v2111_v17, %v2086_v46  ;;  %3146 = vmatpush.bf16.msra.mxu2 %v7369_v37  ;;  %3264 = vmatpush.bf16.msrb.mxu3 %v7613_v26  ;;  %v7229_v31 = vor.u32 %v8952_v16, %v7228_v22  ;;  %v7357_v6 = vor.u32 %v8984_v51, %v7356_v1  ;;  %v8980_v26 = vld [vmem:[#allocation5 + $0x1d4] sm:$0xf0] }
 0x224   : > { %v760_v46 = vpack.c.bf16 %v716_v61, %v715_v24  ;;  %v10403_v2 = vpack.c.b16 %v2313_v60, %v2309_v42  ;;  %v2312_v24 = vunpack.c.h.b16 %v10197_v39  ;;  %v7213_v61 = vor.u32 %v8948_v48, %v7212_v13  ;;  %v9040_v39 = vld [vmem:[#allocation5 + $0x3b4] sm:$0xf0]  ;;  %v7564_v13 = vld [vmem:[#allocation5 + $0x388] sm:$0xf] }
 0x225   : > { %3005 = vmatmul.bf16.gmra.mxu0 %v10381_v27  ;;  %3030 = vmatmul.bf16.gmra.mxu1 %v10383_v21  ;;  %v9036_v48 = vld [vmem:[#allocation5 + $0x394] sm:$0xf0] }
 0x226   : > { %v2315_v55 = vunpack.c.l.b16 %v760_v46  ;;  %3189 = vmatpush.bf16.msrb.mxu0 %v7229_v31  ;;  %3214 = vmatpush.bf16.msrb.mxu1 %v7357_v6  ;;  %v8944_v6 = vld [vmem:[#allocation5 + $0xb4] sm:$0xf0] }
 0x227   : > { %v2134_v18 = vpop.f32.mrf.mxu2  ;;  %v2159_v25 = vpop.f32.mrf.mxu3  ;;  %3239 = vmatpush.bf16.msrb.mxu2 %v7485_v63  ;;  %v7340_v63 = vld [vmem:[#allocation5 + $0x1c8] sm:$0xf] }
 0x228   : > { %v7596_v18 = vld [vmem:[#allocation5 + $0x3c8] sm:$0xf]  ;;  %v9044_v25 = vld [vmem:[#allocation5 + $0x3d4] sm:$0xf0]  ;;  %v7341_v42 = vor.u32 %v8980_v26, %v7340_v63  ;;  %v10411_v44 = vpack.c.b16 %v2315_v55, %v2311_v3 }
 0x229   : > { %v7597_v35 = vor.u32 %v9044_v25, %v7596_v18  ;;  %v7436_v55 = vld [vmem:[#allocation5 + $0x288] sm:$0xf] }
 0x22a   : > { %v2088_v32 = vpop.f32.mrf.mxu0  ;;  %v2113_v58 = vpop.f32.mrf.mxu1  ;;  %3190 = vmatpush.bf16.msrb.mxu0 %v7213_v61  ;;  %3215 = vmatpush.bf16.msrb.mxu1 %v7341_v42  ;;  %v8940_v61 = vld [vmem:[#allocation5 + $0x94] sm:$0xf0]  ;;  %v7308_v26 = vld [vmem:[#allocation5 + $0x188] sm:$0xf] }
 0x22b   : > { %v2316_v32 = vunpack.c.h.b16 %v760_v46  ;;  %3265 = vmatpush.bf16.msrb.mxu3 %v7597_v35  ;;  %v7580_v46 = vld [vmem:[#allocation5 + $0x3a8] sm:$0xf]  ;;  %v8976_v35 = vld [vmem:[#allocation5 + $0x1b4] sm:$0xf0] }
 0x22c   : > { %3055 = vmatmul.bf16.gmra.mxu2 %v10389_v53  ;;  %3080 = vmatmul.bf16.gmra.mxu3 %v10391_v20 }
 0x22d   : > { %v10413_v60 = vpack.c.b16 %v2316_v32, %v2312_v24  ;;  %v9004_v32 = vld [vmem:[#allocation5 + $0x294] sm:$0xf0]  ;;  %v7180_v24 = vld [vmem:[#allocation5 + $0x88] sm:$0xf] }
 0x22e   : > { %v7181_v42 = vor.u32 %v8940_v61, %v7180_v24  ;;  %v9028_v24 = vld [vmem:[#allocation5 + $0x354] sm:$0xf0] }
 0x22f   : > { %v2136_v9 = vpop.f32.mrf.mxu2  ;;  %v2161_v28 = vpop.f32.mrf.mxu3 }
 0x230   : > { %v2137_v12 = vadd.f32 %v2136_v9, %v2112_v45  ;;  %v7469_v45 = vor.u32 %v9012_v23, %v7468_v34  ;;  %v7196_v23 = vld [vmem:[#allocation5 + $0xa8] sm:$0xf] }
 0x231   : > { %v7197_v25 = vor.u32 %v8944_v6, %v7196_v23 }
 0x232   : > { %v10401_v17 = vadd.f32 %v2161_v28, %v2137_v12  ;;  %v2090_v49 = vpop.f32.mrf.mxu0  ;;  %v2115_v15 = vpop.f32.mrf.mxu1  ;;  %3240 = vmatpush.bf16.msrb.mxu2 %v7469_v45  ;;  %v7452_v28 = vld [vmem:[#allocation5 + $0x2a8] sm:$0xf]  ;;  %v9008_v12 = vld [vmem:[#allocation5 + $0x2b4] sm:$0xf0] }
 0x233   : > { %v2116_v37 = vadd.f32 %v2115_v15, %v2090_v49  ;;  %v7453_v49 = vor.u32 %v9008_v12, %v7452_v28  ;;  %v7581_v15 = vor.u32 %v9040_v39, %v7580_v46  ;;  %v7324_v45 = vld [vmem:[#allocation5 + $0x1a8] sm:$0xf]  ;;  %3191 = vmatpush.bf16.msrb.mxu0 %v7197_v25 }
 0x234   : > { %v7420_v46 = vld [vmem:[#allocation5 + $0x268] sm:$0xf] }
 0x235   : > { %3009 = vmatmul.bf16.gmra.mxu0 %v10403_v2  ;;  %3034 = vmatmul.bf16.gmra.mxu1 %v10405_v4  ;;  %v7548_v39 = vld [vmem:[#allocation5 + $0x368] sm:$0xf] }
 0x236   : > { %3241 = vmatpush.bf16.msrb.mxu2 %v7453_v49  ;;  %3266 = vmatpush.bf16.msrb.mxu3 %v7581_v15  ;;  %v9000_v49 = vld [vmem:[#allocation5 + $0x274] sm:$0xf0]  ;;  %v7164_v25 = vld [vmem:[#allocation5 + $0x68] sm:$0xf] }
 0x237   : > { %v2138_v58 = vpop.f32.mrf.mxu2  ;;  %v2163_v43 = vpop.f32.mrf.mxu3  ;;  %3192 = vmatpush.bf16.msrb.mxu0 %v7181_v42  ;;  %v7421_v15 = vor.u32 %v9000_v49, %v7420_v46  ;;  %v7148_v42 = vld [vmem:[#allocation5 + $0x48] sm:$0xf] }
 0x238   : > { %v7325_v58 = vor.u32 %v8976_v35, %v7324_v45  ;;  %v7437_v43 = vor.u32 %v9004_v32, %v7436_v55  ;;  %v8936_v35 = vld [vmem:[#allocation5 + $0x74] sm:$0xf0]  ;;  %v7292_v55 = vld [vmem:[#allocation5 + $0x168] sm:$0xf] }
 0x23a   : > { %v2092_v50 = vpop.f32.mrf.mxu0  ;;  %v2117_v9 = vpop.f32.mrf.mxu1  ;;  %3216 = vmatpush.bf16.msrb.mxu1 %v7325_v58  ;;  %3242 = vmatpush.bf16.msrb.mxu2 %v7437_v43  ;;  %v7165_v58 = vor.u32 %v8936_v35, %v7164_v25  ;;  %v8968_v43 = vld [vmem:[#allocation5 + $0x174] sm:$0xf0]  ;;  %v7260_v35 = vld [vmem:[#allocation5 + $0x128] sm:$0xf] }
 0x23b   : > { %v8972_v50 = vld [vmem:[#allocation5 + $0x194] sm:$0xf0] }
 0x23c   : > { %3059 = vmatmul.bf16.gmra.mxu2 %v10411_v44  ;;  %3084 = vmatmul.bf16.gmra.mxu3 %v10413_v60  ;;  %v7309_v9 = vor.u32 %v8972_v50, %v7308_v26  ;;  %v8932_v50 = vld [vmem:[#allocation5 + $0x54] sm:$0xf0] }
 0x23d   : > { %3193 = vmatpush.bf16.msrb.mxu0 %v7165_v58 }
 0x23e   : > { %3217 = vmatpush.bf16.msrb.mxu1 %v7309_v9  ;;  %3243 = vmatpush.bf16.msrb.mxu2 %v7421_v15  ;;  %v7276_v9 = vld [vmem:[#allocation5 + $0x148] sm:$0xf] }
 0x23f   : > { %v2140_v22 = vpop.f32.mrf.mxu2  ;;  %v2165_v16 = vpop.f32.mrf.mxu3  ;;  %v7388_v15 = vld [vmem:[#allocation5 + $0x228] sm:$0xf] }
 0x240   : > { %v2141_v1 = vadd.f32 %v2140_v22, %v2116_v37  ;;  %v7565_v37 = vor.u32 %v9036_v48, %v7564_v13  ;;  %v9032_v22 = vld [vmem:[#allocation5 + $0x374] sm:$0xf0]  ;;  %v7404_v13 = vld [vmem:[#allocation5 + $0x248] sm:$0xf] }
 0x241   : > { %v8996_v48 = vld [vmem:[#allocation5 + $0x254] sm:$0xf0] }
 0x242   : > { %v10417_v31 = vadd.f32 %v2165_v16, %v2141_v1  ;;  %v2178_v51 = vpop.f32.mrf.mxu0  ;;  %v2203_v34 = vpop.f32.mrf.mxu1  ;;  %3267 = vmatpush.bf16.msrb.mxu3 %v7565_v37  ;;  %v7549_v16 = vor.u32 %v9032_v22, %v7548_v39  ;;  %v7293_v37 = vor.u32 %v8968_v43, %v7292_v55  ;;  %v8992_v22 = vld [vmem:[#allocation5 + $0x234] sm:$0xf0] }
 0x243   : > { %v2204_v18 = vadd.f32 %v2203_v34, %v2178_v51  ;;  %v8960_v55 = vld [vmem:[#allocation5 + $0x134] sm:$0xf0] }
 0x244   : > { %3218 = vmatpush.bf16.msrb.mxu1 %v7293_v37  ;;  %v7116_v37 = vld [vmem:[#allocation5 + $0x8] sm:$0xf] }
 0x245   : > { %3097 = vmatmul.bf16.vlgmr.msra.gmra.mxu0 %v10337_v33  ;;  %3122 = vmatmul.bf16.vlgmr.msra.gmra.mxu1 %v10339_v54 }
 0x246   : > { %3268 = vmatpush.bf16.msrb.mxu3 %v7549_v16  ;;  %v7516_v16 = vld [vmem:[#allocation5 + $0x328] sm:$0xf] }
 0x247   : > { %v2142_v63 = vpop.f32.mrf.mxu2  ;;  %v2167_v3 = vpop.f32.mrf.mxu3 }
 0x248   : > { %v7405_v63 = vor.u32 %v8996_v48, %v7404_v13  ;;  %v7532_v3 = vld [vmem:[#allocation5 + $0x348] sm:$0xf]  ;;  %v7261_v13 = vor.u32 %v8960_v55, %v7260_v35 }
 0x24a   : > { %v2180_v28 = vpop.f32.mrf.mxu0  ;;  %v2205_v12 = vpop.f32.mrf.mxu1  ;;  %3244 = vmatpush.bf16.msrb.mxu2 %v7405_v63  ;;  %v8924_v63 = vld [vmem:[#allocation5 + $0x14] sm:$0xf0] }
 0x24b   : > { %v7149_v28 = vor.u32 %v8932_v50, %v7148_v42  ;;  %v8964_v12 = vld [vmem:[#allocation5 + $0x154] sm:$0xf0] }
 0x24c   : > { %3147 = vmatmul.bf16.vlgmr.msra.gmra.mxu2 %v10345_v30  ;;  %3172 = vmatmul.bf16.vlgmr.msra.gmra.mxu3 %v10347_v41  ;;  %v7277_v46 = vor.u32 %v8964_v12, %v7276_v9  ;;  %v7500_v12 = vld [vmem:[#allocation5 + $0x308] sm:$0xf] }
 0x24d   : > { %3194 = vmatpush.bf16.msrb.mxu0 %v7149_v28  ;;  %v8988_v28 = vld [vmem:[#allocation5 + $0x214] sm:$0xf0] }
 0x24e   : > { %3219 = vmatpush.bf16.msrb.mxu1 %v7277_v46 }
 0x24f   : > { %v2228_v1 = vpop.f32.mrf.mxu2  ;;  %v2253_v51 = vpop.f32.mrf.mxu3 }
 0x250   : > { %v2229_v34 = vadd.f32 %v2228_v1, %v2204_v18  ;;  %v7533_v18 = vor.u32 %v9028_v24, %v7532_v3  ;;  %v7389_v1 = vor.u32 %v8992_v22, %v7388_v15  ;;  %v7244_v3 = vld [vmem:[#allocation5 + $0x108] sm:$0xf]  ;;  %v7117_v24 = vor.u32 %v8924_v63, %v7116_v37  ;;  %v8950_v63 = vld [vmem:[#allocation5 + $0xec] sm:$0xf] }
 0x252   : > { %v10423_v23 = vadd.f32 %v2253_v51, %v2229_v34  ;;  %v2182_v6 = vpop.f32.mrf.mxu0  ;;  %v2207_v45 = vpop.f32.mrf.mxu1  ;;  %3269 = vmatpush.bf16.msrb.mxu3 %v7533_v18  ;;  %v9024_v51 = vld [vmem:[#allocation5 + $0x334] sm:$0xf0]  ;;  %v7132_v34 = vld [vmem:[#allocation5 + $0x28] sm:$0xf]  ;;  %3245 = vmatpush.bf16.msrb.mxu2 %v7389_v1 }
 0x253   : > { %v2208_v32 = vadd.f32 %v2207_v45, %v2182_v6  ;;  %v8928_v6 = vld [vmem:[#allocation5 + $0x34] sm:$0xf0]  ;;  %v7517_v45 = vor.u32 %v9024_v51, %v7516_v16  ;;  %3220 = vmatpush.bf16.msrb.mxu1 %v7261_v13  ;;  %v9014_v51 = vld [vmem:[#allocation5 + $0x2ec] sm:$0xf] }
 0x254   : > { %v7133_v25 = vor.u32 %v8928_v6, %v7132_v34  ;;  %v8956_v18 = vld [vmem:[#allocation5 + $0x114] sm:$0xf0]  ;;  %v7486_v34 = vld [vmem:[#allocation5 + $0x2f8] sm:$0xf0]  ;;  %v9046_v6 = vld [vmem:[#allocation5 + $0x3ec] sm:$0xf] }
 0x255   : > { %3101 = vmatmul.bf16.gmra.mxu0 %v10359_v47  ;;  %3126 = vmatmul.bf16.gmra.mxu1 %v10361_v57  ;;  %v7245_v50 = vor.u32 %v8956_v18, %v7244_v3  ;;  %v7230_v3 = vld [vmem:[#allocation5 + $0xf8] sm:$0xf0] }
 0x256   : > { %3270 = vmatpush.bf16.msrb.mxu3 %v7517_v45  ;;  %3195 = vmatpush.bf16.msrb.mxu0 %v7133_v25  ;;  %v7489_v45 = vor.u32 %v9014_v51, %v7486_v34  ;;  %v7614_v25 = vld [vmem:[#allocation5 + $0x3f8] sm:$0xf0] }
 0x257   : > { %v2230_v61 = vpop.f32.mrf.mxu2  ;;  %v2255_v26 = vpop.f32.mrf.mxu3  ;;  %3221 = vmatpush.bf16.msrb.mxu1 %v7245_v50  ;;  %v7617_v35 = vor.u32 %v9046_v6, %v7614_v25  ;;  %v7342_v34 = vld [vmem:[#allocation5 + $0x1d8] sm:$0xf0] }
 0x25a   : > { %v2184_v49 = vpop.f32.mrf.mxu0  ;;  %v2209_v39 = vpop.f32.mrf.mxu1  ;;  %3196 = vmatpush.bf16.msrb.mxu0 %v7117_v24  ;;  %v8982_v24 = vld [vmem:[#allocation5 + $0x1ec] sm:$0xf] }
 0x25b   : > { %v9020_v49 = vld [vmem:[#allocation5 + $0x314] sm:$0xf0] }
 0x25c   : > { %3151 = vmatmul.bf16.gmra.mxu2 %v10367_v0  ;;  %3176 = vmatmul.bf16.gmra.mxu3 %v10369_v8  ;;  %v7501_v22 = vor.u32 %v9020_v49, %v7500_v12  ;;  %v9042_v12 = vld [vmem:[#allocation5 + $0x3cc] sm:$0xf] }
 0x25e   : > { %3271 = vmatpush.bf16.msrb.mxu3 %v7501_v22  ;;  %v8946_v22 = vld [vmem:[#allocation5 + $0xcc] sm:$0xf] }
 0x25f   : > { %v2232_v58 = vpop.f32.mrf.mxu2  ;;  %v2257_v43 = vpop.f32.mrf.mxu3 }
 0x260   : > { %v2233_v48 = vadd.f32 %v2232_v58, %v2208_v32  ;;  %v7372_v32 = vld [vmem:[#allocation5 + $0x208] sm:$0xf] }
 0x261   : > { %v7373_v46 = vor.u32 %v8988_v28, %v7372_v32  ;;  %v9010_v32 = vld [vmem:[#allocation5 + $0x2cc] sm:$0xf]  ;;  %v7470_v28 = vld [vmem:[#allocation5 + $0x2d8] sm:$0xf0] }
 0x262   : > { %v10429_v61 = vadd.f32 %v2257_v43, %v2233_v48  ;;  %v2186_v26 = vpop.f32.mrf.mxu0  ;;  %v2211_v42 = vpop.f32.mrf.mxu1  ;;  %3364 = vmatpush.bf16.msra.mxu3 %v7617_v35  ;;  %v9006_v35 = vld [vmem:[#allocation5 + $0x2ac] sm:$0xf] }
 0x263   : > { %v2212_v9 = vadd.f32 %v2211_v42, %v2186_v26  ;;  %3246 = vmatpush.bf16.msrb.mxu2 %v7373_v46  ;;  %v7233_v26 = vor.u32 %v8950_v63, %v7230_v3  ;;  %v7358_v42 = vld [vmem:[#allocation5 + $0x1f8] sm:$0xf0] }
 0x264   : > { %v7361_v50 = vor.u32 %v8982_v24, %v7358_v42  ;;  %v7598_v46 = vld [vmem:[#allocation5 + $0x3d8] sm:$0xf0] }
 0x265   : > { %3105 = vmatmul.bf16.gmra.mxu0 %v10381_v27  ;;  %3130 = vmatmul.bf16.gmra.mxu1 %v10383_v21 }
 0x266   : > { %3289 = vmatpush.bf16.msra.mxu0 %v7233_v26  ;;  %3314 = vmatpush.bf16.msra.mxu1 %v7361_v50 }
 0x267   : > { %v2234_v39 = vpop.f32.mrf.mxu2  ;;  %v2259_v15 = vpop.f32.mrf.mxu3  ;;  %3339 = vmatpush.bf16.msra.mxu2 %v7489_v45 }
 0x268   : > { %v7601_v15 = vor.u32 %v9042_v12, %v7598_v46  ;;  %v8974_v12 = vld [vmem:[#allocation5 + $0x1ac] sm:$0xf] }
 0x26a   : > { %v2188_v16 = vpop.f32.mrf.mxu0  ;;  %v2213_v1 = vpop.f32.mrf.mxu1  ;;  %3365 = vmatpush.bf16.msra.mxu3 %v7601_v15 }
 0x26b   : > { %v7214_v16 = vld [vmem:[#allocation5 + $0xd8] sm:$0xf0]  ;;  %v8978_v1 = vld [vmem:[#allocation5 + $0x1cc] sm:$0xf] }
 0x26c   : > { %3155 = vmatmul.bf16.gmra.mxu2 %v10389_v53  ;;  %3180 = vmatmul.bf16.gmra.mxu3 %v10391_v20  ;;  %v7217_v51 = vor.u32 %v8946_v22, %v7214_v16  ;;  %v7345_v6 = vor.u32 %v8978_v1, %v7342_v34  ;;  %v9002_v22 = vld [vmem:[#allocation5 + $0x28c] sm:$0xf] }
 0x26d   : > { %v9034_v16 = vld [vmem:[#allocation5 + $0x38c] sm:$0xf] }
 0x26e   : > { %3290 = vmatpush.bf16.msra.mxu0 %v7217_v51  ;;  %3315 = vmatpush.bf16.msra.mxu1 %v7345_v6  ;;  %v7566_v51 = vld [vmem:[#allocation5 + $0x398] sm:$0xf0] }
 0x26f   : > { %v2236_v55 = vpop.f32.mrf.mxu2  ;;  %v2261_v58 = vpop.f32.mrf.mxu3 }
 0x270   : > { %v2237_v43 = vadd.f32 %v2236_v55, %v2212_v9  ;;  %v7473_v9 = vor.u32 %v9010_v32, %v7470_v28  ;;  %v7454_v55 = vld [vmem:[#allocation5 + $0x2b8] sm:$0xf0]  ;;  %v8942_v32 = vld [vmem:[#allocation5 + $0xac] sm:$0xf] }
 0x271   : > { %v7198_v28 = vld [vmem:[#allocation5 + $0xb8] sm:$0xf0] }
 0x272   : > { %v10435_v13 = vadd.f32 %v2261_v58, %v2237_v43  ;;  %v2190_v48 = vpop.f32.mrf.mxu0  ;;  %v2215_v37 = vpop.f32.mrf.mxu1  ;;  %3340 = vmatpush.bf16.msra.mxu2 %v7473_v9  ;;  %v9038_v58 = vld [vmem:[#allocation5 + $0x3ac] sm:$0xf]  ;;  %v7457_v43 = vor.u32 %v9006_v35, %v7454_v55  ;;  %v7201_v46 = vor.u32 %v8942_v32, %v7198_v28 }
 0x273   : > { %v2216_v18 = vadd.f32 %v2215_v37, %v2190_v48  ;;  %v7582_v48 = vld [vmem:[#allocation5 + $0x3b8] sm:$0xf0]  ;;  %v8970_v35 = vld [vmem:[#allocation5 + $0x18c] sm:$0xf] }
 0x274   : > { %v7585_v37 = vor.u32 %v9038_v58, %v7582_v48  ;;  %3291 = vmatpush.bf16.msra.mxu0 %v7201_v46  ;;  %v7310_v58 = vld [vmem:[#allocation5 + $0x198] sm:$0xf0] }
 0x275   : > { %3109 = vmatmul.bf16.gmra.mxu0 %v10403_v2  ;;  %3134 = vmatmul.bf16.gmra.mxu1 %v10405_v4 }
 0x276   : > { %3341 = vmatpush.bf16.msra.mxu2 %v7457_v43  ;;  %3366 = vmatpush.bf16.msra.mxu3 %v7585_v37  ;;  %v7313_v43 = vor.u32 %v8970_v35, %v7310_v58 }
 0x277   : > { %v2238_v49 = vpop.f32.mrf.mxu2  ;;  %v2263_v39 = vpop.f32.mrf.mxu3 }
 0x278   : > { %v7326_v49 = vld [vmem:[#allocation5 + $0x1b8] sm:$0xf0] }
 0x279   : > { %v7329_v39 = vor.u32 %v8974_v12, %v7326_v49 }
 0x27a   : > { %v2192_v45 = vpop.f32.mrf.mxu0  ;;  %v2217_v25 = vpop.f32.mrf.mxu1 }
 0x27b   : > { %3316 = vmatpush.bf16.msra.mxu1 %v7329_v39  ;;  %v7569_v45 = vor.u32 %v9034_v16, %v7566_v51  ;;  %v8938_v25 = vld [vmem:[#allocation5 + $0x8c] sm:$0xf] }
 0x27c   : > { %3159 = vmatmul.bf16.gmra.mxu2 %v10411_v44  ;;  %3184 = vmatmul.bf16.gmra.mxu3 %v10413_v60  ;;  %v8966_v16 = vld [vmem:[#allocation5 + $0x16c] sm:$0xf] }
 0x27d   : > { %3367 = vmatpush.bf16.msra.mxu3 %v7569_v45 }
 0x27f   : > { %v2240_v63 = vpop.f32.mrf.mxu2  ;;  %v2265_v3 = vpop.f32.mrf.mxu3  ;;  %3317 = vmatpush.bf16.msra.mxu1 %v7313_v43 }
 0x280   : > { %v2241_v24 = vadd.f32 %v2240_v63, %v2216_v18  ;;  %v7438_v18 = vld [vmem:[#allocation5 + $0x298] sm:$0xf0]  ;;  %v8998_v63 = vld [vmem:[#allocation5 + $0x26c] sm:$0xf] }
 0x281   : > { %v7441_v1 = vor.u32 %v9002_v22, %v7438_v18  ;;  %v8934_v22 = vld [vmem:[#allocation5 + $0x6c] sm:$0xf]  ;;  %v7166_v18 = vld [vmem:[#allocation5 + $0x78] sm:$0xf0] }
 0x282   : > { %v10441_v26 = vadd.f32 %v2265_v3, %v2241_v24  ;;  %v2998_v42 = vpop.f32.mrf.mxu0  ;;  %v3023_v50 = vpop.f32.mrf.mxu1  ;;  %v7422_v3 = vld [vmem:[#allocation5 + $0x278] sm:$0xf0]  ;;  %v9030_v24 = vld [vmem:[#allocation5 + $0x36c] sm:$0xf]  ;;  %v7169_v51 = vor.u32 %v8934_v22, %v7166_v18 }
 0x283   : > { %v2999_v9 = vadd.f32 %v2998_v42, %v10275_v36  ;;  %v7182_v36 = vld [vmem:[#allocation5 + $0x98] sm:$0xf0]  ;;  %3342 = vmatpush.bf16.msra.mxu2 %v7441_v1  ;;  %v7425_v42 = vor.u32 %v8998_v63, %v7422_v3  ;;  %v8962_v63 = vld [vmem:[#allocation5 + $0x14c] sm:$0xf] }
 0x284   : > { %v7185_v55 = vor.u32 %v8938_v25, %v7182_v36  ;;  %v8994_v25 = vld [vmem:[#allocation5 + $0x24c] sm:$0xf]  ;;  %v7134_v18 = vld [vmem:[#allocation5 + $0x38] sm:$0xf0] }
 0x285   : > { %v3024_v15 = vadd.f32 %v3023_v50, %v2999_v9  ;;  %3197 = vmatmul.bf16.vlgmr.msrb.gmra.mxu0 %v10337_v33  ;;  %3222 = vmatmul.bf16.vlgmr.msrb.gmra.mxu1 %v10339_v54  ;;  %v7550_v50 = vld [vmem:[#allocation5 + $0x378] sm:$0xf0]  ;;  %v9026_v36 = vld [vmem:[#allocation5 + $0x34c] sm:$0xf] }
 0x286   : > { %3292 = vmatpush.bf16.msra.mxu0 %v7185_v55  ;;  %v7553_v32 = vor.u32 %v9030_v24, %v7550_v50  ;;  %v7534_v55 = vld [vmem:[#allocation5 + $0x358] sm:$0xf0]  ;;  %v8926_v22 = vld [vmem:[#allocation5 + $0x2c] sm:$0xf] }
 0x287   : > { %v2242_v34 = vpop.f32.mrf.mxu2  ;;  %v2267_v6 = vpop.f32.mrf.mxu3  ;;  %3343 = vmatpush.bf16.msra.mxu2 %v7425_v42  ;;  %v7278_v24 = vld [vmem:[#allocation5 + $0x158] sm:$0xf0] }
 0x288   : > { %3368 = vmatpush.bf16.msra.mxu3 %v7553_v32  ;;  %v7294_v34 = vld [vmem:[#allocation5 + $0x178] sm:$0xf0]  ;;  %v7281_v42 = vor.u32 %v8962_v63, %v7278_v24 }
 0x289   : > { %v7297_v6 = vor.u32 %v8966_v16, %v7294_v34  ;;  %v7262_v34 = vld [vmem:[#allocation5 + $0x138] sm:$0xf0] }
 0x28a   : > { %v3000_v48 = vpop.f32.mrf.mxu0  ;;  %v3025_v37 = vpop.f32.mrf.mxu1  ;;  %3293 = vmatpush.bf16.msra.mxu0 %v7169_v51  ;;  %v8958_v51 = vld [vmem:[#allocation5 + $0x12c] sm:$0xf] }
 0x28b   : > { %3318 = vmatpush.bf16.msra.mxu1 %v7297_v6  ;;  %v7537_v48 = vor.u32 %v9026_v36, %v7534_v55  ;;  %v8930_v37 = vld [vmem:[#allocation5 + $0x4c] sm:$0xf]  ;;  %v7118_v55 = vld [vmem:[#allocation5 + $0x18] sm:$0xf0] }
 0x28c   : > { %3247 = vmatmul.bf16.vlgmr.msrb.gmra.mxu2 %v10345_v30  ;;  %3272 = vmatmul.bf16.vlgmr.msrb.gmra.mxu3 %v10347_v41 }
 0x28d   : > { %3369 = vmatpush.bf16.msra.mxu3 %v7537_v48  ;;  %v7246_v48 = vld [vmem:[#allocation5 + $0x118] sm:$0xf0] }
 0x28f   : > { %v3048_v28 = vpop.f32.mrf.mxu2  ;;  %v3073_v12 = vpop.f32.mrf.mxu3  ;;  %3319 = vmatpush.bf16.msra.mxu1 %v7281_v42 }
 0x290   : > { %v3049_v9 = vadd.f32 %v3048_v28, %v3024_v15  ;;  %v7406_v15 = vld [vmem:[#allocation5 + $0x258] sm:$0xf0]  ;;  %v8990_v28 = vld [vmem:[#allocation5 + $0x22c] sm:$0xf] }
 0x291   : > { %v7409_v35 = vor.u32 %v8994_v25, %v7406_v15  ;;  %v7265_v15 = vor.u32 %v8958_v51, %v7262_v34  ;;  %v7862_v34 = vld [vmem:[#allocation7 + $0x3f0] sm:$0xf0] }
 0x292   : > { %v10448_v46 = vadd.f32 %v3073_v12, %v3049_v9  ;;  %v3002_v49 = vpop.f32.mrf.mxu0  ;;  %v3027_v39 = vpop.f32.mrf.mxu1  ;;  %v7390_v12 = vld [vmem:[#allocation5 + $0x238] sm:$0xf0]  ;;  %v9022_v9 = vld [vmem:[#allocation5 + $0x32c] sm:$0xf] }
 0x293   : > { %v3003_v1 = vadd.f32 %v3002_v49, %v10285_v29  ;;  %v7150_v29 = vld [vmem:[#allocation5 + $0x58] sm:$0xf0]  ;;  %3344 = vmatpush.bf16.msra.mxu2 %v7409_v35  ;;  %v7393_v49 = vor.u32 %v8990_v28, %v7390_v12  ;;  %v8922_v35 = vld [vmem:[#allocation5 + $0xc] sm:$0xf]  ;;  %3320 = vmatpush.bf16.msra.mxu1 %v7265_v15 }
 0x294   : > { %v7153_v3 = vor.u32 %v8930_v37, %v7150_v29  ;;  %v7502_v12 = vld [vmem:[#allocation5 + $0x318] sm:$0xf0] }
 0x295   : > { %v3028_v45 = vadd.f32 %v3027_v39, %v3003_v1  ;;  %3201 = vmatmul.bf16.gmra.mxu0 %v10359_v47  ;;  %3226 = vmatmul.bf16.gmra.mxu1 %v10361_v57  ;;  %v7518_v39 = vld [vmem:[#allocation5 + $0x338] sm:$0xf0]  ;;  %v7137_v1 = vor.u32 %v8926_v22, %v7134_v18 }
 0x296   : > { %3294 = vmatpush.bf16.msra.mxu0 %v7153_v3  ;;  %v7521_v16 = vor.u32 %v9022_v9, %v7518_v39 }
 0x297   : > { %v3050_v58 = vpop.f32.mrf.mxu2  ;;  %v3075_v43 = vpop.f32.mrf.mxu3  ;;  %3345 = vmatpush.bf16.msra.mxu2 %v7393_v49 }
 0x298   : > { %3370 = vmatpush.bf16.msra.mxu3 %v7521_v16  ;;  %v8954_v58 = vld [vmem:[#allocation5 + $0x10c] sm:$0xf]  ;;  %v7121_v43 = vor.u32 %v8922_v35, %v7118_v55  ;;  %v7734_v16 = vld [vmem:[#allocation7 + $0x2f0] sm:$0xf0] }
 0x299   : > { %v7249_v3 = vor.u32 %v8954_v58, %v7246_v48  ;;  %v9271_v48 = vld [vmem:[#allocation7 + $0x2ec] sm:$0xf0] }
 0x29a   : > { %v3004_v50 = vpop.f32.mrf.mxu0  ;;  %v3029_v32 = vpop.f32.mrf.mxu1  ;;  %3295 = vmatpush.bf16.msra.mxu0 %v7137_v1  ;;  %v9301_v1 = vld [vmem:[#allocation7 + $0x3e4] sm:$0xf] }
 0x29b   : > { %v7374_v50 = vld [vmem:[#allocation5 + $0x218] sm:$0xf0]  ;;  %v9018_v32 = vld [vmem:[#allocation5 + $0x30c] sm:$0xf]  ;;  %3321 = vmatpush.bf16.msra.mxu1 %v7249_v3 }
 0x29c   : > { %3251 = vmatmul.bf16.gmra.mxu2 %v10367_v0  ;;  %3276 = vmatmul.bf16.gmra.mxu3 %v10369_v8  ;;  %v7505_v39 = vor.u32 %v9018_v32, %v7502_v12  ;;  %v9265_v32 = vld [vmem:[#allocation7 + $0x2c4] sm:$0xf] }
 0x29e   : > { %3296 = vmatpush.bf16.msra.mxu0 %v7121_v43  ;;  %3371 = vmatpush.bf16.msra.mxu3 %v7505_v39  ;;  %v7732_v43 = vld [vmem:[#allocation7 + $0x2e0] sm:$0xf] }
 0x29f   : > { %v3052_v6 = vpop.f32.mrf.mxu2  ;;  %v3077_v25 = vpop.f32.mrf.mxu3  ;;  %v7733_v3 = vor.u32 %v9271_v48, %v7732_v43 }
 0x2a0   : > { %v3053_v36 = vadd.f32 %v3052_v6, %v3028_v45  ;;  %v8986_v45 = vld [vmem:[#allocation5 + $0x20c] sm:$0xf]  ;;  %v7865_v6 = vor.u32 %v9301_v1, %v7862_v34  ;;  %v9299_v1 = vld [vmem:[#allocation7 + $0x3cc] sm:$0xf0] }
 0x2a1   : > { %v7377_v28 = vor.u32 %v8986_v45, %v7374_v50 }
 0x2a2   : > { %v10455_v37 = vadd.f32 %v3077_v25, %v3053_v36  ;;  %v3006_v29 = vpop.f32.mrf.mxu0  ;;  %v3031_v63 = vpop.f32.mrf.mxu1  ;;  %3903 = vmatpush.bf16.msrb.mxu3 %v7865_v6  ;;  %3846 = vmatpush.bf16.msrb.mxu0 %v7733_v3 }
 0x2a3   : > { %v3007_v24 = vadd.f32 %v3006_v29, %v10295_v10  ;;  %3346 = vmatpush.bf16.msra.mxu2 %v7377_v28  ;;  %v9269_v10 = vld [vmem:[#allocation7 + $0x2e4] sm:$0xf]  ;;  %v7860_v29 = vld [vmem:[#allocation7 + $0x3e0] sm:$0xf] }
 0x2a4   : > { %v7737_v51 = vor.u32 %v9269_v10, %v7734_v16  ;;  %v9297_v28 = vld [vmem:[#allocation7 + $0x3c4] sm:$0xf]  ;;  %v7844_v10 = vld [vmem:[#allocation7 + $0x3c0] sm:$0xf] }
 0x2a5   : > { %v3032_v42 = vadd.f32 %v3031_v63, %v3007_v24  ;;  %3205 = vmatmul.bf16.gmra.mxu0 %v10381_v27  ;;  %3230 = vmatmul.bf16.gmra.mxu1 %v10383_v21  ;;  %v9303_v24 = vld [vmem:[#allocation7 + $0x3ec] sm:$0xf0] }
 0x2a6   : > { %v7861_v45 = vor.u32 %v9303_v24, %v7860_v29 }
 0x2a7   : > { %v3054_v9 = vpop.f32.mrf.mxu2  ;;  %v3079_v49 = vpop.f32.mrf.mxu3  ;;  %3884 = vmatpush.bf16.msrb.mxu2 %v7737_v51  ;;  %v7845_v51 = vor.u32 %v9299_v1, %v7844_v10 }
 0x2a8   : > { %3865 = vmatpush.bf16.msrb.mxu1 %v7861_v45  ;;  %v7846_v9 = vld [vmem:[#allocation7 + $0x3d0] sm:$0xf0] }
 0x2aa   : > { %v3008_v22 = vpop.f32.mrf.mxu0  ;;  %v3033_v18 = vpop.f32.mrf.mxu1 }
 0x2ab   : > { %v7849_v22 = vor.u32 %v9297_v28, %v7846_v9  ;;  %v7716_v18 = vld [vmem:[#allocation7 + $0x2c0] sm:$0xf] }
 0x2ac   : > { %3255 = vmatmul.bf16.gmra.mxu2 %v10389_v53  ;;  %3280 = vmatmul.bf16.gmra.mxu3 %v10391_v20  ;;  %v7828_v28 = vld [vmem:[#allocation7 + $0x3a0] sm:$0xf] }
 0x2ad   : > { %3904 = vmatpush.bf16.msrb.mxu3 %v7849_v22  ;;  %3866 = vmatpush.bf16.msrb.mxu1 %v7845_v51 }
 0x2af   : > { %v3056_v25 = vpop.f32.mrf.mxu2  ;;  %v3081_v15 = vpop.f32.mrf.mxu3 }
 0x2b0   : > { %v3057_v36 = vadd.f32 %v3056_v25, %v3032_v42  ;;  %v7718_v42 = vld [vmem:[#allocation7 + $0x2d0] sm:$0xf0]  ;;  %v9261_v25 = vld [vmem:[#allocation7 + $0x2a4] sm:$0xf] }
 0x2b1   : > { %v7721_v12 = vor.u32 %v9265_v32, %v7718_v42  ;;  %v7700_v32 = vld [vmem:[#allocation7 + $0x2a0] sm:$0xf]  ;;  %v9263_v42 = vld [vmem:[#allocation7 + $0x2ac] sm:$0xf0] }
 0x2b2   : > { %v10462_v35 = vadd.f32 %v3081_v15, %v3057_v36  ;;  %v3010_v55 = vpop.f32.mrf.mxu0  ;;  %v3035_v58 = vpop.f32.mrf.mxu1  ;;  %v7702_v15 = vld [vmem:[#allocation7 + $0x2b0] sm:$0xf0]  ;;  %v9293_v36 = vld [vmem:[#allocation7 + $0x3a4] sm:$0xf]  ;;  %v7701_v9 = vor.u32 %v9263_v42, %v7700_v32 }
 0x2b3   : > { %v3011_v63 = vadd.f32 %v3010_v55, %v10305_v52  ;;  %v9267_v52 = vld [vmem:[#allocation7 + $0x2cc] sm:$0xf0]  ;;  %3885 = vmatpush.bf16.msrb.mxu2 %v7721_v12  ;;  %v7705_v55 = vor.u32 %v9261_v25, %v7702_v15  ;;  %v7812_v25 = vld [vmem:[#allocation7 + $0x380] sm:$0xf] }
 0x2b4   : > { %v7717_v16 = vor.u32 %v9267_v52, %v7716_v18  ;;  %v9257_v18 = vld [vmem:[#allocation7 + $0x284] sm:$0xf] }
 0x2b5   : > { %v3036_v50 = vadd.f32 %v3035_v58, %v3011_v63  ;;  %3209 = vmatmul.bf16.gmra.mxu0 %v10403_v2  ;;  %3234 = vmatmul.bf16.gmra.mxu1 %v10405_v4  ;;  %v7830_v58 = vld [vmem:[#allocation7 + $0x3b0] sm:$0xf0]  ;;  %v9289_v52 = vld [vmem:[#allocation7 + $0x384] sm:$0xf] }
 0x2b6   : > { %3847 = vmatpush.bf16.msrb.mxu0 %v7717_v16  ;;  %v7833_v43 = vor.u32 %v9293_v36, %v7830_v58  ;;  %v7814_v16 = vld [vmem:[#allocation7 + $0x390] sm:$0xf0]  ;;  %v9291_v36 = vld [vmem:[#allocation7 + $0x38c] sm:$0xf0]  ;;  %v9253_v58 = vld [vmem:[#allocation7 + $0x264] sm:$0xf] }
 0x2b7   : > { %v3058_v49 = vpop.f32.mrf.mxu2  ;;  %v3083_v39 = vpop.f32.mrf.mxu3  ;;  %3886 = vmatpush.bf16.msrb.mxu2 %v7705_v55 }
 0x2b8   : > { %3905 = vmatpush.bf16.msrb.mxu3 %v7833_v43  ;;  %v9295_v49 = vld [vmem:[#allocation7 + $0x3ac] sm:$0xf0]  ;;  %v7670_v43 = vld [vmem:[#allocation7 + $0x270] sm:$0xf0] }
 0x2b9   : > { %v7829_v39 = vor.u32 %v9295_v49, %v7828_v28  ;;  %v7668_v49 = vld [vmem:[#allocation7 + $0x260] sm:$0xf] }
 0x2ba   : > { %v3012_v34 = vpop.f32.mrf.mxu0  ;;  %v3037_v6 = vpop.f32.mrf.mxu1  ;;  %3848 = vmatpush.bf16.msrb.mxu0 %v7701_v9 }
 0x2bb   : > { %3867 = vmatpush.bf16.msrb.mxu1 %v7829_v39  ;;  %v7817_v34 = vor.u32 %v9289_v52, %v7814_v16  ;;  %v7684_v6 = vld [vmem:[#allocation7 + $0x280] sm:$0xf]  ;;  %v9255_v39 = vld [vmem:[#allocation7 + $0x26c] sm:$0xf0]  ;;  %v9249_v16 = vld [vmem:[#allocation7 + $0x244] sm:$0xf] }
 0x2bc   : > { %3259 = vmatmul.bf16.gmra.mxu2 %v10411_v44  ;;  %3284 = vmatmul.bf16.gmra.mxu3 %v10413_v60 }
 0x2bd   : > { %3906 = vmatpush.bf16.msrb.mxu3 %v7817_v34  ;;  %v7782_v34 = vld [vmem:[#allocation7 + $0x350] sm:$0xf0] }
 0x2bf   : > { %v3060_v48 = vpop.f32.mrf.mxu2  ;;  %v3085_v29 = vpop.f32.mrf.mxu3 }
 0x2c0   : > { %v3061_v63 = vadd.f32 %v3060_v48, %v3036_v50  ;;  %v7686_v50 = vld [vmem:[#allocation7 + $0x290] sm:$0xf0]  ;;  %v9285_v48 = vld [vmem:[#allocation7 + $0x364] sm:$0xf] }
 0x2c1   : > { %v7689_v10 = vor.u32 %v9257_v18, %v7686_v50  ;;  %v7669_v18 = vor.u32 %v9255_v39, %v7668_v49  ;;  %v9287_v50 = vld [vmem:[#allocation7 + $0x36c] sm:$0xf0]  ;;  %v7764_v49 = vld [vmem:[#allocation7 + $0x320] sm:$0xf] }
 0x2c2   : > { %v10469_v3 = vadd.f32 %v3085_v29, %v3061_v63  ;;  %v3098_v24 = vpop.f32.mrf.mxu0  ;;  %v3123_v45 = vpop.f32.mrf.mxu1  ;;  %v7673_v29 = vor.u32 %v9253_v58, %v7670_v43  ;;  %v7798_v63 = vld [vmem:[#allocation7 + $0x370] sm:$0xf0]  ;;  %v9279_v39 = vld [vmem:[#allocation7 + $0x32c] sm:$0xf0] }
 0x2c3   : > { %v3099_v12 = vadd.f32 %v3098_v24, %v10311_v59  ;;  %v9259_v59 = vld [vmem:[#allocation7 + $0x28c] sm:$0xf0]  ;;  %3887 = vmatpush.bf16.msrb.mxu2 %v7689_v10  ;;  %v7801_v24 = vor.u32 %v9285_v48, %v7798_v63  ;;  %v9245_v48 = vld [vmem:[#allocation7 + $0x224] sm:$0xf] }
 0x2c4   : > { %v7685_v15 = vor.u32 %v9259_v59, %v7684_v6  ;;  %v9277_v63 = vld [vmem:[#allocation7 + $0x324] sm:$0xf] }
 0x2c5   : > { %v3124_v22 = vadd.f32 %v3123_v45, %v3099_v12  ;;  %3297 = vmatmul.bf16.vlgmr.msra.gmra.mxu0 %v10337_v33  ;;  %3322 = vmatmul.bf16.vlgmr.msra.gmra.mxu1 %v10339_v54  ;;  %v7813_v33 = vor.u32 %v9291_v36, %v7812_v25  ;;  %v7780_v36 = vld [vmem:[#allocation7 + $0x340] sm:$0xf] }
 0x2c6   : > { %3849 = vmatpush.bf16.msrb.mxu0 %v7685_v15  ;;  %3907 = vmatpush.bf16.msrb.mxu3 %v7801_v24  ;;  %v7652_v15 = vld [vmem:[#allocation7 + $0x240] sm:$0xf] }
 0x2c7   : > { %v3062_v1 = vpop.f32.mrf.mxu2  ;;  %v3087_v51 = vpop.f32.mrf.mxu3  ;;  %3868 = vmatpush.bf16.msrb.mxu1 %v7813_v33  ;;  %3888 = vmatpush.bf16.msrb.mxu2 %v7673_v29  ;;  %v7638_v29 = vld [vmem:[#allocation7 + $0x230] sm:$0xf0] }
 0x2c8   : > { %v9281_v1 = vld [vmem:[#allocation7 + $0x344] sm:$0xf]  ;;  %v7641_v24 = vor.u32 %v9245_v48, %v7638_v29  ;;  %v7750_v29 = vld [vmem:[#allocation7 + $0x310] sm:$0xf0] }
 0x2c9   : > { %v7785_v25 = vor.u32 %v9281_v1, %v7782_v34 }
 0x2ca   : > { %v3100_v55 = vpop.f32.mrf.mxu0  ;;  %v3125_v54 = vpop.f32.mrf.mxu1  ;;  %3850 = vmatpush.bf16.msrb.mxu0 %v7669_v18  ;;  %v7765_v18 = vor.u32 %v9279_v39, %v7764_v49  ;;  %v9300_v39 = vld [vmem:[#allocation7 + $0x3d4] sm:$0xf0] }
 0x2cb   : > { %v9283_v55 = vld [vmem:[#allocation7 + $0x34c] sm:$0xf0]  ;;  %3908 = vmatpush.bf16.msrb.mxu3 %v7785_v25 }
 0x2cc   : > { %3347 = vmatmul.bf16.vlgmr.msra.gmra.mxu2 %v10345_v30  ;;  %3372 = vmatmul.bf16.vlgmr.msra.gmra.mxu3 %v10347_v41  ;;  %v7796_v30 = vld [vmem:[#allocation7 + $0x360] sm:$0xf]  ;;  %v7781_v54 = vor.u32 %v9283_v55, %v7780_v36  ;;  %v9272_v36 = vld [vmem:[#allocation7 + $0x2f4] sm:$0xf0]  ;;  %v9241_v55 = vld [vmem:[#allocation7 + $0x204] sm:$0xf] }
 0x2cd   : > { %v7797_v52 = vor.u32 %v9287_v50, %v7796_v30 }
 0x2cf   : > { %v3148_v45 = vpop.f32.mrf.mxu2  ;;  %v3173_v32 = vpop.f32.mrf.mxu3  ;;  %3869 = vmatpush.bf16.msrb.mxu1 %v7797_v52  ;;  %v7620_v52 = vld [vmem:[#allocation7 + $0x200] sm:$0xf] }
 0x2d0   : > { %v3149_v42 = vadd.f32 %v3148_v45, %v3124_v22  ;;  %v7654_v22 = vld [vmem:[#allocation7 + $0x250] sm:$0xf0] }
 0x2d1   : > { %v7657_v51 = vor.u32 %v9249_v16, %v7654_v22  ;;  %v7766_v45 = vld [vmem:[#allocation7 + $0x330] sm:$0xf0]  ;;  %v9243_v16 = vld [vmem:[#allocation7 + $0x20c] sm:$0xf0]  ;;  %v7748_v22 = vld [vmem:[#allocation7 + $0x300] sm:$0xf] }
 0x2d2   : > { %v10476_v28 = vadd.f32 %v3173_v32, %v3149_v42  ;;  %v3102_v12 = vpop.f32.mrf.mxu0  ;;  %v3127_v9 = vpop.f32.mrf.mxu1  ;;  %v7636_v32 = vld [vmem:[#allocation7 + $0x220] sm:$0xf]  ;;  %v9247_v42 = vld [vmem:[#allocation7 + $0x22c] sm:$0xf0]  ;;  %v7621_v1 = vor.u32 %v9243_v16, %v7620_v52  ;;  %v7742_v52 = vld [vmem:[#allocation7 + $0x2f8] sm:$0xf0] }
 0x2d3   : > { %v3103_v41 = vadd.f32 %v3102_v12, %v10317_v38  ;;  %v9251_v38 = vld [vmem:[#allocation7 + $0x24c] sm:$0xf0]  ;;  %3889 = vmatpush.bf16.msrb.mxu2 %v7657_v51  ;;  %3870 = vmatpush.bf16.msrb.mxu1 %v7781_v54  ;;  %v7769_v12 = vor.u32 %v9277_v63, %v7766_v45  ;;  %v7622_v54 = vld [vmem:[#allocation7 + $0x210] sm:$0xf0]  ;;  %v9304_v63 = vld [vmem:[#allocation7 + $0x3f4] sm:$0xf0] }
 0x2d4   : > { %v7653_v33 = vor.u32 %v9251_v38, %v7652_v15  ;;  %v9275_v51 = vld [vmem:[#allocation7 + $0x30c] sm:$0xf0]  ;;  %v7740_v38 = vld [vmem:[#allocation7 + $0x2e8] sm:$0xf]  ;;  %v7625_v48 = vor.u32 %v9241_v55, %v7622_v54  ;;  %v9302_v16 = vld [vmem:[#allocation7 + $0x3ec] sm:$0xf] }
 0x2d5   : > { %v3128_v10 = vadd.f32 %v3127_v9, %v3103_v41  ;;  %3301 = vmatmul.bf16.gmra.mxu0 %v10359_v47  ;;  %3326 = vmatmul.bf16.gmra.mxu1 %v10361_v57  ;;  %v7637_v9 = vor.u32 %v9247_v42, %v7636_v32  ;;  %v7749_v25 = vor.u32 %v9275_v51, %v7748_v22  ;;  %v7724_v42 = vld [vmem:[#allocation7 + $0x2c8] sm:$0xf]  ;;  %v7726_v55 = vld [vmem:[#allocation7 + $0x2d8] sm:$0xf0]  ;;  %v9298_v54 = vld [vmem:[#allocation7 + $0x3cc] sm:$0xf] }
 0x2d6   : > { %3851 = vmatpush.bf16.msrb.mxu0 %v7653_v33  ;;  %3909 = vmatpush.bf16.msrb.mxu3 %v7769_v12  ;;  %v7868_v33 = vld [vmem:[#allocation7 + $0x3e8] sm:$0xf]  ;;  %v9268_v12 = vld [vmem:[#allocation7 + $0x2d4] sm:$0xf0] }
 0x2d7   : > { %v3150_v6 = vpop.f32.mrf.mxu2  ;;  %v3175_v59 = vpop.f32.mrf.mxu3  ;;  %3890 = vmatpush.bf16.msrb.mxu2 %v7641_v24  ;;  %3871 = vmatpush.bf16.msrb.mxu1 %v7765_v18  ;;  %v7869_v32 = vor.u32 %v9304_v63, %v7868_v33  ;;  %v7725_v49 = vor.u32 %v9268_v12, %v7724_v42  ;;  %v9266_v33 = vld [vmem:[#allocation7 + $0x2cc] sm:$0xf]  ;;  %v9292_v12 = vld [vmem:[#allocation7 + $0x394] sm:$0xf0] }
 0x2da   : > { %v3104_v58 = vpop.f32.mrf.mxu0  ;;  %v3129_v43 = vpop.f32.mrf.mxu1  ;;  %3852 = vmatpush.bf16.msrb.mxu0 %v7637_v9  ;;  %v7852_v9 = vld [vmem:[#allocation7 + $0x3c8] sm:$0xf] }
 0x2db   : > { %v9273_v58 = vld [vmem:[#allocation7 + $0x304] sm:$0xf]  ;;  %v7741_v43 = vor.u32 %v9272_v36, %v7740_v38  ;;  %3872 = vmatpush.bf16.msrb.mxu1 %v7749_v25  ;;  %3891 = vmatpush.bf16.msrb.mxu2 %v7625_v48  ;;  %v7853_v18 = vor.u32 %v9300_v39, %v7852_v9  ;;  %v7836_v25 = vld [vmem:[#allocation7 + $0x3a8] sm:$0xf]  ;;  %v9296_v38 = vld [vmem:[#allocation7 + $0x3b4] sm:$0xf0]  ;;  %v7729_v48 = vor.u32 %v9266_v33, %v7726_v55 }
 0x2dc   : > { %3351 = vmatmul.bf16.gmra.mxu2 %v10367_v0  ;;  %3376 = vmatmul.bf16.gmra.mxu3 %v10369_v8  ;;  %v7837_v36 = vor.u32 %v9296_v38, %v7836_v25  ;;  %v7694_v33 = vld [vmem:[#allocation7 + $0x298] sm:$0xf0] }
 0x2de   : > { %3853 = vmatpush.bf16.msrb.mxu0 %v7621_v1  ;;  %v7870_v1 = vld [vmem:[#allocation7 + $0x3f8] sm:$0xf0] }
 0x2df   : > { %v3152_v30 = vpop.f32.mrf.mxu2  ;;  %v3177_v41 = vpop.f32.mrf.mxu3  ;;  %3941 = vmatpush.bf16.msra.mxu1 %v7869_v32  ;;  %v7873_v51 = vor.u32 %v9302_v16, %v7870_v1  ;;  %v7820_v32 = vld [vmem:[#allocation7 + $0x388] sm:$0xf]  ;;  %v7838_v16 = vld [vmem:[#allocation7 + $0x3b8] sm:$0xf0] }
 0x2e0   : > { %v3153_v50 = vadd.f32 %v3152_v30, %v3128_v10  ;;  %v7676_v1 = vld [vmem:[#allocation7 + $0x268] sm:$0xf] }
 0x2e2   : > { %v10483_v34 = vadd.f32 %v3177_v41, %v3153_v50  ;;  %v3106_v6 = vpop.f32.mrf.mxu0  ;;  %v3131_v59 = vpop.f32.mrf.mxu1  ;;  %3922 = vmatpush.bf16.msra.mxu0 %v7741_v43  ;;  %v9270_v50 = vld [vmem:[#allocation7 + $0x2ec] sm:$0xf] }
 0x2e3   : > { %v3107_v15 = vadd.f32 %v3106_v6, %v10323_v62  ;;  %v7753_v62 = vor.u32 %v9273_v58, %v7750_v29  ;;  %v7745_v22 = vor.u32 %v9270_v50, %v7742_v52  ;;  %v7708_v6 = vld [vmem:[#allocation7 + $0x2a8] sm:$0xf]  ;;  %3942 = vmatpush.bf16.msra.mxu1 %v7853_v18  ;;  %v7854_v29 = vld [vmem:[#allocation7 + $0x3d8] sm:$0xf0]  ;;  %v9294_v50 = vld [vmem:[#allocation7 + $0x3ac] sm:$0xf] }
 0x2e4   : > { %v7710_v18 = vld [vmem:[#allocation7 + $0x2b8] sm:$0xf0] }
 0x2e5   : > { %v3132_v10 = vadd.f32 %v3131_v59, %v3107_v15  ;;  %3305 = vmatmul.bf16.gmra.mxu0 %v10381_v27  ;;  %3330 = vmatmul.bf16.gmra.mxu1 %v10383_v21  ;;  %v9264_v59 = vld [vmem:[#allocation7 + $0x2b4] sm:$0xf0] }
 0x2e6   : > { %3910 = vmatpush.bf16.msrb.mxu3 %v7753_v62  ;;  %3923 = vmatpush.bf16.msra.mxu0 %v7725_v49  ;;  %v7709_v15 = vor.u32 %v9264_v59, %v7708_v6  ;;  %v9260_v62 = vld [vmem:[#allocation7 + $0x294] sm:$0xf0]  ;;  %v7804_v6 = vld [vmem:[#allocation7 + $0x368] sm:$0xf] }
 0x2e7   : > { %v3154_v24 = vpop.f32.mrf.mxu2  ;;  %v3179_v45 = vpop.f32.mrf.mxu3  ;;  %3960 = vmatpush.bf16.msra.mxu2 %v7745_v22  ;;  %3943 = vmatpush.bf16.msra.mxu1 %v7837_v36  ;;  %v7841_v22 = vor.u32 %v9294_v50, %v7838_v16  ;;  %v9258_v36 = vld [vmem:[#allocation7 + $0x28c] sm:$0xf]  ;;  %v7772_v16 = vld [vmem:[#allocation7 + $0x328] sm:$0xf] }
 0x2e8   : > { %v7857_v24 = vor.u32 %v9298_v54, %v7854_v29  ;;  %v7692_v45 = vld [vmem:[#allocation7 + $0x288] sm:$0xf] }
 0x2e9   : > { %v7693_v42 = vor.u32 %v9260_v62, %v7692_v45  ;;  %v7660_v29 = vld [vmem:[#allocation7 + $0x248] sm:$0xf]  ;;  %v9284_v62 = vld [vmem:[#allocation7 + $0x354] sm:$0xf0] }
 0x2ea   : > { %v3108_v30 = vpop.f32.mrf.mxu0  ;;  %v3133_v41 = vpop.f32.mrf.mxu1  ;;  %3979 = vmatpush.bf16.msra.mxu3 %v7873_v51  ;;  %3924 = vmatpush.bf16.msra.mxu0 %v7709_v15  ;;  %v9256_v51 = vld [vmem:[#allocation7 + $0x274] sm:$0xf0] }
 0x2eb   : > { %3961 = vmatpush.bf16.msra.mxu2 %v7729_v48  ;;  %v7821_v30 = vor.u32 %v9292_v12, %v7820_v32  ;;  %v9262_v41 = vld [vmem:[#allocation7 + $0x2ac] sm:$0xf]  ;;  %v7677_v25 = vor.u32 %v9256_v51, %v7676_v1  ;;  %v9288_v15 = vld [vmem:[#allocation7 + $0x374] sm:$0xf0] }
 0x2ec   : > { %3355 = vmatmul.bf16.gmra.mxu2 %v10389_v53  ;;  %3380 = vmatmul.bf16.gmra.mxu3 %v10391_v20  ;;  %v7805_v38 = vor.u32 %v9288_v15, %v7804_v6  ;;  %v9280_v1 = vld [vmem:[#allocation7 + $0x334] sm:$0xf0]  ;;  %v9250_v6 = vld [vmem:[#allocation7 + $0x24c] sm:$0xf] }
 0x2ed   : > { %3944 = vmatpush.bf16.msra.mxu1 %v7821_v30  ;;  %v9286_v30 = vld [vmem:[#allocation7 + $0x36c] sm:$0xf]  ;;  %v7773_v51 = vor.u32 %v9280_v1, %v7772_v16  ;;  %v10933_v16 = vld [vmem:[#allocation22_spill] sm:$0xff]  ;;  %v9111_v1 = vld [vmem:[#allocation7 + $0x1ec] sm:$0xf0] }
 0x2ee   : > { %3980 = vmatpush.bf16.msra.mxu3 %v7857_v24  ;;  %3925 = vmatpush.bf16.msra.mxu0 %v7693_v42  ;;  %v7788_v24 = vld [vmem:[#allocation7 + $0x348] sm:$0xf]  ;;  %v9282_v15 = vld [vmem:[#allocation7 + $0x34c] sm:$0xf] }
 0x2ef   : > { %v3156_v58 = vpop.f32.mrf.mxu2  ;;  %v3181_v43 = vpop.f32.mrf.mxu3  ;;  %v7789_v12 = vor.u32 %v9284_v62, %v7788_v24 }
 0x2f0   : > { %v3157_v63 = vadd.f32 %v3156_v58, %v3132_v10  ;;  %v7713_v10 = vor.u32 %v9262_v41, %v7710_v18  ;;  %v7697_v58 = vor.u32 %v9258_v36, %v7694_v33  ;;  %v7806_v18 = vld [vmem:[#allocation7 + $0x378] sm:$0xf0] }
 0x2f1   : > { %3945 = vmatpush.bf16.msra.mxu1 %v7805_v38  ;;  %v7809_v50 = vor.u32 %v9286_v30, %v7806_v18  ;;  %v7774_v30 = vld [vmem:[#allocation7 + $0x338] sm:$0xf0]  ;;  %v7988_v18 = vld [vmem:[#allocation7 + $0xe0] sm:$0xf] }
 0x2f2   : > { %v10490_v9 = vadd.f32 %v3181_v43, %v3157_v63  ;;  %v3110_v49 = vpop.f32.mrf.mxu0  ;;  %v3135_v39 = vpop.f32.mrf.mxu1  ;;  %3962 = vmatpush.bf16.msra.mxu2 %v7713_v10  ;;  %3981 = vmatpush.bf16.msra.mxu3 %v7841_v22  ;;  %v7822_v43 = vld [vmem:[#allocation7 + $0x398] sm:$0xf0]  ;;  %v9252_v63 = vld [vmem:[#allocation7 + $0x254] sm:$0xf0] }
 0x2f3   : > { %v3111_v52 = vadd.f32 %v3110_v49, %v10335_v40  ;;  %v9290_v40 = vld [vmem:[#allocation7 + $0x38c] sm:$0xf]  ;;  %3926 = vmatpush.bf16.msra.mxu0 %v7677_v25  ;;  %v7661_v45 = vor.u32 %v9252_v63, %v7660_v29  ;;  %v9248_v10 = vld [vmem:[#allocation7 + $0x234] sm:$0xf0]  ;;  %v7662_v25 = vld [vmem:[#allocation7 + $0x258] sm:$0xf0] }
 0x2f4   : > { %v7825_v48 = vor.u32 %v9290_v40, %v7822_v43  ;;  %v9254_v49 = vld [vmem:[#allocation7 + $0x26c] sm:$0xf]  ;;  %v7665_v33 = vor.u32 %v9250_v6, %v7662_v25  ;;  %v7790_v40 = vld [vmem:[#allocation7 + $0x358] sm:$0xf0]  ;;  %v9244_v43 = vld [vmem:[#allocation7 + $0x214] sm:$0xf0] }
 0x2f5   : > { %v3136_v59 = vadd.f32 %v3135_v39, %v3111_v52  ;;  %3309 = vmatmul.bf16.gmra.mxu0 %v10403_v2  ;;  %3334 = vmatmul.bf16.gmra.mxu1 %v10405_v4  ;;  %v7678_v39 = vld [vmem:[#allocation7 + $0x278] sm:$0xf0]  ;;  %v7644_v52 = vld [vmem:[#allocation7 + $0x228] sm:$0xf]  ;;  %v9276_v63 = vld [vmem:[#allocation7 + $0x314] sm:$0xf0] }
 0x2f6   : > { %3963 = vmatpush.bf16.msra.mxu2 %v7697_v58  ;;  %3982 = vmatpush.bf16.msra.mxu3 %v7825_v48  ;;  %v7681_v41 = vor.u32 %v9254_v49, %v7678_v39  ;;  %v7645_v22 = vor.u32 %v9248_v10, %v7644_v52  ;;  %v7628_v58 = vld [vmem:[#allocation7 + $0x208] sm:$0xf]  ;;  %v9278_v49 = vld [vmem:[#allocation7 + $0x32c] sm:$0xf]  ;;  %v8116_v52 = vld [vmem:[#allocation7 + $0x1e0] sm:$0xf] }
 0x2f7   : > { %v3158_v55 = vpop.f32.mrf.mxu2  ;;  %v3183_v54 = vpop.f32.mrf.mxu3  ;;  %3927 = vmatpush.bf16.msra.mxu0 %v7661_v45  ;;  %3946 = vmatpush.bf16.msra.mxu1 %v7789_v12  ;;  %v7756_v48 = vld [vmem:[#allocation7 + $0x308] sm:$0xf]  ;;  %v7629_v29 = vor.u32 %v9244_v43, %v7628_v58  ;;  %v7646_v12 = vld [vmem:[#allocation7 + $0x238] sm:$0xf0]  ;;  %v9242_v6 = vld [vmem:[#allocation7 + $0x20c] sm:$0xf] }
 0x2f8   : > { %v7793_v54 = vor.u32 %v9282_v15, %v7790_v40  ;;  %v9274_v25 = vld [vmem:[#allocation7 + $0x30c] sm:$0xf]  ;;  %v8100_v58 = vld [vmem:[#allocation7 + $0x1c0] sm:$0xf] }
 0x2fa   : > { %v3112_v32 = vpop.f32.mrf.mxu0  ;;  %v3137_v42 = vpop.f32.mrf.mxu1  ;;  %3964 = vmatpush.bf16.msra.mxu2 %v7681_v41  ;;  %3983 = vmatpush.bf16.msra.mxu3 %v7809_v50  ;;  %v7777_v41 = vor.u32 %v9278_v49, %v7774_v30  ;;  %v9079_v50 = vld [vmem:[#allocation7 + $0xec] sm:$0xf0]  ;;  %v8118_v49 = vld [vmem:[#allocation7 + $0x1f0] sm:$0xf0] }
 0x2fb   : > { %3928 = vmatpush.bf16.msra.mxu0 %v7645_v22  ;;  %3947 = vmatpush.bf16.msra.mxu1 %v7773_v51  ;;  %v7757_v32 = vor.u32 %v9276_v63, %v7756_v48  ;;  %v9246_v42 = vld [vmem:[#allocation7 + $0x22c] sm:$0xf]  ;;  %v7989_v22 = vor.u32 %v9079_v50, %v7988_v18  ;;  %v8117_v51 = vor.u32 %v9111_v1, %v8116_v52  ;;  %v9107_v48 = vld [vmem:[#allocation7 + $0x1cc] sm:$0xf0]  ;;  %v7974_v1 = vld [vmem:[#allocation7 + $0xd0] sm:$0xf0] }
 0x2fc   : > { %3359 = vmatmul.bf16.gmra.mxu2 %v10411_v44  ;;  %3384 = vmatmul.bf16.gmra.mxu3 %v10413_v60  ;;  %v9071_v30 = vld [vmem:[#allocation7 + $0xac] sm:$0xf0] }
 0x2fd   : > { %v9103_v50 = vld [vmem:[#allocation7 + $0x1ac] sm:$0xf0] }
 0x2fe   : > { %3965 = vmatpush.bf16.msra.mxu2 %v7665_v33  ;;  %3984 = vmatpush.bf16.msra.mxu3 %v7793_v54  ;;  %v7758_v33 = vld [vmem:[#allocation7 + $0x318] sm:$0xf0]  ;;  %v9075_v54 = vld [vmem:[#allocation7 + $0xcc] sm:$0xf0] }
 0x2ff   : > { %v3160_v38 = vpop.f32.mrf.mxu2  ;;  %v3185_v36 = vpop.f32.mrf.mxu3  ;;  %3929 = vmatpush.bf16.msra.mxu0 %v7629_v29  ;;  %3948 = vmatpush.bf16.msra.mxu1 %v7757_v32  ;;  %v7761_v40 = vor.u32 %v9274_v25, %v7758_v33  ;;  %v7990_v32 = vld [vmem:[#allocation7 + $0xf0] sm:$0xf0]  ;;  %v7940_v33 = vld [vmem:[#allocation7 + $0x80] sm:$0xf] }
 0x300   : > { %v3161_v55 = vadd.f32 %v3160_v38, %v3136_v59  ;;  %v7649_v59 = vor.u32 %v9246_v42, %v7646_v12  ;;  %v9109_v42 = vld [vmem:[#allocation7 + $0x1e4] sm:$0xf] }
 0x302   : > { %v10497_v24 = vadd.f32 %v3185_v36, %v3161_v55  ;;  %v3198_v45 = vpop.f32.mrf.mxu0  ;;  %v3223_v62 = vpop.f32.mrf.mxu1  ;;  %3966 = vmatpush.bf16.msra.mxu2 %v7649_v59  ;;  %3985 = vmatpush.bf16.msra.mxu3 %v7777_v41  ;;  %v7972_v55 = vld [vmem:[#allocation7 + $0xc0] sm:$0xf] }
 0x303   : > { %v3199_v39 = vadd.f32 %v3198_v45, %v10357_v11  ;;  %v7630_v11 = vld [vmem:[#allocation7 + $0x218] sm:$0xf0]  ;;  %v7973_v43 = vor.u32 %v9075_v54, %v7972_v55  ;;  %v8101_v45 = vor.u32 %v9107_v48, %v8100_v58  ;;  %v7956_v59 = vld [vmem:[#allocation7 + $0xa0] sm:$0xf]  ;;  %v9099_v58 = vld [vmem:[#allocation7 + $0x18c] sm:$0xf0] }
 0x304   : > { %v7633_v36 = vor.u32 %v9242_v6, %v7630_v11  ;;  %v8084_v41 = vld [vmem:[#allocation7 + $0x1a0] sm:$0xf]  ;;  %v7957_v18 = vor.u32 %v9071_v30, %v7956_v59  ;;  %v9063_v59 = vld [vmem:[#allocation7 + $0x6c] sm:$0xf0] }
 0x305   : > { %v3224_v10 = vadd.f32 %v3223_v62, %v3199_v39  ;;  %3854 = vmatmul.bf16.vlgmr.msrb.gmra.mxu0 %v10138_v56  ;;  %3873 = vmatmul.bf16.vlgmr.msrb.gmra.mxu1 %v10933_v16  ;;  %v9077_v62 = vld [vmem:[#allocation7 + $0xe4] sm:$0xf]  ;;  %v8121_v39 = vor.u32 %v9109_v42, %v8118_v49  ;;  %v8085_v52 = vor.u32 %v9103_v50, %v8084_v41  ;;  %v8068_v55 = vld [vmem:[#allocation7 + $0x180] sm:$0xf]  ;;  %v9095_v50 = vld [vmem:[#allocation7 + $0x16c] sm:$0xf0] }
 0x306   : > { %4334 = vmatpush.bf16.msrb.mxu0 %v7989_v22  ;;  %4353 = vmatpush.bf16.msrb.mxu1 %v8117_v51  ;;  %v7993_v12 = vor.u32 %v9077_v62, %v7990_v32  ;;  %v9073_v22 = vld [vmem:[#allocation7 + $0xc4] sm:$0xf]  ;;  %v7958_v62 = vld [vmem:[#allocation7 + $0xb0] sm:$0xf0]  ;;  %v8052_v30 = vld [vmem:[#allocation7 + $0x160] sm:$0xf] }
 0x307   : > { %v3162_v15 = vpop.f32.mrf.mxu2  ;;  %v3187_v38 = vpop.f32.mrf.mxu3  ;;  %3967 = vmatpush.bf16.msra.mxu2 %v7633_v36  ;;  %3986 = vmatpush.bf16.msra.mxu3 %v7761_v40  ;;  %v9105_v51 = vld [vmem:[#allocation7 + $0x1c4] sm:$0xf]  ;;  %v7977_v25 = vor.u32 %v9073_v22, %v7974_v1  ;;  %v9067_v40 = vld [vmem:[#allocation7 + $0x8c] sm:$0xf0]  ;;  %v7942_v1 = vld [vmem:[#allocation7 + $0x90] sm:$0xf0] }
 0x308   : > { %v8102_v15 = vld [vmem:[#allocation7 + $0x1d0] sm:$0xf0]  ;;  %v7941_v54 = vor.u32 %v9067_v40, %v7940_v33  ;;  %v9101_v32 = vld [vmem:[#allocation7 + $0x1a4] sm:$0xf]  ;;  %v8036_v33 = vld [vmem:[#allocation7 + $0x140] sm:$0xf] }
 0x309   : > { %v8105_v36 = vor.u32 %v9105_v51, %v8102_v15  ;;  %v9065_v22 = vld [vmem:[#allocation7 + $0x84] sm:$0xf] }
 0x30a   : > { %v3200_v29 = vpop.f32.mrf.mxu0  ;;  %v3225_v63 = vpop.f32.mrf.mxu1  ;;  %4335 = vmatpush.bf16.msrb.mxu0 %v7973_v43  ;;  %4354 = vmatpush.bf16.msrb.mxu1 %v8101_v45  ;;  %v9069_v45 = vld [vmem:[#allocation7 + $0xa4] sm:$0xf] }
 0x30b   : > { %v8069_v63 = vor.u32 %v9099_v58, %v8068_v55  ;;  %v9091_v55 = vld [vmem:[#allocation7 + $0x14c] sm:$0xf0] }
 0x30c   : > { %3892 = vmatmul.bf16.vlgmr.msrb.gmra.mxu2 %v10138_v56  ;;  %3911 = vmatmul.bf16.vlgmr.msrb.gmra.mxu3 %v10933_v16 }
 0x30d   : > { %4372 = vmatpush.bf16.msrb.mxu2 %v7993_v12  ;;  %4391 = vmatpush.bf16.msrb.mxu3 %v8121_v39  ;;  %v8086_v12 = vld [vmem:[#allocation7 + $0x1b0] sm:$0xf0]  ;;  %v7924_v39 = vld [vmem:[#allocation7 + $0x60] sm:$0xf] }
 0x30e   : > { %4336 = vmatpush.bf16.msrb.mxu0 %v7957_v18  ;;  %4355 = vmatpush.bf16.msrb.mxu1 %v8085_v52  ;;  %v8089_v49 = vor.u32 %v9101_v32, %v8086_v12  ;;  %v7925_v18 = vor.u32 %v9063_v59, %v7924_v39  ;;  %v8053_v52 = vor.u32 %v9095_v50, %v8052_v30  ;;  %v8054_v32 = vld [vmem:[#allocation7 + $0x170] sm:$0xf0]  ;;  %v9055_v12 = vld [vmem:[#allocation7 + $0x2c] sm:$0xf0] }
 0x30f   : > { %v3248_v6 = vpop.f32.mrf.mxu2  ;;  %v3273_v11 = vpop.f32.mrf.mxu3  ;;  %v9087_v59 = vld [vmem:[#allocation7 + $0x12c] sm:$0xf0]  ;;  %v7910_v50 = vld [vmem:[#allocation7 + $0x50] sm:$0xf0] }
 0x310   : > { %v3249_v38 = vadd.f32 %v3248_v6, %v3224_v10  ;;  %v7961_v10 = vor.u32 %v9069_v45, %v7958_v62  ;;  %v9093_v45 = vld [vmem:[#allocation7 + $0x164] sm:$0xf] }
 0x311   : > { %4373 = vmatpush.bf16.msrb.mxu2 %v7977_v25  ;;  %4392 = vmatpush.bf16.msrb.mxu3 %v8105_v36  ;;  %v8070_v25 = vld [vmem:[#allocation7 + $0x190] sm:$0xf0]  ;;  %v9059_v36 = vld [vmem:[#allocation7 + $0x4c] sm:$0xf0] }
 0x312   : > { %v10504_v43 = vadd.f32 %v3273_v11, %v3249_v38  ;;  %v3202_v48 = vpop.f32.mrf.mxu0  ;;  %v3227_v29 = vpop.f32.mrf.mxu1  ;;  %4337 = vmatpush.bf16.msrb.mxu0 %v7941_v54  ;;  %4356 = vmatpush.bf16.msrb.mxu1 %v8069_v63  ;;  %v7945_v11 = vor.u32 %v9065_v22, %v7942_v1  ;;  %v7908_v38 = vld [vmem:[#allocation7 + $0x40] sm:$0xf]  ;;  %v7926_v63 = vld [vmem:[#allocation7 + $0x70] sm:$0xf0] }
 0x313   : > { %v3203_v42 = vadd.f32 %v3202_v48, %v10379_v7  ;;  %v9097_v7 = vld [vmem:[#allocation7 + $0x184] sm:$0xf]  ;;  %v7909_v40 = vor.u32 %v9059_v36, %v7908_v38  ;;  %v8037_v48 = vor.u32 %v9091_v55, %v8036_v33  ;;  %v8004_v38 = vld [vmem:[#allocation7 + $0x100] sm:$0xf]  ;;  %v9083_v33 = vld [vmem:[#allocation7 + $0x10c] sm:$0xf0] }
 0x314   : > { %v8073_v15 = vor.u32 %v9097_v7, %v8070_v25  ;;  %v7876_v25 = vld [vmem:[#allocation7] sm:$0xf] }
 0x315   : > { %v3228_v41 = vadd.f32 %v3227_v29, %v3203_v42  ;;  %3859 = vmatmul.bf16.gmra.mxu0 %v10236_v14  ;;  %3878 = vmatmul.bf16.gmra.mxu1 %v10238_v5  ;;  %v9061_v29 = vld [vmem:[#allocation7 + $0x64] sm:$0xf]  ;;  %v8057_v42 = vor.u32 %v9093_v45, %v8054_v32 }
 0x316   : > { %4374 = vmatpush.bf16.msrb.mxu2 %v7961_v10  ;;  %4393 = vmatpush.bf16.msrb.mxu3 %v8089_v49  ;;  %v7929_v62 = vor.u32 %v9061_v29, %v7926_v63  ;;  %v7892_v10 = vld [vmem:[#allocation7 + $0x20] sm:$0xf]  ;;  %v7894_v29 = vld [vmem:[#allocation7 + $0x30] sm:$0xf0]  ;;  %v9085_v63 = vld [vmem:[#allocation7 + $0x124] sm:$0xf] }
 0x317   : > { %v3250_v51 = vpop.f32.mrf.mxu2  ;;  %v3275_v6 = vpop.f32.mrf.mxu3  ;;  %4338 = vmatpush.bf16.msrb.mxu0 %v7925_v18  ;;  %4357 = vmatpush.bf16.msrb.mxu1 %v8053_v52  ;;  %v8020_v49 = vld [vmem:[#allocation7 + $0x120] sm:$0xf]  ;;  %v7893_v39 = vor.u32 %v9055_v12, %v7892_v10  ;;  %v9057_v18 = vld [vmem:[#allocation7 + $0x44] sm:$0xf]  ;;  %v9080_v10 = vld [vmem:[#allocation7 + $0xf4] sm:$0xf0] }
 0x318   : > { %v8021_v30 = vor.u32 %v9087_v59, %v8020_v49  ;;  %v9089_v52 = vld [vmem:[#allocation7 + $0x144] sm:$0xf]  ;;  %v7913_v7 = vor.u32 %v9057_v18, %v7910_v50  ;;  %v8038_v51 = vld [vmem:[#allocation7 + $0x150] sm:$0xf0]  ;;  %v8124_v12 = vld [vmem:[#allocation7 + $0x1e8] sm:$0xf] }
 0x319   : > { %v9112_v59 = vld [vmem:[#allocation7 + $0x1f4] sm:$0xf0]  ;;  %v9049_v18 = vld [vmem:[#allocation7 + $0x4] sm:$0xf] }
 0x31a   : > { %v3204_v54 = vpop.f32.mrf.mxu0  ;;  %v3229_v58 = vpop.f32.mrf.mxu1  ;;  %4375 = vmatpush.bf16.msrb.mxu2 %v7945_v11  ;;  %4394 = vmatpush.bf16.msrb.mxu3 %v8073_v15  ;;  %v8041_v11 = vor.u32 %v9089_v52, %v8038_v51  ;;  %v9051_v15 = vld [vmem:[#allocation7 + $0xc] sm:$0xf0]  ;;  %v9081_v50 = vld [vmem:[#allocation7 + $0x104] sm:$0xf] }
 0x31b   : > { %4339 = vmatpush.bf16.msrb.mxu0 %v7909_v40  ;;  %4358 = vmatpush.bf16.msrb.mxu1 %v8037_v48  ;;  %v7877_v36 = vor.u32 %v9051_v15, %v7876_v25  ;;  %v8005_v58 = vor.u32 %v9083_v33, %v8004_v38  ;;  %v9053_v48 = vld [vmem:[#allocation7 + $0x24] sm:$0xf]  ;;  %v8108_v25 = vld [vmem:[#allocation7 + $0x1c8] sm:$0xf]  ;;  %v9108_v38 = vld [vmem:[#allocation7 + $0x1d4] sm:$0xf0] }
 0x31c   : > { %3897 = vmatmul.bf16.gmra.mxu2 %v10236_v14  ;;  %3916 = vmatmul.bf16.gmra.mxu3 %v10238_v5 }
 0x31e   : > { %4376 = vmatpush.bf16.msrb.mxu2 %v7929_v62  ;;  %4395 = vmatpush.bf16.msrb.mxu3 %v8057_v42  ;;  %v8022_v62 = vld [vmem:[#allocation7 + $0x130] sm:$0xf0]  ;;  %v7996_v42 = vld [vmem:[#allocation7 + $0xe8] sm:$0xf] }
 0x31f   : > { %v3252_v22 = vpop.f32.mrf.mxu2  ;;  %v3277_v1 = vpop.f32.mrf.mxu3  ;;  %4340 = vmatpush.bf16.msrb.mxu0 %v7893_v39  ;;  %4359 = vmatpush.bf16.msrb.mxu1 %v8021_v30  ;;  %v8025_v32 = vor.u32 %v9085_v63, %v8022_v62  ;;  %v7997_v39 = vor.u32 %v9080_v10, %v7996_v42  ;;  %v8125_v30 = vor.u32 %v9112_v59, %v8124_v12  ;;  %v8126_v63 = vld [vmem:[#allocation7 + $0x1f8] sm:$0xf0]  ;;  %v9072_v62 = vld [vmem:[#allocation7 + $0xb4] sm:$0xf0] }
 0x320   : > { %v3253_v6 = vadd.f32 %v3252_v22, %v3228_v41  ;;  %v7897_v41 = vor.u32 %v9053_v48, %v7894_v29  ;;  %v9110_v48 = vld [vmem:[#allocation7 + $0x1ec] sm:$0xf]  ;;  %v9104_v10 = vld [vmem:[#allocation7 + $0x1b4] sm:$0xf0]  ;;  %v7982_v59 = vld [vmem:[#allocation7 + $0xd8] sm:$0xf0] }
 0x322   : > { %v10511_v40 = vadd.f32 %v3277_v1, %v3253_v6  ;;  %v3206_v55 = vpop.f32.mrf.mxu0  ;;  %v3231_v54 = vpop.f32.mrf.mxu1  ;;  %4377 = vmatpush.bf16.msrb.mxu2 %v7913_v7  ;;  %4396 = vmatpush.bf16.msrb.mxu3 %v8041_v11  ;;  %v8006_v7 = vld [vmem:[#allocation7 + $0x110] sm:$0xf0]  ;;  %v7980_v6 = vld [vmem:[#allocation7 + $0xc8] sm:$0xf]  ;;  %v9076_v11 = vld [vmem:[#allocation7 + $0xd4] sm:$0xf0] }
 0x323   : > { %v3207_v45 = vadd.f32 %v3206_v55, %v10401_v17  ;;  %4341 = vmatpush.bf16.msrb.mxu0 %v7877_v36  ;;  %4360 = vmatpush.bf16.msrb.mxu1 %v8005_v58  ;;  %v7878_v17 = vld [vmem:[#allocation7 + $0x10] sm:$0xf0]  ;;  %v8009_v51 = vor.u32 %v9081_v50, %v8006_v7  ;;  %v7981_v15 = vor.u32 %v9076_v11, %v7980_v6  ;;  %v7998_v58 = vld [vmem:[#allocation7 + $0xf8] sm:$0xf0]  ;;  %v8076_v7 = vld [vmem:[#allocation7 + $0x188] sm:$0xf] }
 0x324   : > { %v7881_v1 = vor.u32 %v9049_v18, %v7878_v17  ;;  %v8109_v55 = vor.u32 %v9108_v38, %v8108_v25  ;;  %v9100_v6 = vld [vmem:[#allocation7 + $0x194] sm:$0xf0] }
 0x325   : > { %v3232_v49 = vadd.f32 %v3231_v54, %v3207_v45  ;;  %3930 = vmatmul.bf16.vlgmr.msra.gmra.mxu0 %v10138_v56  ;;  %3949 = vmatmul.bf16.vlgmr.msra.gmra.mxu1 %v10933_v16  ;;  %v9078_v54 = vld [vmem:[#allocation7 + $0xec] sm:$0xf]  ;;  %v8129_v45 = vor.u32 %v9110_v48, %v8126_v63  ;;  %v8077_v38 = vor.u32 %v9100_v6, %v8076_v7  ;;  %v9064_v63 = vld [vmem:[#allocation7 + $0x74] sm:$0xf0] }
 0x326   : > { %4378 = vmatpush.bf16.msrb.mxu2 %v7897_v41  ;;  %4397 = vmatpush.bf16.msrb.mxu3 %v8025_v32  ;;  %v8001_v29 = vor.u32 %v9078_v54, %v7998_v58  ;;  %v7964_v41 = vld [vmem:[#allocation7 + $0xa8] sm:$0xf]  ;;  %v8094_v58 = vld [vmem:[#allocation7 + $0x1b8] sm:$0xf0]  ;;  %v9062_v6 = vld [vmem:[#allocation7 + $0x6c] sm:$0xf] }
 0x327   : > { %v3254_v52 = vpop.f32.mrf.mxu2  ;;  %v3279_v22 = vpop.f32.mrf.mxu3  ;;  %4410 = vmatpush.bf16.msra.mxu0 %v7997_v39  ;;  %4429 = vmatpush.bf16.msra.mxu1 %v8125_v30  ;;  %v8092_v32 = vld [vmem:[#allocation7 + $0x1a8] sm:$0xf]  ;;  %v7965_v42 = vor.u32 %v9072_v62, %v7964_v41  ;;  %v9074_v39 = vld [vmem:[#allocation7 + $0xcc] sm:$0xf] }
 0x328   : > { %v8093_v12 = vor.u32 %v9104_v10, %v8092_v32  ;;  %v9106_v30 = vld [vmem:[#allocation7 + $0x1cc] sm:$0xf]  ;;  %v7985_v50 = vor.u32 %v9074_v39, %v7982_v59  ;;  %v7948_v22 = vld [vmem:[#allocation7 + $0x88] sm:$0xf]  ;;  %v9096_v32 = vld [vmem:[#allocation7 + $0x174] sm:$0xf0] }
 0x329   : > { %v9066_v10 = vld [vmem:[#allocation7 + $0x8c] sm:$0xf] }
 0x32a   : > { %v3208_v36 = vpop.f32.mrf.mxu0  ;;  %v3233_v33 = vpop.f32.mrf.mxu1  ;;  %4379 = vmatpush.bf16.msrb.mxu2 %v7881_v1  ;;  %4398 = vmatpush.bf16.msrb.mxu3 %v8009_v51  ;;  %v9068_v1 = vld [vmem:[#allocation7 + $0x94] sm:$0xf0] }
 0x32b   : > { %4411 = vmatpush.bf16.msra.mxu0 %v7981_v15  ;;  %4430 = vmatpush.bf16.msra.mxu1 %v8109_v55  ;;  %v7949_v51 = vor.u32 %v9068_v1, %v7948_v22  ;;  %v9070_v36 = vld [vmem:[#allocation7 + $0xac] sm:$0xf]  ;;  %v7966_v33 = vld [vmem:[#allocation7 + $0xb8] sm:$0xf0]  ;;  %v9092_v22 = vld [vmem:[#allocation7 + $0x154] sm:$0xf0] }
 0x32c   : > { %3968 = vmatmul.bf16.vlgmr.msra.gmra.mxu2 %v10138_v56  ;;  %3987 = vmatmul.bf16.vlgmr.msra.gmra.mxu3 %v10933_v16  ;;  %v8110_v56 = vld [vmem:[#allocation7 + $0x1d8] sm:$0xf0]  ;;  %v9102_v55 = vld [vmem:[#allocation7 + $0x1ac] sm:$0xf] }
 0x32d   : > { %v8113_v16 = vor.u32 %v9106_v30, %v8110_v56  ;;  %v8097_v48 = vor.u32 %v9102_v55, %v8094_v58  ;;  %v9060_v56 = vld [vmem:[#allocation7 + $0x54] sm:$0xf0]  ;;  %v7900_v55 = vld [vmem:[#allocation7 + $0x28] sm:$0xf] }
 0x32e   : > { %4448 = vmatpush.bf16.msra.mxu2 %v8001_v29  ;;  %4467 = vmatpush.bf16.msra.mxu3 %v8129_v45  ;;  %v7932_v29 = vld [vmem:[#allocation7 + $0x68] sm:$0xf] }
 0x32f   : > { %v3256_v18 = vpop.f32.mrf.mxu2  ;;  %v3281_v17 = vpop.f32.mrf.mxu3  ;;  %4412 = vmatpush.bf16.msra.mxu0 %v7965_v42  ;;  %4431 = vmatpush.bf16.msra.mxu1 %v8093_v12  ;;  %v8060_v45 = vld [vmem:[#allocation7 + $0x168] sm:$0xf]  ;;  %v7933_v62 = vor.u32 %v9064_v63, %v7932_v29  ;;  %v7950_v12 = vld [vmem:[#allocation7 + $0x98] sm:$0xf0]  ;;  %v9058_v63 = vld [vmem:[#allocation7 + $0x4c] sm:$0xf] }
 0x330   : > { %v3257_v52 = vadd.f32 %v3256_v18, %v3232_v49  ;;  %v7969_v49 = vor.u32 %v9070_v36, %v7966_v33  ;;  %v8061_v42 = vor.u32 %v9096_v32, %v8060_v45  ;;  %v7953_v30 = vor.u32 %v9066_v10, %v7950_v12  ;;  %v8078_v18 = vld [vmem:[#allocation7 + $0x198] sm:$0xf0] }
 0x331   : > { %v8062_v36 = vld [vmem:[#allocation7 + $0x178] sm:$0xf0] }
 0x332   : > { %4449 = vmatpush.bf16.msra.mxu2 %v7985_v50  ;;  %v10518_v11 = vadd.f32 %v3281_v17, %v3257_v52  ;;  %v3210_v25 = vpop.f32.mrf.mxu0  ;;  %v3235_v15 = vpop.f32.mrf.mxu1  ;;  %4468 = vmatpush.bf16.msra.mxu3 %v8113_v16  ;;  %v7916_v50 = vld [vmem:[#allocation7 + $0x48] sm:$0xf]  ;;  %v7918_v45 = vld [vmem:[#allocation7 + $0x58] sm:$0xf0] }
 0x333   : > { %v3211_v54 = vadd.f32 %v3210_v25, %v10417_v31  ;;  %4413 = vmatpush.bf16.msra.mxu0 %v7949_v51  ;;  %4432 = vmatpush.bf16.msra.mxu1 %v8077_v38  ;;  %v9098_v31 = vld [vmem:[#allocation7 + $0x18c] sm:$0xf]  ;;  %v8044_v52 = vld [vmem:[#allocation7 + $0x148] sm:$0xf]  ;;  %v7917_v16 = vor.u32 %v9060_v56, %v7916_v50  ;;  %v7934_v25 = vld [vmem:[#allocation7 + $0x78] sm:$0xf0]  ;;  %v7921_v10 = vor.u32 %v9058_v63, %v7918_v45 }
 0x334   : > { %v8081_v17 = vor.u32 %v9098_v31, %v8078_v18  ;;  %v8045_v51 = vor.u32 %v9092_v22, %v8044_v52  ;;  %v7937_v38 = vor.u32 %v9062_v6, %v7934_v25  ;;  %v7884_v31 = vld [vmem:[#allocation7 + $0x8] sm:$0xf]  ;;  %v9084_v18 = vld [vmem:[#allocation7 + $0x114] sm:$0xf0]  ;;  %v7902_v22 = vld [vmem:[#allocation7 + $0x38] sm:$0xf0] }
 0x335   : > { %v3236_v41 = vadd.f32 %v3235_v15, %v3211_v54  ;;  %3935 = vmatmul.bf16.gmra.mxu0 %v10236_v14  ;;  %3954 = vmatmul.bf16.gmra.mxu1 %v10238_v5  ;;  %v9094_v15 = vld [vmem:[#allocation7 + $0x16c] sm:$0xf]  ;;  %v9056_v54 = vld [vmem:[#allocation7 + $0x34] sm:$0xf0]  ;;  %v8244_v25 = vld [vmem:[#allocation5 + $0x8e0] sm:$0xf] }
 0x336   : > { %4450 = vmatpush.bf16.msra.mxu2 %v7969_v49  ;;  %4469 = vmatpush.bf16.msra.mxu3 %v8097_v48  ;;  %v8065_v33 = vor.u32 %v9094_v15, %v8062_v36  ;;  %v8028_v49 = vld [vmem:[#allocation7 + $0x128] sm:$0xf]  ;;  %v7901_v58 = vor.u32 %v9056_v54, %v7900_v55  ;;  %v9088_v48 = vld [vmem:[#allocation7 + $0x134] sm:$0xf0]  ;;  %v9335_v15 = vld [vmem:[#allocation5 + $0x8ec] sm:$0xf0] }
 0x337   : > { %v3258_v39 = vpop.f32.mrf.mxu2  ;;  %v3283_v59 = vpop.f32.mrf.mxu3  ;;  %4414 = vmatpush.bf16.msra.mxu0 %v7933_v62  ;;  %4433 = vmatpush.bf16.msra.mxu1 %v8061_v42  ;;  %v8029_v29 = vor.u32 %v9088_v48, %v8028_v49  ;;  %v9090_v62 = vld [vmem:[#allocation7 + $0x14c] sm:$0xf]  ;;  %v8245_v54 = vor.u32 %v9335_v15, %v8244_v25  ;;  %v9367_v49 = vld [vmem:[#allocation5 + $0x9ec] sm:$0xf0]  ;;  %v8484_v15 = vld [vmem:[#allocation5 + $0xac0] sm:$0xf] }
 0x338   : > { %v9052_v39 = vld [vmem:[#allocation7 + $0x14] sm:$0xf0]  ;;  %v8012_v59 = vld [vmem:[#allocation7 + $0x108] sm:$0xf]  ;;  %v10935_v55 = vld [vmem:[#allocation21_spill] sm:$0xff] }
 0x339   : > { %v8013_v52 = vor.u32 %v9084_v18, %v8012_v59  ;;  %v9050_v48 = vld [vmem:[#allocation7 + $0xc] sm:$0xf]  ;;  %v8500_v18 = vld [vmem:[#allocation5 + $0xae0] sm:$0xf] }
 0x33a   : > { %v3212_v1 = vpop.f32.mrf.mxu0  ;;  %v3237_v7 = vpop.f32.mrf.mxu1  ;;  %4451 = vmatpush.bf16.msra.mxu2 %v7953_v30  ;;  %4470 = vmatpush.bf16.msra.mxu3 %v8081_v17  ;;  %v7885_v30 = vor.u32 %v9052_v39, %v7884_v31  ;;  %v9363_v31 = vld [vmem:[#allocation5 + $0x9cc] sm:$0xf0] }
 0x33b   : > { %4415 = vmatpush.bf16.msra.mxu0 %v7917_v16  ;;  %4434 = vmatpush.bf16.msra.mxu1 %v8045_v51  ;;  %v9054_v16 = vld [vmem:[#allocation7 + $0x2c] sm:$0xf]  ;;  %v8030_v51 = vld [vmem:[#allocation7 + $0x138] sm:$0xf0] }
 0x33c   : > { %3973 = vmatmul.bf16.gmra.mxu2 %v10236_v14  ;;  %3992 = vmatmul.bf16.gmra.mxu3 %v10238_v5  ;;  %v8046_v14 = vld [vmem:[#allocation7 + $0x158] sm:$0xf0]  ;;  %v9086_v1 = vld [vmem:[#allocation7 + $0x12c] sm:$0xf] }
 0x33d   : > { %v8049_v5 = vor.u32 %v9090_v62, %v8046_v14  ;;  %v8033_v6 = vor.u32 %v9086_v1, %v8030_v51  ;;  %v9331_v14 = vld [vmem:[#allocation5 + $0x8cc] sm:$0xf0]  ;;  %v8212_v1 = vld [vmem:[#allocation5 + $0x8a0] sm:$0xf] }
 0x33e   : > { %4452 = vmatpush.bf16.msra.mxu2 %v7937_v38  ;;  %4471 = vmatpush.bf16.msra.mxu3 %v8065_v33  ;;  %v8372_v38 = vld [vmem:[#allocation5 + $0x9e0] sm:$0xf]  ;;  %v10934_v33 = vld [vmem:[#allocation20_spill] sm:$0xff] }
 0x33f   : > { %v3260_v32 = vpop.f32.mrf.mxu2  ;;  %v3285_v42 = vpop.f32.mrf.mxu3  ;;  %4416 = vmatpush.bf16.msra.mxu0 %v7901_v58  ;;  %4435 = vmatpush.bf16.msra.mxu1 %v8029_v29  ;;  %v8373_v58 = vor.u32 %v9367_v49, %v8372_v38  ;;  %v9082_v29 = vld [vmem:[#allocation7 + $0x10c] sm:$0xf]  ;;  %v9395_v38 = vld [vmem:[#allocation5 + $0xacc] sm:$0xf0] }
 0x340   : > { %v3261_v12 = vadd.f32 %v3260_v32, %v3236_v41  ;;  %v7905_v41 = vor.u32 %v9054_v16, %v7902_v22  ;;  %v8014_v32 = vld [vmem:[#allocation7 + $0x118] sm:$0xf0]  ;;  %v9431_v16 = vld [vmem:[#allocation5 + $0xbec] sm:$0xf0] }
 0x342   : > { %v10525_v17 = vadd.f32 %v3285_v42, %v3261_v12  ;;  %v3298_v50 = vpop.f32.mrf.mxu0  ;;  %v3323_v56 = vpop.f32.mrf.mxu1  ;;  %4453 = vmatpush.bf16.msra.mxu2 %v7921_v10  ;;  %4472 = vmatpush.bf16.msra.mxu3 %v8049_v5  ;;  %v8017_v42 = vor.u32 %v9082_v29, %v8014_v32  ;;  %v8228_v10 = vld [vmem:[#allocation5 + $0x8c0] sm:$0xf] }
 0x343   : > { %v3299_v7 = vadd.f32 %v3298_v50, %v10423_v23  ;;  %4417 = vmatpush.bf16.msra.mxu0 %v7885_v30  ;;  %4436 = vmatpush.bf16.msra.mxu1 %v8013_v52  ;;  %v7886_v23 = vld [vmem:[#allocation7 + $0x18] sm:$0xf0]  ;;  %v8356_v12 = vld [vmem:[#allocation5 + $0x9c0] sm:$0xf]  ;;  %v8229_v5 = vor.u32 %v9331_v14, %v8228_v10  ;;  %v9399_v50 = vld [vmem:[#allocation5 + $0xaec] sm:$0xf0] }
 0x344   : > { %v7889_v62 = vor.u32 %v9050_v48, %v7886_v23  ;;  %v8357_v30 = vor.u32 %v9363_v31, %v8356_v12  ;;  %v8501_v52 = vor.u32 %v9399_v50, %v8500_v18  ;;  %v8485_v48 = vor.u32 %v9395_v38, %v8484_v15  ;;  %v9427_v23 = vld [vmem:[#allocation5 + $0xbcc] sm:$0xf0]  ;;  %v8324_v32 = vld [vmem:[#allocation5 + $0x980] sm:$0xf] }
 0x345   : > { %v3324_v36 = vadd.f32 %v3323_v56, %v3299_v7  ;;  %4342 = vmatmul.bf16.vlgmr.msrb.gmra.mxu0 %v10934_v33  ;;  %4361 = vmatmul.bf16.vlgmr.msrb.gmra.mxu1 %v10935_v55  ;;  %v8628_v56 = vld [vmem:[#allocation5 + $0xbe0] sm:$0xf]  ;;  %v9327_v7 = vld [vmem:[#allocation5 + $0x8ac] sm:$0xf0] }
 0x346   : > { %4454 = vmatpush.bf16.msra.mxu2 %v7905_v41  ;;  %4473 = vmatpush.bf16.msra.mxu3 %v8033_v6  ;;  %v8629_v22 = vor.u32 %v9431_v16, %v8628_v56  ;;  %v8340_v41 = vld [vmem:[#allocation5 + $0x9a0] sm:$0xf]  ;;  %v8213_v51 = vor.u32 %v9327_v7, %v8212_v1  ;;  %v9359_v6 = vld [vmem:[#allocation5 + $0x9ac] sm:$0xf0] }
 0x347   : > { %v3262_v63 = vpop.f32.mrf.mxu2  ;;  %v3287_v45 = vpop.f32.mrf.mxu3  ;;  %5275 = vmatpush.bf16.msrb.mxu0 %v8245_v54  ;;  %5300 = vmatpush.bf16.msrb.mxu1 %v8373_v58  ;;  %v8341_v25 = vor.u32 %v9359_v6, %v8340_v41  ;;  %v8612_v54 = vld [vmem:[#allocation5 + $0xbc0] sm:$0xf]  ;;  %v9355_v10 = vld [vmem:[#allocation5 + $0x98c] sm:$0xf0]  ;;  %v10937_v41 = vld [vmem:[#allocation26_spill] sm:$0xff] }
 0x348   : > { %v8613_v63 = vor.u32 %v9427_v23, %v8612_v54  ;;  %v8196_v45 = vld [vmem:[#allocation5 + $0x880] sm:$0xf]  ;;  %v8325_v31 = vor.u32 %v9355_v10, %v8324_v32  ;;  %v9423_v50 = vld [vmem:[#allocation5 + $0xbac] sm:$0xf0] }
 0x349   : > { %v9319_v16 = vld [vmem:[#allocation5 + $0x86c] sm:$0xf0]  ;;  %v8452_v15 = vld [vmem:[#allocation5 + $0xa80] sm:$0xf] }
 0x34a   : > { %v3300_v39 = vpop.f32.mrf.mxu0  ;;  %v3325_v59 = vpop.f32.mrf.mxu1  ;;  %4455 = vmatpush.bf16.msra.mxu2 %v7889_v62  ;;  %4474 = vmatpush.bf16.msra.mxu3 %v8017_v42  ;;  %v9323_v62 = vld [vmem:[#allocation5 + $0x88c] sm:$0xf0] }
 0x34b   : > { %5276 = vmatpush.bf16.msrb.mxu0 %v8229_v5  ;;  %5301 = vmatpush.bf16.msrb.mxu1 %v8357_v30  ;;  %v8197_v42 = vor.u32 %v9323_v62, %v8196_v45  ;;  %v8468_v39 = vld [vmem:[#allocation5 + $0xaa0] sm:$0xf]  ;;  %v9391_v59 = vld [vmem:[#allocation5 + $0xaac] sm:$0xf0] }
 0x34c   : > { %4380 = vmatmul.bf16.vlgmr.msrb.gmra.mxu2 %v10934_v33  ;;  %4399 = vmatmul.bf16.vlgmr.msrb.gmra.mxu3 %v10935_v55  ;;  %v8596_v30 = vld [vmem:[#allocation5 + $0xba0] sm:$0xf]  ;;  %v10936_v7 = vld [vmem:[#allocation25_spill] sm:$0xff] }
 0x34d   : > { %v8597_v56 = vor.u32 %v9423_v50, %v8596_v30  ;;  %v9351_v6 = vld [vmem:[#allocation5 + $0x96c] sm:$0xf0]  ;;  %v8292_v45 = vld [vmem:[#allocation5 + $0x940] sm:$0xf] }
 0x34e   : > { %5325 = vmatpush.bf16.msrb.mxu2 %v8501_v52  ;;  %5350 = vmatpush.bf16.msrb.mxu3 %v8629_v22  ;;  %v8180_v52 = vld [vmem:[#allocation5 + $0x860] sm:$0xf]  ;;  %v9387_v38 = vld [vmem:[#allocation5 + $0xa8c] sm:$0xf0] }
 0x34f   : > { %v3348_v49 = vpop.f32.mrf.mxu2  ;;  %v3373_v58 = vpop.f32.mrf.mxu3  ;;  %5277 = vmatpush.bf16.msrb.mxu0 %v8213_v51  ;;  %5302 = vmatpush.bf16.msrb.mxu1 %v8341_v25  ;;  %v8308_v22 = vld [vmem:[#allocation5 + $0x960] sm:$0xf]  ;;  %v8181_v51 = vor.u32 %v9319_v16, %v8180_v52  ;;  %v9347_v32 = vld [vmem:[#allocation5 + $0x94c] sm:$0xf0] }
 0x350   : > { %v3349_v29 = vadd.f32 %v3348_v49, %v3324_v36  ;;  %v8469_v36 = vor.u32 %v9391_v59, %v8468_v39  ;;  %v8309_v25 = vor.u32 %v9351_v6, %v8308_v22  ;;  %v8564_v39 = vld [vmem:[#allocation5 + $0xb60] sm:$0xf]  ;;  %v9415_v30 = vld [vmem:[#allocation5 + $0xb6c] sm:$0xf0] }
 0x351   : > { %v9311_v50 = vld [vmem:[#allocation5 + $0x82c] sm:$0xf0] }
 0x352   : > { %5326 = vmatpush.bf16.msrb.mxu2 %v8485_v48  ;;  %v10532_v14 = vadd.f32 %v3373_v58, %v3349_v29  ;;  %v3302_v12 = vpop.f32.mrf.mxu0  ;;  %v3327_v5 = vpop.f32.mrf.mxu1  ;;  %5351 = vmatpush.bf16.msrb.mxu3 %v8613_v63  ;;  %v8453_v58 = vor.u32 %v9387_v38, %v8452_v15  ;;  %v9419_v48 = vld [vmem:[#allocation5 + $0xb8c] sm:$0xf0]  ;;  %v8164_v29 = vld [vmem:[#allocation5 + $0x840] sm:$0xf] }
 0x353   : > { %v3303_v18 = vadd.f32 %v3302_v12, %v10429_v61  ;;  %5278 = vmatpush.bf16.msrb.mxu0 %v8197_v42  ;;  %5303 = vmatpush.bf16.msrb.mxu1 %v8325_v31  ;;  %v8580_v61 = vld [vmem:[#allocation5 + $0xb80] sm:$0xf]  ;;  %v9315_v63 = vld [vmem:[#allocation5 + $0x84c] sm:$0xf0]  ;;  %v8293_v12 = vor.u32 %v9347_v32, %v8292_v45 }
 0x354   : > { %v8581_v23 = vor.u32 %v9419_v48, %v8580_v61  ;;  %v8165_v62 = vor.u32 %v9315_v63, %v8164_v29  ;;  %v9383_v31 = vld [vmem:[#allocation5 + $0xa6c] sm:$0xf0]  ;;  %v8132_v48 = vld [vmem:[#allocation5 + $0x800] sm:$0xf] }
 0x355   : > { %v3328_v1 = vadd.f32 %v3327_v5, %v3303_v18  ;;  %4347 = vmatmul.bf16.gmra.mxu0 %v10936_v7  ;;  %4366 = vmatmul.bf16.gmra.mxu1 %v10937_v41  ;;  %v8436_v5 = vld [vmem:[#allocation5 + $0xa60] sm:$0xf]  ;;  %v8565_v18 = vor.u32 %v9415_v30, %v8564_v39  ;;  %v9343_v16 = vld [vmem:[#allocation5 + $0x92c] sm:$0xf0] }
 0x356   : > { %5327 = vmatpush.bf16.msrb.mxu2 %v8469_v36  ;;  %5352 = vmatpush.bf16.msrb.mxu3 %v8597_v56  ;;  %v8437_v59 = vor.u32 %v9383_v31, %v8436_v5  ;;  %v8148_v36 = vld [vmem:[#allocation5 + $0x820] sm:$0xf]  ;;  %v9379_v6 = vld [vmem:[#allocation5 + $0xa4c] sm:$0xf0] }
 0x357   : > { %v3350_v54 = vpop.f32.mrf.mxu2  ;;  %v3375_v49 = vpop.f32.mrf.mxu3  ;;  %5279 = vmatpush.bf16.msrb.mxu0 %v8181_v51  ;;  %5304 = vmatpush.bf16.msrb.mxu1 %v8309_v25  ;;  %v8276_v56 = vld [vmem:[#allocation5 + $0x920] sm:$0xf]  ;;  %v8149_v52 = vor.u32 %v9311_v50, %v8148_v36  ;;  %v9339_v45 = vld [vmem:[#allocation5 + $0x90c] sm:$0xf0] }
 0x358   : > { %v8277_v22 = vor.u32 %v9343_v16, %v8276_v56  ;;  %v8420_v51 = vld [vmem:[#allocation5 + $0xa40] sm:$0xf]  ;;  %v9411_v54 = vld [vmem:[#allocation5 + $0xb4c] sm:$0xf0] }
 0x359   : > { %v8548_v25 = vld [vmem:[#allocation5 + $0xb40] sm:$0xf]  ;;  %v8421_v61 = vor.u32 %v9379_v6, %v8420_v51  ;;  %v9375_v5 = vld [vmem:[#allocation5 + $0xa2c] sm:$0xf0] }
 0x35a   : > { %v3304_v42 = vpop.f32.mrf.mxu0  ;;  %v3329_v10 = vpop.f32.mrf.mxu1  ;;  %5328 = vmatpush.bf16.msrb.mxu2 %v8453_v58  ;;  %5353 = vmatpush.bf16.msrb.mxu3 %v8581_v23  ;;  %v8549_v58 = vor.u32 %v9411_v54, %v8548_v25  ;;  %v9307_v23 = vld [vmem:[#allocation5 + $0x80c] sm:$0xf0]  ;;  %v8260_v29 = vld [vmem:[#allocation5 + $0x900] sm:$0xf] }
 0x35b   : > { %5280 = vmatpush.bf16.msrb.mxu0 %v8165_v62  ;;  %5305 = vmatpush.bf16.msrb.mxu1 %v8293_v12  ;;  %v8133_v63 = vor.u32 %v9307_v23, %v8132_v48  ;;  %v8261_v10 = vor.u32 %v9339_v45, %v8260_v29  ;;  %v8404_v12 = vld [vmem:[#allocation5 + $0xa20] sm:$0xf]  ;;  %v9371_v50 = vld [vmem:[#allocation5 + $0xa0c] sm:$0xf0]  ;;  %v8246_v45 = vld [vmem:[#allocation5 + $0x8f0] sm:$0xf0] }
 0x35c   : > { %4385 = vmatmul.bf16.gmra.mxu2 %v10936_v7  ;;  %4404 = vmatmul.bf16.gmra.mxu3 %v10937_v41  ;;  %v8532_v31 = vld [vmem:[#allocation5 + $0xb20] sm:$0xf] }
 0x35d   : > { %v8388_v36 = vld [vmem:[#allocation5 + $0xa00] sm:$0xf] }
 0x35e   : > { %5329 = vmatpush.bf16.msrb.mxu2 %v8437_v59  ;;  %5354 = vmatpush.bf16.msrb.mxu3 %v8565_v18  ;;  %v9407_v59 = vld [vmem:[#allocation5 + $0xb2c] sm:$0xf0]  ;;  %v8516_v56 = vld [vmem:[#allocation5 + $0xb00] sm:$0xf] }
 0x35f   : > { %v3352_v15 = vpop.f32.mrf.mxu2  ;;  %v3377_v38 = vpop.f32.mrf.mxu3  ;;  %5281 = vmatpush.bf16.msrb.mxu0 %v8149_v52  ;;  %5306 = vmatpush.bf16.msrb.mxu1 %v8277_v22  ;;  %v8533_v30 = vor.u32 %v9407_v59, %v8532_v31  ;;  %v8389_v22 = vor.u32 %v9371_v50, %v8388_v36  ;;  %v9425_v59 = vld [vmem:[#allocation5 + $0xbc4] sm:$0xf] }
 0x360   : > { %v3353_v49 = vadd.f32 %v3352_v15, %v3328_v1  ;;  %v8405_v1 = vor.u32 %v9375_v5, %v8404_v12  ;;  %v9397_v15 = vld [vmem:[#allocation5 + $0xae4] sm:$0xf] }
 0x362   : > { %v10539_v62 = vadd.f32 %v3377_v38, %v3353_v49  ;;  %v3306_v32 = vpop.f32.mrf.mxu0  ;;  %v3331_v42 = vpop.f32.mrf.mxu1  ;;  %5330 = vmatpush.bf16.msrb.mxu2 %v8421_v61  ;;  %5355 = vmatpush.bf16.msrb.mxu3 %v8549_v58  ;;  %v8502_v38 = vld [vmem:[#allocation5 + $0xaf0] sm:$0xf0]  ;;  %v9429_v61 = vld [vmem:[#allocation5 + $0xbe4] sm:$0xf] }
 0x363   : > { %v3307_v39 = vadd.f32 %v3306_v32, %v10435_v13  ;;  %5282 = vmatpush.bf16.msrb.mxu0 %v8133_v63  ;;  %5307 = vmatpush.bf16.msrb.mxu1 %v8261_v10  ;;  %v9403_v13 = vld [vmem:[#allocation5 + $0xb0c] sm:$0xf0]  ;;  %v8505_v54 = vor.u32 %v9397_v15, %v8502_v38  ;;  %v8630_v49 = vld [vmem:[#allocation5 + $0xbf0] sm:$0xf0]  ;;  %v9333_v63 = vld [vmem:[#allocation5 + $0x8e4] sm:$0xf] }
 0x364   : > { %v8517_v51 = vor.u32 %v9403_v13, %v8516_v56  ;;  %v8633_v58 = vor.u32 %v9429_v61, %v8630_v49  ;;  %v9365_v32 = vld [vmem:[#allocation5 + $0x9e4] sm:$0xf]  ;;  %v8374_v10 = vld [vmem:[#allocation5 + $0x9f0] sm:$0xf0] }
 0x365   : > { %v3332_v18 = vadd.f32 %v3331_v42, %v3307_v39  ;;  %4418 = vmatmul.bf16.vlgmr.msra.gmra.mxu0 %v10934_v33  ;;  %4437 = vmatmul.bf16.vlgmr.msra.gmra.mxu1 %v10935_v55  ;;  %v8249_v42 = vor.u32 %v9333_v63, %v8246_v45  ;;  %v8377_v5 = vor.u32 %v9365_v32, %v8374_v10  ;;  %v9393_v39 = vld [vmem:[#allocation5 + $0xac4] sm:$0xf]  ;;  %v8470_v61 = vld [vmem:[#allocation5 + $0xab0] sm:$0xf0] }
 0x366   : > { %5331 = vmatpush.bf16.msrb.mxu2 %v8405_v1  ;;  %5356 = vmatpush.bf16.msrb.mxu3 %v8533_v30  ;;  %v8486_v1 = vld [vmem:[#allocation5 + $0xad0] sm:$0xf0]  ;;  %v9389_v38 = vld [vmem:[#allocation5 + $0xaa4] sm:$0xf] }
 0x367   : > { %v3354_v52 = vpop.f32.mrf.mxu2  ;;  %v3379_v16 = vpop.f32.mrf.mxu3  ;;  %5375 = vmatpush.bf16.msra.mxu0 %v8249_v42  ;;  %5400 = vmatpush.bf16.msra.mxu1 %v8377_v5  ;;  %v8489_v30 = vor.u32 %v9393_v39, %v8486_v1  ;;  %v8473_v49 = vor.u32 %v9389_v38, %v8470_v61  ;;  %v9325_v45 = vld [vmem:[#allocation5 + $0x8a4] sm:$0xf]  ;;  %v8214_v32 = vld [vmem:[#allocation5 + $0x8b0] sm:$0xf0] }
 0x368   : > { %v9329_v16 = vld [vmem:[#allocation5 + $0x8c4] sm:$0xf]  ;;  %v8217_v10 = vor.u32 %v9325_v45, %v8214_v32  ;;  %v8454_v1 = vld [vmem:[#allocation5 + $0xa90] sm:$0xf0] }
 0x369   : > { %v9357_v42 = vld [vmem:[#allocation5 + $0x9a4] sm:$0xf]  ;;  %v8438_v61 = vld [vmem:[#allocation5 + $0xa70] sm:$0xf0] }
 0x36a   : > { %v3308_v6 = vpop.f32.mrf.mxu0  ;;  %v3333_v25 = vpop.f32.mrf.mxu1  ;;  %5332 = vmatpush.bf16.msrb.mxu2 %v8389_v22  ;;  %5357 = vmatpush.bf16.msrb.mxu3 %v8517_v51  ;;  %v8230_v22 = vld [vmem:[#allocation5 + $0x8d0] sm:$0xf0]  ;;  %v9385_v39 = vld [vmem:[#allocation5 + $0xa84] sm:$0xf] }
 0x36b   : > { %v8233_v13 = vor.u32 %v9329_v16, %v8230_v22  ;;  %v8358_v51 = vld [vmem:[#allocation5 + $0x9d0] sm:$0xf0]  ;;  %v9353_v22 = vld [vmem:[#allocation5 + $0x984] sm:$0xf] }
 0x36c   : > { %4456 = vmatmul.bf16.vlgmr.msra.gmra.mxu2 %v10934_v33  ;;  %4475 = vmatmul.bf16.vlgmr.msra.gmra.mxu3 %v10935_v55  ;;  %v8198_v16 = vld [vmem:[#allocation5 + $0x890] sm:$0xf0]  ;;  %v9381_v38 = vld [vmem:[#allocation5 + $0xa64] sm:$0xf] }
 0x36d   : > { %5376 = vmatpush.bf16.msra.mxu0 %v8233_v13  ;;  %v8326_v13 = vld [vmem:[#allocation5 + $0x990] sm:$0xf0]  ;;  %v9317_v45 = vld [vmem:[#allocation5 + $0x864] sm:$0xf] }
 0x36e   : > { %5425 = vmatpush.bf16.msra.mxu2 %v8505_v54  ;;  %5450 = vmatpush.bf16.msra.mxu3 %v8633_v58  ;;  %v9421_v54 = vld [vmem:[#allocation5 + $0xba4] sm:$0xf]  ;;  %v8598_v58 = vld [vmem:[#allocation5 + $0xbb0] sm:$0xf0] }
 0x36f   : > { %v3356_v48 = vpop.f32.mrf.mxu2  ;;  %v3381_v23 = vpop.f32.mrf.mxu3  ;;  %v8182_v32 = vld [vmem:[#allocation5 + $0x870] sm:$0xf0] }
 0x370   : > { %v3357_v29 = vadd.f32 %v3356_v48, %v3332_v18  ;;  %v8614_v18 = vld [vmem:[#allocation5 + $0xbd0] sm:$0xf0]  ;;  %v8601_v48 = vor.u32 %v9421_v54, %v8598_v58  ;;  %v9413_v54 = vld [vmem:[#allocation5 + $0xb64] sm:$0xf] }
 0x371   : > { %v8617_v50 = vor.u32 %v9425_v59, %v8614_v18  ;;  %5377 = vmatpush.bf16.msra.mxu0 %v8217_v10  ;;  %v9417_v59 = vld [vmem:[#allocation5 + $0xb84] sm:$0xf]  ;;  %v8582_v18 = vld [vmem:[#allocation5 + $0xb90] sm:$0xf0]  ;;  %v8185_v10 = vor.u32 %v9317_v45, %v8182_v32 }
 0x372   : > { %v10546_v12 = vadd.f32 %v3381_v23, %v3357_v29  ;;  %v3310_v33 = vpop.f32.mrf.mxu0  ;;  %v3335_v55 = vpop.f32.mrf.mxu1  ;;  %5426 = vmatpush.bf16.msra.mxu2 %v8489_v30  ;;  %v8457_v30 = vor.u32 %v9385_v39, %v8454_v1  ;;  %v8566_v58 = vld [vmem:[#allocation5 + $0xb70] sm:$0xf0]  ;;  %v9377_v1 = vld [vmem:[#allocation5 + $0xa44] sm:$0xf] }
 0x373   : > { %v3311_v31 = vadd.f32 %v3310_v33, %v10441_v26  ;;  %5451 = vmatpush.bf16.msra.mxu3 %v8617_v50  ;;  %v9361_v26 = vld [vmem:[#allocation5 + $0x9c4] sm:$0xf]  ;;  %v8342_v33 = vld [vmem:[#allocation5 + $0x9b0] sm:$0xf0] }
 0x374   : > { %v8361_v15 = vor.u32 %v9361_v26, %v8358_v51  ;;  %v8345_v5 = vor.u32 %v9357_v42, %v8342_v33  ;;  %v9349_v42 = vld [vmem:[#allocation5 + $0x964] sm:$0xf]  ;;  %v8310_v33 = vld [vmem:[#allocation5 + $0x970] sm:$0xf0] }
 0x375   : > { %v3336_v36 = vadd.f32 %v3335_v55, %v3311_v31  ;;  %4423 = vmatmul.bf16.gmra.mxu0 %v10936_v7  ;;  %4442 = vmatmul.bf16.gmra.mxu1 %v10937_v41  ;;  %v9309_v45 = vld [vmem:[#allocation5 + $0x824] sm:$0xf]  ;;  %v8150_v32 = vld [vmem:[#allocation5 + $0x830] sm:$0xf0] }
 0x376   : > { %5401 = vmatpush.bf16.msra.mxu1 %v8361_v15  ;;  %5427 = vmatpush.bf16.msra.mxu2 %v8473_v49  ;;  %v8441_v49 = vor.u32 %v9381_v38, %v8438_v61 }
 0x377   : > { %v3358_v56 = vpop.f32.mrf.mxu2  ;;  %v3383_v52 = vpop.f32.mrf.mxu3  ;;  %5452 = vmatpush.bf16.msra.mxu3 %v8601_v48  ;;  %v8569_v48 = vor.u32 %v9413_v54, %v8566_v58  ;;  %v8406_v58 = vld [vmem:[#allocation5 + $0xa30] sm:$0xf0] }
 0x378   : > { %v9321_v52 = vld [vmem:[#allocation5 + $0x884] sm:$0xf] }
 0x379   : > { %v8201_v26 = vor.u32 %v9321_v52, %v8198_v16 }
 0x37a   : > { %v3312_v6 = vpop.f32.mrf.mxu0  ;;  %v3337_v25 = vpop.f32.mrf.mxu1  ;;  %5402 = vmatpush.bf16.msra.mxu1 %v8345_v5  ;;  %5428 = vmatpush.bf16.msra.mxu2 %v8457_v30  ;;  %v8313_v5 = vor.u32 %v9349_v42, %v8310_v33  ;;  %v9409_v30 = vld [vmem:[#allocation5 + $0xb44] sm:$0xf] }
 0x37b   : > { %v8329_v25 = vor.u32 %v9353_v22, %v8326_v13  ;;  %5378 = vmatpush.bf16.msra.mxu0 %v8201_v26  ;;  %v9313_v22 = vld [vmem:[#allocation5 + $0x844] sm:$0xf]  ;;  %v8166_v26 = vld [vmem:[#allocation5 + $0x850] sm:$0xf0] }
 0x37c   : > { %4461 = vmatmul.bf16.gmra.mxu2 %v10936_v7  ;;  %4480 = vmatmul.bf16.gmra.mxu3 %v10937_v41  ;;  %v9345_v13 = vld [vmem:[#allocation5 + $0x944] sm:$0xf] }
 0x37d   : > { %v9341_v33 = vld [vmem:[#allocation5 + $0x924] sm:$0xf] }
 0x37e   : > { %5403 = vmatpush.bf16.msra.mxu1 %v8329_v25  ;;  %5429 = vmatpush.bf16.msra.mxu2 %v8441_v49  ;;  %v9373_v49 = vld [vmem:[#allocation5 + $0xa24] sm:$0xf] }
 0x37f   : > { %v3360_v23 = vpop.f32.mrf.mxu2  ;;  %v3385_v29 = vpop.f32.mrf.mxu3  ;;  %5379 = vmatpush.bf16.msra.mxu0 %v8185_v10  ;;  %v8153_v10 = vor.u32 %v9309_v45, %v8150_v32 }
 0x380   : > { %v3361_v63 = vadd.f32 %v3360_v23, %v3336_v36  ;;  %v8585_v36 = vor.u32 %v9417_v59, %v8582_v18  ;;  %v8422_v59 = vld [vmem:[#allocation5 + $0xa50] sm:$0xf0] }
 0x381   : > { %v8425_v18 = vor.u32 %v9377_v1, %v8422_v59 }
 0x382   : > { %v10553_v7 = vadd.f32 %v3385_v29, %v3361_v63  ;;  %v3855_v41 = vpop.f32.mrf.mxu0  ;;  %v3874_v55 = vpop.f32.mrf.mxu1  ;;  %5453 = vmatpush.bf16.msra.mxu3 %v8585_v36  ;;  %5404 = vmatpush.bf16.msra.mxu1 %v8313_v5  ;;  %v8550_v36 = vld [vmem:[#allocation5 + $0xb50] sm:$0xf0] }
 0x383   : > { %v10555_v31 = vadd.f32 %v3874_v55, %v3855_v41  ;;  %5430 = vmatpush.bf16.msra.mxu2 %v8425_v18  ;;  %v8134_v18 = vld [vmem:[#allocation5 + $0x810] sm:$0xf0] }
 0x384   : > { %10938 = vst [vmem:[#allocation22_spill] sm:$0xff] %v10553_v7 }
 0x385   : > { %5283 = vmatmul.bf16.vlgmr.msrb.gmra.mxu0 %v10359_v47  ;;  %5308 = vmatmul.bf16.vlgmr.msrb.gmra.mxu1 %v10361_v57 }
 0x386   : > { %5454 = vmatpush.bf16.msra.mxu3 %v8569_v48  ;;  %v9405_v48 = vld [vmem:[#allocation5 + $0xb24] sm:$0xf] }
 0x387   : > { %v3362_v50 = vpop.f32.mrf.mxu2  ;;  %v3387_v56 = vpop.f32.mrf.mxu3 }
 0x388   : > { %v8553_v50 = vor.u32 %v9409_v30, %v8550_v36  ;;  %v9305_v30 = vld [vmem:[#allocation5 + $0x804] sm:$0xf] }
 0x389   : > { %v9337_v36 = vld [vmem:[#allocation5 + $0x904] sm:$0xf] }
 0x38a   : > { %v3857_v51 = vpop.f32.mrf.mxu0  ;;  %v3876_v6 = vpop.f32.mrf.mxu1  ;;  %5455 = vmatpush.bf16.msra.mxu3 %v8553_v50  ;;  %v8137_v50 = vor.u32 %v9305_v30, %v8134_v18 }
 0x38b   : > { %v10559_v15 = vadd.f32 %v3876_v6, %v3857_v51  ;;  %v8169_v51 = vor.u32 %v9313_v22, %v8166_v26  ;;  %v8294_v6 = vld [vmem:[#allocation5 + $0x950] sm:$0xf0] }
 0x38c   : > { %5333 = vmatmul.bf16.vlgmr.msrb.gmra.mxu2 %v10367_v0  ;;  %5358 = vmatmul.bf16.vlgmr.msrb.gmra.mxu3 %v10369_v8  ;;  %v8297_v61 = vor.u32 %v9345_v13, %v8294_v6  ;;  %v8390_v6 = vld [vmem:[#allocation5 + $0xa10] sm:$0xf0] }
 0x38d   : > { %5380 = vmatpush.bf16.msra.mxu0 %v8169_v51  ;;  %v9369_v51 = vld [vmem:[#allocation5 + $0xa04] sm:$0xf] }
 0x38e   : > { %5405 = vmatpush.bf16.msra.mxu1 %v8297_v61  ;;  %v8518_v61 = vld [vmem:[#allocation5 + $0xb10] sm:$0xf0] }
 0x38f   : > { %v3893_v23 = vpop.f32.mrf.mxu2  ;;  %v3912_v29 = vpop.f32.mrf.mxu3 }
 0x390   : > { %v10563_v63 = vadd.f32 %v3912_v29, %v3893_v23  ;;  %v8409_v23 = vor.u32 %v9373_v49, %v8406_v58  ;;  %v8534_v29 = vld [vmem:[#allocation5 + $0xb30] sm:$0xf0] }
 0x391   : > { %v8537_v42 = vor.u32 %v9405_v48, %v8534_v29  ;;  %5381 = vmatpush.bf16.msra.mxu0 %v8153_v10  ;;  %v9400_v10 = vld [vmem:[#allocation5 + $0xaf4] sm:$0xf0] }
 0x392   : > { %v3860_v41 = vpop.f32.mrf.mxu0  ;;  %v3879_v55 = vpop.f32.mrf.mxu1  ;;  %5431 = vmatpush.bf16.msra.mxu2 %v8409_v23 }
 0x393   : > { %v10565_v39 = vadd.f32 %v3879_v55, %v3860_v41  ;;  %v8278_v41 = vld [vmem:[#allocation5 + $0x930] sm:$0xf0]  ;;  %5456 = vmatpush.bf16.msra.mxu3 %v8537_v42  ;;  %v8508_v42 = vld [vmem:[#allocation5 + $0xae8] sm:$0xf] }
 0x394   : > { %v8281_v1 = vor.u32 %v9341_v33, %v8278_v41  ;;  %v8636_v33 = vld [vmem:[#allocation5 + $0xbe8] sm:$0xf]  ;;  %v4623_v41 = vunpack.c.l.b16 %v10250_v19  ;;  %v8509_v18 = vor.u32 %v9400_v10, %v8508_v42 }
 0x395   : > { %5287 = vmatmul.bf16.gmra.mxu0 %v10381_v27  ;;  %5312 = vmatmul.bf16.gmra.mxu1 %v10383_v21 }
 0x396   : > { %5406 = vmatpush.bf16.msra.mxu1 %v8281_v1  ;;  %5382 = vmatpush.bf16.msra.mxu0 %v8137_v50  ;;  %v10940_v1 = vld [vmem:[#allocation30_spill] sm:$0xff]  ;;  %v4624_v50 = vunpack.c.h.b16 %v10250_v19 }
 0x397   : > { %v3895_v56 = vpop.f32.mrf.mxu2  ;;  %v3914_v52 = vpop.f32.mrf.mxu3  ;;  %v732_v30 = vmax.f32 %v10940_v1, 0.0 }
 0x398   : > { %v10569_v16 = vadd.f32 %v3914_v52, %v3895_v56  ;;  %v8262_v56 = vld [vmem:[#allocation5 + $0x910] sm:$0xf0] }
 0x399   : > { %v8265_v26 = vor.u32 %v9337_v36, %v8262_v56  ;;  %v9432_v36 = vld [vmem:[#allocation5 + $0xbf4] sm:$0xf0] }
 0x39a   : > { %v3862_v25 = vpop.f32.mrf.mxu0  ;;  %v3881_v38 = vpop.f32.mrf.mxu1 }
 0x39b   : > { %v10571_v54 = vadd.f32 %v3881_v38, %v3862_v25  ;;  %v9401_v25 = vld [vmem:[#allocation5 + $0xb04] sm:$0xf]  ;;  %5407 = vmatpush.bf16.msra.mxu1 %v8265_v26  ;;  %v8393_v38 = vor.u32 %v9369_v51, %v8390_v6  ;;  %v8637_v6 = vor.u32 %v9432_v36, %v8636_v33 }
 0x39c   : > { %5337 = vmatmul.bf16.gmra.mxu2 %v10389_v53  ;;  %5362 = vmatmul.bf16.gmra.mxu3 %v10391_v20  ;;  %v8521_v48 = vor.u32 %v9401_v25, %v8518_v61  ;;  %v10942_v33 = vld [vmem:[#allocation28_spill] sm:$0xff] }
 0x39d   : > { %5432 = vmatpush.bf16.msra.mxu2 %v8393_v38  ;;  %v4621_v36 = vunpack.c.l.b16 %v10942_v33 }
 0x39e   : > { %5457 = vmatpush.bf16.msra.mxu3 %v8521_v48  ;;  %v9336_v48 = vld [vmem:[#allocation5 + $0x8f4] sm:$0xf0] }
 0x39f   : > { %v3898_v55 = vpop.f32.mrf.mxu2  ;;  %v3917_v5 = vpop.f32.mrf.mxu3 }
 0x3a0   : > { %v10575_v59 = vadd.f32 %v3917_v5, %v3898_v55  ;;  %v10939_v55 = vld [vmem:[#allocation29_spill] sm:$0xff] }
 0x3a1   : > { %v731_v5 = vmax.f32 %v10939_v55, 0.0  ;;  %5525 = vmatpush.bf16.msrb.mxu2 %v8509_v18  ;;  %v9368_v55 = vld [vmem:[#allocation5 + $0x9f4] sm:$0xf0]  ;;  %v8620_v18 = vld [vmem:[#allocation5 + $0xbc8] sm:$0xf] }
 0x3a2   : > { %v3931_v52 = vpop.f32.mrf.mxu0  ;;  %v3950_v22 = vpop.f32.mrf.mxu1  ;;  %5550 = vmatpush.bf16.msrb.mxu3 %v8637_v6 }
 0x3a3   : > { %v10577_v13 = vadd.f32 %v3950_v22, %v3931_v52  ;;  %v10941_v22 = vld [vmem:[#allocation27_spill] sm:$0xff]  ;;  %v768_v38 = vpack.c.bf16 %v732_v30, %v731_v5  ;;  %v8492_v5 = vld [vmem:[#allocation5 + $0xac8] sm:$0xf]  ;;  %v9396_v30 = vld [vmem:[#allocation5 + $0xad4] sm:$0xf0] }
 0x3a4   : > { %v4619_v26 = vunpack.c.l.b16 %v10941_v22  ;;  %v4620_v51 = vunpack.c.h.b16 %v10941_v22 }
 0x3a5   : > { %5291 = vmatmul.bf16.gmra.mxu0 %v10403_v2  ;;  %5316 = vmatmul.bf16.gmra.mxu1 %v10405_v4  ;;  %v4626_v22 = vunpack.c.h.b16 %v768_v38 }
 0x3a6   : > { %v10597_v19 = vpack.c.b16 %v4623_v41, %v4619_v26  ;;  %v10599_v42 = vpack.c.b16 %v4624_v50, %v4620_v51  ;;  %v8493_v41 = vor.u32 %v9396_v30, %v8492_v5  ;;  %v9428_v50 = vld [vmem:[#allocation5 + $0xbd4] sm:$0xf0] }
 0x3a7   : > { %v3900_v49 = vpop.f32.mrf.mxu2  ;;  %v3919_v58 = vpop.f32.mrf.mxu3  ;;  %v8621_v6 = vor.u32 %v9428_v50, %v8620_v18  ;;  %v9364_v5 = vld [vmem:[#allocation5 + $0x9d4] sm:$0xf0]  ;;  %v8476_v18 = vld [vmem:[#allocation5 + $0xaa8] sm:$0xf] }
 0x3a8   : > { %v10581_v23 = vadd.f32 %v3919_v58, %v3900_v49  ;;  %v8252_v58 = vld [vmem:[#allocation5 + $0x8e8] sm:$0xf]  ;;  %5526 = vmatpush.bf16.msrb.mxu2 %v8493_v41  ;;  %v9392_v41 = vld [vmem:[#allocation5 + $0xab4] sm:$0xf0] }
 0x3a9   : > { %v8253_v10 = vor.u32 %v9336_v48, %v8252_v58  ;;  %5551 = vmatpush.bf16.msrb.mxu3 %v8621_v6  ;;  %v8604_v50 = vld [vmem:[#allocation5 + $0xba8] sm:$0xf] }
 0x3aa   : > { %v3933_v29 = vpop.f32.mrf.mxu0  ;;  %v3952_v45 = vpop.f32.mrf.mxu1 }
 0x3ab   : > { %v10583_v32 = vadd.f32 %v3952_v45, %v3933_v29  ;;  %v8380_v29 = vld [vmem:[#allocation5 + $0x9e8] sm:$0xf]  ;;  %5475 = vmatpush.bf16.msrb.mxu0 %v8253_v10 }
 0x3ac   : > { %5341 = vmatmul.bf16.gmra.mxu2 %v10411_v44  ;;  %5366 = vmatmul.bf16.gmra.mxu3 %v10413_v60  ;;  %v8381_v1 = vor.u32 %v9368_v55, %v8380_v29  ;;  %v8236_v55 = vld [vmem:[#allocation5 + $0x8c8] sm:$0xf] }
 0x3ae   : > { %5500 = vmatpush.bf16.msrb.mxu1 %v8381_v1 }
 0x3af   : > { %v3969_v56 = vpop.f32.mrf.mxu2  ;;  %v3988_v52 = vpop.f32.mrf.mxu3 }
 0x3b0   : > { %v10593_v25 = vadd.f32 %v3988_v52, %v3969_v56  ;;  %v4622_v56 = vunpack.c.h.b16 %v10942_v33  ;;  %v4625_v52 = vunpack.c.l.b16 %v768_v38  ;;  %v9332_v33 = vld [vmem:[#allocation5 + $0x8d4] sm:$0xf0]  ;;  %v8364_v38 = vld [vmem:[#allocation5 + $0x9c8] sm:$0xf] }
 0x3b1   : > { %v8237_v1 = vor.u32 %v9332_v33, %v8236_v55  ;;  %v8365_v30 = vor.u32 %v9364_v5, %v8364_v38  ;;  %v9328_v55 = vld [vmem:[#allocation5 + $0x8b4] sm:$0xf0]  ;;  %v8348_v33 = vld [vmem:[#allocation5 + $0x9a8] sm:$0xf] }
 0x3b2   : > { %v3936_v61 = vpop.f32.mrf.mxu0  ;;  %v3955_v49 = vpop.f32.mrf.mxu1  ;;  %v10607_v48 = vpack.c.b16 %v4625_v52, %v4621_v36  ;;  %v10609_v29 = vpack.c.b16 %v4626_v22, %v4622_v56  ;;  %v8477_v36 = vor.u32 %v9392_v41, %v8476_v18  ;;  %v9424_v56 = vld [vmem:[#allocation5 + $0xbb4] sm:$0xf0]  ;;  %v8460_v18 = vld [vmem:[#allocation5 + $0xa88] sm:$0xf] }
 0x3b3   : > { %v10595_v45 = vadd.f32 %v3955_v49, %v3936_v61  ;;  %5476 = vmatpush.bf16.msrb.mxu0 %v8237_v1  ;;  %5501 = vmatpush.bf16.msrb.mxu1 %v8365_v30  ;;  %v9360_v5 = vld [vmem:[#allocation5 + $0x9b4] sm:$0xf0] }
 0x3b4   : > { %5527 = vmatpush.bf16.msrb.mxu2 %v8477_v36  ;;  %v8349_v7 = vor.u32 %v9360_v5, %v8348_v33  ;;  %v9388_v41 = vld [vmem:[#allocation5 + $0xa94] sm:$0xf0]  ;;  %v8332_v33 = vld [vmem:[#allocation5 + $0x988] sm:$0xf] }
 0x3b5   : > { %5295 = vmatmul.bf16.gmra.mxu0 %v10597_v19  ;;  %5320 = vmatmul.bf16.gmra.mxu1 %v10599_v42  ;;  %v8461_v36 = vor.u32 %v9388_v41, %v8460_v18  ;;  %v8444_v18 = vld [vmem:[#allocation5 + $0xa68] sm:$0xf]  ;;  %v9384_v41 = vld [vmem:[#allocation5 + $0xa74] sm:$0xf0] }
 0x3b7   : > { %v3971_v26 = vpop.f32.mrf.mxu2  ;;  %v3990_v51 = vpop.f32.mrf.mxu3  ;;  %5502 = vmatpush.bf16.msrb.mxu1 %v8349_v7 }
 0x3b8   : > { %v10605_v61 = vadd.f32 %v3990_v51, %v3971_v26  ;;  %v8605_v26 = vor.u32 %v9424_v56, %v8604_v50  ;;  %v8588_v50 = vld [vmem:[#allocation5 + $0xb88] sm:$0xf]  ;;  %v9420_v56 = vld [vmem:[#allocation5 + $0xb94] sm:$0xf0]  ;;  %5528 = vmatpush.bf16.msrb.mxu2 %v8461_v36  ;;  %v8445_v36 = vor.u32 %v9384_v41, %v8444_v18 }
 0x3ba   : > { %v3938_v49 = vpop.f32.mrf.mxu0  ;;  %v3957_v58 = vpop.f32.mrf.mxu1  ;;  %5552 = vmatpush.bf16.msrb.mxu3 %v8605_v26  ;;  %v8589_v26 = vor.u32 %v9420_v56, %v8588_v50  ;;  %v8572_v50 = vld [vmem:[#allocation5 + $0xb68] sm:$0xf]  ;;  %v9416_v56 = vld [vmem:[#allocation5 + $0xb74] sm:$0xf0] }
 0x3bb   : > { %v10611_v10 = vadd.f32 %v3957_v58, %v3938_v49  ;;  %v8220_v58 = vld [vmem:[#allocation5 + $0x8a8] sm:$0xf] }
 0x3bc   : > { %5345 = vmatmul.bf16.gmra.mxu2 %v10607_v48  ;;  %5370 = vmatmul.bf16.gmra.mxu3 %v10609_v29  ;;  %v8221_v1 = vor.u32 %v9328_v55, %v8220_v58  ;;  %v8204_v58 = vld [vmem:[#allocation5 + $0x888] sm:$0xf]  ;;  %v9324_v55 = vld [vmem:[#allocation5 + $0x894] sm:$0xf0] }
 0x3bd   : > { %v8205_v5 = vor.u32 %v9324_v55, %v8204_v58  ;;  %5529 = vmatpush.bf16.msrb.mxu2 %v8445_v36  ;;  %v9320_v55 = vld [vmem:[#allocation5 + $0x874] sm:$0xf0]  ;;  %v8556_v36 = vld [vmem:[#allocation5 + $0xb48] sm:$0xf] }
 0x3be   : > { %5477 = vmatpush.bf16.msrb.mxu0 %v8221_v1  ;;  %5553 = vmatpush.bf16.msrb.mxu3 %v8589_v26  ;;  %v8573_v26 = vor.u32 %v9416_v56, %v8572_v50  ;;  %v9380_v50 = vld [vmem:[#allocation5 + $0xa54] sm:$0xf0] }
 0x3bf   : > { %v3974_v52 = vpop.f32.mrf.mxu2  ;;  %v3993_v22 = vpop.f32.mrf.mxu3 }
 0x3c0   : > { %v10615_v51 = vadd.f32 %v3993_v22, %v3974_v52 }
 0x3c2   : > { %v4343_v6 = vpop.f32.mrf.mxu0  ;;  %v4362_v49 = vpop.f32.mrf.mxu1  ;;  %5478 = vmatpush.bf16.msrb.mxu0 %v8205_v5  ;;  %5554 = vmatpush.bf16.msrb.mxu3 %v8573_v26 }
 0x3c3   : > { %v4344_v38 = vadd.f32 %v4343_v6, %v10555_v31 }
 0x3c5   : > { %v10618_v30 = vadd.f32 %v4362_v49, %v4344_v38  ;;  %5383 = vmatmul.bf16.vlgmr.msra.gmra.mxu0 %v10359_v47  ;;  %5408 = vmatmul.bf16.vlgmr.msra.gmra.mxu1 %v10361_v57 }
 0x3c7   : > { %10943 = vst [vmem:[#allocation20_spill] sm:$0xff] %v10618_v30  ;;  %v3976_v52 = vpop.f32.mrf.mxu2  ;;  %v3995_v22 = vpop.f32.mrf.mxu3  ;;  %v9356_v30 = vld [vmem:[#allocation5 + $0x994] sm:$0xf0] }
 0x3c8   : > { %v10622_v31 = vadd.f32 %v3995_v22, %v3976_v52  ;;  %v8333_v7 = vor.u32 %v9356_v30, %v8332_v33  ;;  %v8316_v33 = vld [vmem:[#allocation5 + $0x968] sm:$0xf] }
 0x3ca   : > { %v4345_v6 = vpop.f32.mrf.mxu0  ;;  %v4364_v49 = vpop.f32.mrf.mxu1  ;;  %5503 = vmatpush.bf16.msrb.mxu1 %v8333_v7  ;;  %v9352_v7 = vld [vmem:[#allocation5 + $0x974] sm:$0xf0] }
 0x3cb   : > { %v4346_v38 = vadd.f32 %v4345_v6, %v10559_v15  ;;  %v8317_v18 = vor.u32 %v9352_v7, %v8316_v33  ;;  %v9348_v33 = vld [vmem:[#allocation5 + $0x954] sm:$0xf0] }
 0x3cc   : > { %5433 = vmatmul.bf16.vlgmr.msra.gmra.mxu2 %v10367_v0  ;;  %5458 = vmatmul.bf16.vlgmr.msra.gmra.mxu3 %v10369_v8 }
 0x3cd   : > { %v10627_v1 = vadd.f32 %v4364_v49, %v4346_v38  ;;  %v8188_v49 = vld [vmem:[#allocation5 + $0x868] sm:$0xf] }
 0x3ce   : > { %v8189_v5 = vor.u32 %v9320_v55, %v8188_v49  ;;  %5504 = vmatpush.bf16.msrb.mxu1 %v8317_v18  ;;  %v8300_v49 = vld [vmem:[#allocation5 + $0x948] sm:$0xf] }
 0x3cf   : > { %v4381_v52 = vpop.f32.mrf.mxu2  ;;  %v4400_v22 = vpop.f32.mrf.mxu3 }
 0x3d0   : > { %v4382_v15 = vadd.f32 %v4381_v52, %v10563_v63  ;;  %v8428_v63 = vld [vmem:[#allocation5 + $0xa48] sm:$0xf]  ;;  %5479 = vmatpush.bf16.msrb.mxu0 %v8189_v5  ;;  %v9412_v52 = vld [vmem:[#allocation5 + $0xb54] sm:$0xf0]  ;;  %v8301_v5 = vor.u32 %v9348_v33, %v8300_v49 }
 0x3d1   : > { %v8429_v56 = vor.u32 %v9380_v50, %v8428_v63  ;;  %v9312_v63 = vld [vmem:[#allocation5 + $0x834] sm:$0xf0]  ;;  %v8284_v50 = vld [vmem:[#allocation5 + $0x928] sm:$0xf] }
 0x3d2   : > { %v10630_v6 = vadd.f32 %v4400_v22, %v4382_v15  ;;  %v4348_v58 = vpop.f32.mrf.mxu0  ;;  %v4367_v30 = vpop.f32.mrf.mxu1  ;;  %v8557_v15 = vor.u32 %v9412_v52, %v8556_v36  ;;  %5505 = vmatpush.bf16.msrb.mxu1 %v8301_v5  ;;  %v9376_v52 = vld [vmem:[#allocation5 + $0xa34] sm:$0xf0] }
 0x3d3   : > { %v4349_v38 = vadd.f32 %v4348_v58, %v10565_v39  ;;  %5530 = vmatpush.bf16.msrb.mxu2 %v8429_v56  ;;  %v8172_v58 = vld [vmem:[#allocation5 + $0x848] sm:$0xf] }
 0x3d4   : > { %5555 = vmatpush.bf16.msrb.mxu3 %v8557_v15  ;;  %v8412_v56 = vld [vmem:[#allocation5 + $0xa28] sm:$0xf] }
 0x3d5   : > { %v10633_v41 = vadd.f32 %v4367_v30, %v4349_v38  ;;  %5387 = vmatmul.bf16.gmra.mxu0 %v10381_v27  ;;  %5412 = vmatmul.bf16.gmra.mxu1 %v10383_v21  ;;  %v9316_v30 = vld [vmem:[#allocation5 + $0x854] sm:$0xf0]  ;;  %v8413_v15 = vor.u32 %v9376_v52, %v8412_v56 }
 0x3d6   : > { %v8173_v55 = vor.u32 %v9316_v30, %v8172_v58  ;;  %v9344_v58 = vld [vmem:[#allocation5 + $0x934] sm:$0xf0] }
 0x3d7   : > { %10944 = vst [vmem:[#allocation21_spill] sm:$0xff] %v10633_v41  ;;  %v4383_v22 = vpop.f32.mrf.mxu2  ;;  %v4402_v26 = vpop.f32.mrf.mxu3  ;;  %5531 = vmatpush.bf16.msrb.mxu2 %v8413_v15  ;;  %v9404_v15 = vld [vmem:[#allocation5 + $0xb14] sm:$0xf0] }
 0x3d8   : > { %v4384_v39 = vadd.f32 %v4383_v22, %v10569_v16  ;;  %5480 = vmatpush.bf16.msrb.mxu0 %v8173_v55  ;;  %v8156_v16 = vld [vmem:[#allocation5 + $0x828] sm:$0xf]  ;;  %v8285_v55 = vor.u32 %v9344_v58, %v8284_v50  ;;  %v9372_v50 = vld [vmem:[#allocation5 + $0xa14] sm:$0xf0] }
 0x3d9   : > { %v8540_v22 = vld [vmem:[#allocation5 + $0xb28] sm:$0xf] }
 0x3da   : > { %v10638_v38 = vadd.f32 %v4402_v26, %v4384_v39  ;;  %v4350_v7 = vpop.f32.mrf.mxu0  ;;  %v4369_v41 = vpop.f32.mrf.mxu1  ;;  %v8157_v26 = vor.u32 %v9312_v63, %v8156_v16  ;;  %v9408_v39 = vld [vmem:[#allocation5 + $0xb34] sm:$0xf0]  ;;  %5506 = vmatpush.bf16.msrb.mxu1 %v8285_v55 }
 0x3db   : > { %v4351_v18 = vadd.f32 %v4350_v7, %v10571_v54  ;;  %v8541_v49 = vor.u32 %v9408_v39, %v8540_v22  ;;  %v8140_v7 = vld [vmem:[#allocation5 + $0x808] sm:$0xf] }
 0x3dc   : > { %10945 = vst [vmem:[#allocation25_spill] sm:$0xff] %v10638_v38  ;;  %5437 = vmatmul.bf16.gmra.mxu2 %v10389_v53  ;;  %5462 = vmatmul.bf16.gmra.mxu3 %v10391_v20  ;;  %v9308_v38 = vld [vmem:[#allocation5 + $0x814] sm:$0xf0]  ;;  %v8396_v22 = vld [vmem:[#allocation5 + $0xa08] sm:$0xf] }
 0x3dd   : > { %v10643_v36 = vadd.f32 %v4369_v41, %v4351_v18  ;;  %5481 = vmatpush.bf16.msrb.mxu0 %v8157_v26  ;;  %v8268_v41 = vld [vmem:[#allocation5 + $0x908] sm:$0xf]  ;;  %5556 = vmatpush.bf16.msrb.mxu3 %v8541_v49  ;;  %v8141_v5 = vor.u32 %v9308_v38, %v8140_v7  ;;  %v9340_v18 = vld [vmem:[#allocation5 + $0x914] sm:$0xf0]  ;;  %v9398_v7 = vld [vmem:[#allocation5 + $0xaec] sm:$0xf] }
 0x3de   : > { %v8269_v56 = vor.u32 %v9340_v18, %v8268_v41  ;;  %v8524_v26 = vld [vmem:[#allocation5 + $0xb08] sm:$0xf]  ;;  %v8510_v41 = vld [vmem:[#allocation5 + $0xaf8] sm:$0xf0] }
 0x3df   : > { %10946 = vst [vmem:[#allocation26_spill] sm:$0xff] %v10643_v36  ;;  %v4386_v30 = vpop.f32.mrf.mxu2  ;;  %v4405_v54 = vpop.f32.mrf.mxu3  ;;  %v8525_v38 = vor.u32 %v9404_v15, %v8524_v26  ;;  %v9334_v15 = vld [vmem:[#allocation5 + $0x8ec] sm:$0xf] }
 0x3e0   : > { %v4387_v33 = vadd.f32 %v4386_v30, %v10575_v59  ;;  %v8397_v59 = vor.u32 %v9372_v50, %v8396_v22  ;;  %5507 = vmatpush.bf16.msrb.mxu1 %v8269_v56 }
 0x3e1   : > { %5482 = vmatpush.bf16.msrb.mxu0 %v8141_v5  ;;  %5557 = vmatpush.bf16.msrb.mxu3 %v8525_v38  ;;  %v9430_v5 = vld [vmem:[#allocation5 + $0xbec] sm:$0xf]  ;;  %v8254_v38 = vld [vmem:[#allocation5 + $0x8f8] sm:$0xf0] }
 0x3e2   : > { %v10646_v36 = vadd.f32 %v4405_v54, %v4387_v33  ;;  %v4419_v16 = vpop.f32.mrf.mxu0  ;;  %v4438_v63 = vpop.f32.mrf.mxu1  ;;  %5532 = vmatpush.bf16.msrb.mxu2 %v8397_v59 }
 0x3e3   : > { %v4420_v52 = vadd.f32 %v4419_v16, %v10577_v13  ;;  %v8513_v16 = vor.u32 %v9398_v7, %v8510_v41  ;;  %v9426_v41 = vld [vmem:[#allocation5 + $0xbcc] sm:$0xf] }
 0x3e5   : > { %v10649_v39 = vadd.f32 %v4438_v63, %v4420_v52  ;;  %5391 = vmatmul.bf16.gmra.mxu0 %v10403_v2  ;;  %5416 = vmatmul.bf16.gmra.mxu1 %v10405_v4  ;;  %v8638_v63 = vld [vmem:[#allocation5 + $0xbf8] sm:$0xf0] }
 0x3e6   : > { %v8641_v56 = vor.u32 %v9430_v5, %v8638_v63  ;;  %5625 = vmatpush.bf16.msra.mxu2 %v8513_v16  ;;  %v8622_v5 = vld [vmem:[#allocation5 + $0xbd8] sm:$0xf0] }
 0x3e7   : > { %v4388_v58 = vpop.f32.mrf.mxu2  ;;  %v4407_v30 = vpop.f32.mrf.mxu3 }
 0x3e8   : > { %v4389_v13 = vadd.f32 %v4388_v58, %v10581_v23  ;;  %5650 = vmatpush.bf16.msra.mxu3 %v8641_v56  ;;  %v9366_v58 = vld [vmem:[#allocation5 + $0x9ec] sm:$0xf] }
 0x3e9   : > { %v9330_v56 = vld [vmem:[#allocation5 + $0x8cc] sm:$0xf] }
 0x3ea   : > { %v10654_v54 = vadd.f32 %v4407_v30, %v4389_v13  ;;  %v4421_v49 = vpop.f32.mrf.mxu0  ;;  %v4440_v55 = vpop.f32.mrf.mxu1  ;;  %v8257_v13 = vor.u32 %v9334_v15, %v8254_v38 }
 0x3eb   : > { %v4422_v33 = vadd.f32 %v4421_v49, %v10583_v32  ;;  %v8382_v49 = vld [vmem:[#allocation5 + $0x9f8] sm:$0xf0] }
 0x3ec   : > { %5441 = vmatmul.bf16.gmra.mxu2 %v10411_v44  ;;  %5466 = vmatmul.bf16.gmra.mxu3 %v10413_v60 }
 0x3ed   : > { %v10659_v18 = vadd.f32 %v4440_v55, %v4422_v33  ;;  %v9394_v55 = vld [vmem:[#allocation5 + $0xacc] sm:$0xf]  ;;  %v8385_v33 = vor.u32 %v9366_v58, %v8382_v49  ;;  %5575 = vmatpush.bf16.msra.mxu0 %v8257_v13 }
 0x3ee   : > { %v9390_v13 = vld [vmem:[#allocation5 + $0xaac] sm:$0xf] }
 0x3ef   : > { %v4457_v52 = vpop.f32.mrf.mxu2  ;;  %v4476_v23 = vpop.f32.mrf.mxu3  ;;  %5600 = vmatpush.bf16.msra.mxu1 %v8385_v33 }
 0x3f0   : > { %v4458_v22 = vadd.f32 %v4457_v52, %v10593_v25  ;;  %v8494_v25 = vld [vmem:[#allocation5 + $0xad8] sm:$0xf0] }
 0x3f1   : > { %v8497_v7 = vor.u32 %v9394_v55, %v8494_v25  ;;  %v8238_v52 = vld [vmem:[#allocation5 + $0x8d8] sm:$0xf0] }
 0x3f2   : > { %v10662_v50 = vadd.f32 %v4476_v23, %v4458_v22  ;;  %v4424_v32 = vpop.f32.mrf.mxu0  ;;  %v4443_v26 = vpop.f32.mrf.mxu1  ;;  %v9362_v23 = vld [vmem:[#allocation5 + $0x9cc] sm:$0xf]  ;;  %v8478_v55 = vld [vmem:[#allocation5 + $0xab8] sm:$0xf0] }
 0x3f3   : > { %v4425_v59 = vadd.f32 %v4424_v32, %v10595_v45  ;;  %v8625_v45 = vor.u32 %v9426_v41, %v8622_v5  ;;  %5626 = vmatpush.bf16.msra.mxu2 %v8497_v7  ;;  %v8241_v32 = vor.u32 %v9330_v56, %v8238_v52  ;;  %v8481_v33 = vor.u32 %v9390_v13, %v8478_v55  ;;  %v8606_v7 = vld [vmem:[#allocation5 + $0xbb8] sm:$0xf0] }
 0x3f4   : > { %v8590_v55 = vld [vmem:[#allocation5 + $0xb98] sm:$0xf0] }
 0x3f5   : > { %v10665_v30 = vadd.f32 %v4443_v26, %v4425_v59  ;;  %5395 = vmatmul.bf16.gmra.mxu0 %v10597_v19  ;;  %5420 = vmatmul.bf16.gmra.mxu1 %v10599_v42  ;;  %v8366_v26 = vld [vmem:[#allocation5 + $0x9d8] sm:$0xf0] }
 0x3f6   : > { %5651 = vmatpush.bf16.msra.mxu3 %v8625_v45  ;;  %v8369_v59 = vor.u32 %v9362_v23, %v8366_v26  ;;  %5576 = vmatpush.bf16.msra.mxu0 %v8241_v32  ;;  %v9326_v23 = vld [vmem:[#allocation5 + $0x8ac] sm:$0xf] }
 0x3f7   : > { %v4459_v16 = vpop.f32.mrf.mxu2  ;;  %v4478_v63 = vpop.f32.mrf.mxu3  ;;  %5627 = vmatpush.bf16.msra.mxu2 %v8481_v33  ;;  %v9358_v32 = vld [vmem:[#allocation5 + $0x9ac] sm:$0xf] }
 0x3f8   : > { %v4460_v22 = vadd.f32 %v4459_v16, %v10605_v61  ;;  %v9422_v61 = vld [vmem:[#allocation5 + $0xbac] sm:$0xf]  ;;  %5601 = vmatpush.bf16.msra.mxu1 %v8369_v59  ;;  %v8350_v59 = vld [vmem:[#allocation5 + $0x9b8] sm:$0xf0] }
 0x3f9   : > { %v8609_v41 = vor.u32 %v9422_v61, %v8606_v7 }
 0x3fa   : > { %v10670_v15 = vadd.f32 %v4478_v63, %v4460_v22  ;;  %v4426_v38 = vpop.f32.mrf.mxu0  ;;  %v4445_v58 = vpop.f32.mrf.mxu1  ;;  %v8222_v22 = vld [vmem:[#allocation5 + $0x8b8] sm:$0xf0] }
 0x3fb   : > { %v4427_v49 = vadd.f32 %v4426_v38, %v10611_v10  ;;  %5652 = vmatpush.bf16.msra.mxu3 %v8609_v41  ;;  %v8225_v26 = vor.u32 %v9326_v23, %v8222_v22  ;;  %v9386_v38 = vld [vmem:[#allocation5 + $0xa8c] sm:$0xf] }
 0x3fc   : > { %5445 = vmatmul.bf16.gmra.mxu2 %v10607_v48  ;;  %5470 = vmatmul.bf16.gmra.mxu3 %v10609_v29  ;;  %v9322_v41 = vld [vmem:[#allocation5 + $0x88c] sm:$0xf] }
 0x3fd   : > { %v10675_v25 = vadd.f32 %v4445_v58, %v4427_v49  ;;  %v8462_v58 = vld [vmem:[#allocation5 + $0xa98] sm:$0xf0]  ;;  %v8353_v49 = vor.u32 %v9358_v32, %v8350_v59  ;;  %5577 = vmatpush.bf16.msra.mxu0 %v8225_v26  ;;  %v9382_v26 = vld [vmem:[#allocation5 + $0xa6c] sm:$0xf] }
 0x3fe   : > { %v8465_v13 = vor.u32 %v9386_v38, %v8462_v58  ;;  %v8446_v38 = vld [vmem:[#allocation5 + $0xa78] sm:$0xf0]  ;;  %v9414_v58 = vld [vmem:[#allocation5 + $0xb6c] sm:$0xf] }
 0x3ff   : > { %v4462_v5 = vpop.f32.mrf.mxu2  ;;  %v4481_v16 = vpop.f32.mrf.mxu3  ;;  %5602 = vmatpush.bf16.msra.mxu1 %v8353_v49  ;;  %v8574_v49 = vld [vmem:[#allocation5 + $0xb78] sm:$0xf0] }
 0x400   : > { %v4463_v63 = vadd.f32 %v4462_v5, %v10615_v51  ;;  %v9418_v51 = vld [vmem:[#allocation5 + $0xb8c] sm:$0xf]  ;;  %v8206_v5 = vld [vmem:[#allocation5 + $0x898] sm:$0xf0]  ;;  %5628 = vmatpush.bf16.msra.mxu2 %v8465_v13  ;;  %v8577_v13 = vor.u32 %v9414_v58, %v8574_v49 }
 0x401   : > { %v8593_v7 = vor.u32 %v9418_v51, %v8590_v55  ;;  %v9410_v58 = vld [vmem:[#allocation5 + $0xb4c] sm:$0xf] }
 0x402   : > { %v10678_v10 = vadd.f32 %v4481_v16, %v4463_v63  ;;  %v5284_v45 = vpop.f32.mrf.mxu0  ;;  %v5309_v56 = vpop.f32.mrf.mxu1  ;;  %v9354_v16 = vld [vmem:[#allocation5 + $0x98c] sm:$0xf] }
 0x403   : > { %v5310_v52 = vadd.f32 %v5309_v56, %v5284_v45  ;;  %v8209_v45 = vor.u32 %v9322_v41, %v8206_v5  ;;  %v8334_v56 = vld [vmem:[#allocation5 + $0x998] sm:$0xf0]  ;;  %5653 = vmatpush.bf16.msra.mxu3 %v8593_v7 }
 0x404   : > { %v8337_v23 = vor.u32 %v9354_v16, %v8334_v56  ;;  %v9350_v56 = vld [vmem:[#allocation5 + $0x96c] sm:$0xf] }
 0x405   : > { %5483 = vmatmul.bf16.vlgmr.msrb.gmra.mxu0 %v10359_v47  ;;  %5508 = vmatmul.bf16.vlgmr.msrb.gmra.mxu1 %v10361_v57 }
 0x406   : > { %5578 = vmatpush.bf16.msra.mxu0 %v8209_v45  ;;  %5603 = vmatpush.bf16.msra.mxu1 %v8337_v23  ;;  %v8190_v45 = vld [vmem:[#allocation5 + $0x878] sm:$0xf0] }
 0x407   : > { %v4464_v61 = vpop.f32.mrf.mxu2  ;;  %v4483_v33 = vpop.f32.mrf.mxu3  ;;  %5654 = vmatpush.bf16.msra.mxu3 %v8577_v13 }
 0x408   : > { %v4465_v63 = vadd.f32 %v4464_v61, %v10622_v31  ;;  %v8449_v31 = vor.u32 %v9382_v26, %v8446_v38  ;;  %v8430_v26 = vld [vmem:[#allocation5 + $0xa58] sm:$0xf0] }
 0x40a   : > { %v10683_v22 = vadd.f32 %v4483_v33, %v4465_v63  ;;  %v5286_v32 = vpop.f32.mrf.mxu0  ;;  %v5311_v59 = vpop.f32.mrf.mxu1  ;;  %5629 = vmatpush.bf16.msra.mxu2 %v8449_v31  ;;  %v9318_v63 = vld [vmem:[#allocation5 + $0x86c] sm:$0xf]  ;;  %v8558_v31 = vld [vmem:[#allocation5 + $0xb58] sm:$0xf0] }
 0x40b   : > { %v8193_v23 = vor.u32 %v9318_v63, %v8190_v45  ;;  %v8318_v32 = vld [vmem:[#allocation5 + $0x978] sm:$0xf0]  ;;  %v9378_v59 = vld [vmem:[#allocation5 + $0xa4c] sm:$0xf] }
 0x40c   : > { %10947 = vst [vmem:[#allocation29_spill] sm:$0xff] %v10683_v22  ;;  %5533 = vmatmul.bf16.vlgmr.msrb.gmra.mxu2 %v10367_v0  ;;  %5558 = vmatmul.bf16.vlgmr.msrb.gmra.mxu3 %v10369_v8  ;;  %v8433_v38 = vor.u32 %v9378_v59, %v8430_v26  ;;  %v8542_v26 = vld [vmem:[#allocation5 + $0xb38] sm:$0xf0] }
 0x40d   : > { %5579 = vmatpush.bf16.msra.mxu0 %v8193_v23  ;;  %v9406_v23 = vld [vmem:[#allocation5 + $0xb2c] sm:$0xf] }
 0x40e   : > { %5630 = vmatpush.bf16.msra.mxu2 %v8433_v38  ;;  %v8545_v38 = vor.u32 %v9406_v23, %v8542_v26 }
 0x40f   : > { %v5334_v51 = vpop.f32.mrf.mxu2  ;;  %v5359_v55 = vpop.f32.mrf.mxu3 }
 0x410   : > { %v5335_v61 = vadd.f32 %v5334_v51, %v5310_v52  ;;  %v8321_v52 = vor.u32 %v9350_v56, %v8318_v32  ;;  %v9314_v51 = vld [vmem:[#allocation5 + $0x84c] sm:$0xf]  ;;  %v8414_v32 = vld [vmem:[#allocation5 + $0xa38] sm:$0xf0] }
 0x411   : > { %v9374_v56 = vld [vmem:[#allocation5 + $0xa2c] sm:$0xf] }
 0x412   : > { %v5360_v33 = vadd.f32 %v5359_v55, %v5335_v61  ;;  %v5288_v7 = vpop.f32.mrf.mxu0  ;;  %v5313_v41 = vpop.f32.mrf.mxu1  ;;  %v8174_v55 = vld [vmem:[#allocation5 + $0x858] sm:$0xf0]  ;;  %v9346_v61 = vld [vmem:[#allocation5 + $0x94c] sm:$0xf]  ;;  %5604 = vmatpush.bf16.msra.mxu1 %v8321_v52  ;;  %v8417_v59 = vor.u32 %v9374_v56, %v8414_v32 }
 0x413   : > { %v5314_v5 = vadd.f32 %v5313_v41, %v5288_v7  ;;  %v8302_v7 = vld [vmem:[#allocation5 + $0x958] sm:$0xf0] }
 0x414   : > { %v10688_v16 = vadd.f32 %v5360_v33, %v10448_v46  ;;  %v8561_v46 = vor.u32 %v9410_v58, %v8558_v31  ;;  %v8177_v33 = vor.u32 %v9314_v51, %v8174_v55  ;;  %v8305_v41 = vor.u32 %v9346_v61, %v8302_v7  ;;  %v9310_v58 = vld [vmem:[#allocation5 + $0x82c] sm:$0xf]  ;;  %v8158_v52 = vld [vmem:[#allocation5 + $0x838] sm:$0xf0]  ;;  %5631 = vmatpush.bf16.msra.mxu2 %v8417_v59 }
 0x415   : > { %5487 = vmatmul.bf16.gmra.mxu0 %v10381_v27  ;;  %5512 = vmatmul.bf16.gmra.mxu1 %v10383_v21  ;;  %v8161_v31 = vor.u32 %v9310_v58, %v8158_v52  ;;  %v8142_v7 = vld [vmem:[#allocation5 + $0x818] sm:$0xf0]  ;;  %v9370_v59 = vld [vmem:[#allocation5 + $0xa0c] sm:$0xf] }
 0x416   : > { %5655 = vmatpush.bf16.msra.mxu3 %v8561_v46  ;;  %5580 = vmatpush.bf16.msra.mxu0 %v8177_v33  ;;  %v9306_v33 = vld [vmem:[#allocation5 + $0x80c] sm:$0xf]  ;;  %v8398_v52 = vld [vmem:[#allocation5 + $0xa18] sm:$0xf0] }
 0x417   : > { %v5336_v49 = vpop.f32.mrf.mxu2  ;;  %v5361_v13 = vpop.f32.mrf.mxu3  ;;  %5605 = vmatpush.bf16.msra.mxu1 %v8305_v41  ;;  %v8145_v41 = vor.u32 %v9306_v33, %v8142_v7  ;;  %v8886_v7 = vld [vmem:[#allocation7 + $0x5f0] sm:$0xf0] }
 0x418   : > { %v9342_v49 = vld [vmem:[#allocation5 + $0x92c] sm:$0xf]  ;;  %v8286_v13 = vld [vmem:[#allocation5 + $0x938] sm:$0xf0] }
 0x419   : > { %v8289_v55 = vor.u32 %v9342_v49, %v8286_v13 }
 0x41a   : > { %v5290_v63 = vpop.f32.mrf.mxu0  ;;  %v5315_v45 = vpop.f32.mrf.mxu1  ;;  %5656 = vmatpush.bf16.msra.mxu3 %v8545_v38  ;;  %5581 = vmatpush.bf16.msra.mxu0 %v8161_v31  ;;  %v8401_v38 = vor.u32 %v9370_v59, %v8398_v52  ;;  %v8526_v31 = vld [vmem:[#allocation5 + $0xb18] sm:$0xf0] }
 0x41b   : > { %v9338_v63 = vld [vmem:[#allocation5 + $0x90c] sm:$0xf]  ;;  %5606 = vmatpush.bf16.msra.mxu1 %v8289_v55  ;;  %v8270_v45 = vld [vmem:[#allocation5 + $0x918] sm:$0xf0]  ;;  %v8758_v55 = vld [vmem:[#allocation7 + $0x4f0] sm:$0xf0] }
 0x41c   : > { %5537 = vmatmul.bf16.gmra.mxu2 %v10389_v53  ;;  %5562 = vmatmul.bf16.gmra.mxu3 %v10391_v20  ;;  %v8273_v23 = vor.u32 %v9338_v63, %v8270_v45 }
 0x41d   : > { %5632 = vmatpush.bf16.msra.mxu2 %v8401_v38  ;;  %v8756_v38 = vld [vmem:[#allocation7 + $0x4e0] sm:$0xf] }
 0x41e   : > { %5582 = vmatpush.bf16.msra.mxu0 %v8145_v41 }
 0x41f   : > { %v5338_v46 = vpop.f32.mrf.mxu2  ;;  %v5363_v51 = vpop.f32.mrf.mxu3  ;;  %5607 = vmatpush.bf16.msra.mxu1 %v8273_v23 }
 0x420   : > { %v5339_v61 = vadd.f32 %v5338_v46, %v5314_v5  ;;  %v9402_v5 = vld [vmem:[#allocation5 + $0xb0c] sm:$0xf] }
 0x421   : > { %v8529_v49 = vor.u32 %v9402_v5, %v8526_v31  ;;  %v9463_v31 = vld [vmem:[#allocation7 + $0x4ec] sm:$0xf0] }
 0x422   : > { %v5364_v56 = vadd.f32 %v5363_v51, %v5339_v61  ;;  %v5292_v32 = vpop.f32.mrf.mxu0  ;;  %v5317_v22 = vpop.f32.mrf.mxu1  ;;  %v9493_v61 = vld [vmem:[#allocation7 + $0x5e4] sm:$0xf] }
 0x423   : > { %v5318_v26 = vadd.f32 %v5317_v22, %v5292_v32  ;;  %5657 = vmatpush.bf16.msra.mxu3 %v8529_v49  ;;  %v8889_v63 = vor.u32 %v9493_v61, %v8886_v7  ;;  %v8884_v49 = vld [vmem:[#allocation7 + $0x5e0] sm:$0xf]  ;;  %v8870_v61 = vld [vmem:[#allocation7 + $0x5d0] sm:$0xf0] }
 0x424   : > { %v10695_v58 = vadd.f32 %v5364_v56, %v10455_v37  ;;  %v9461_v37 = vld [vmem:[#allocation7 + $0x4e4] sm:$0xf] }
 0x425   : > { %5491 = vmatmul.bf16.gmra.mxu0 %v10403_v2  ;;  %5516 = vmatmul.bf16.gmra.mxu1 %v10405_v4  ;;  %v8761_v33 = vor.u32 %v9461_v37, %v8758_v55  ;;  %v9489_v55 = vld [vmem:[#allocation7 + $0x5c4] sm:$0xf] }
 0x427   : > { %v5340_v13 = vpop.f32.mrf.mxu2  ;;  %v5365_v46 = vpop.f32.mrf.mxu3  ;;  %6138 = vmatpush.bf16.msrb.mxu2 %v8761_v33  ;;  %6157 = vmatpush.bf16.msrb.mxu3 %v8889_v63  ;;  %v8740_v63 = vld [vmem:[#allocation7 + $0x4c0] sm:$0xf] }
 0x428   : > { %v8757_v13 = vor.u32 %v9463_v31, %v8756_v38  ;;  %v9495_v46 = vld [vmem:[#allocation7 + $0x5ec] sm:$0xf0]  ;;  %v9453_v31 = vld [vmem:[#allocation7 + $0x4a4] sm:$0xf] }
 0x42a   : > { %v5294_v22 = vpop.f32.mrf.mxu0  ;;  %v5319_v51 = vpop.f32.mrf.mxu1  ;;  %6100 = vmatpush.bf16.msrb.mxu0 %v8757_v13  ;;  %v9485_v13 = vld [vmem:[#allocation7 + $0x5a4] sm:$0xf] }
 0x42b   : > { %v9457_v22 = vld [vmem:[#allocation7 + $0x4c4] sm:$0xf]  ;;  %v8742_v51 = vld [vmem:[#allocation7 + $0x4d0] sm:$0xf0] }
 0x42c   : > { %5541 = vmatmul.bf16.gmra.mxu2 %v10411_v44  ;;  %5566 = vmatmul.bf16.gmra.mxu3 %v10413_v60  ;;  %v8745_v37 = vor.u32 %v9457_v22, %v8742_v51  ;;  %v8854_v22 = vld [vmem:[#allocation7 + $0x5b0] sm:$0xf0] }
 0x42d   : > { %v8857_v51 = vor.u32 %v9485_v13, %v8854_v22  ;;  %v8838_v13 = vld [vmem:[#allocation7 + $0x590] sm:$0xf0] }
 0x42e   : > { %6139 = vmatpush.bf16.msrb.mxu2 %v8745_v37 }
 0x42f   : > { %v5342_v41 = vpop.f32.mrf.mxu2  ;;  %v5367_v45 = vpop.f32.mrf.mxu3 }
 0x430   : > { %v5343_v56 = vadd.f32 %v5342_v41, %v5318_v26  ;;  %v8885_v26 = vor.u32 %v9495_v46, %v8884_v49  ;;  %v9459_v41 = vld [vmem:[#allocation7 + $0x4cc] sm:$0xf0]  ;;  %v8726_v49 = vld [vmem:[#allocation7 + $0x4b0] sm:$0xf0] }
 0x431   : > { %v8729_v46 = vor.u32 %v9453_v31, %v8726_v49  ;;  %v9481_v49 = vld [vmem:[#allocation7 + $0x584] sm:$0xf] }
 0x432   : > { %v5368_v32 = vadd.f32 %v5367_v45, %v5343_v56  ;;  %v5296_v23 = vpop.f32.mrf.mxu0  ;;  %v5321_v59 = vpop.f32.mrf.mxu1  ;;  %v8868_v45 = vld [vmem:[#allocation7 + $0x5c0] sm:$0xf]  ;;  %6119 = vmatpush.bf16.msrb.mxu1 %v8885_v26  ;;  %v8741_v56 = vor.u32 %v9459_v41, %v8740_v63 }
 0x433   : > { %v5322_v52 = vadd.f32 %v5321_v59, %v5296_v23  ;;  %6140 = vmatpush.bf16.msrb.mxu2 %v8729_v46  ;;  %v8724_v41 = vld [vmem:[#allocation7 + $0x4a0] sm:$0xf] }
 0x434   : > { %v10702_v5 = vadd.f32 %v5368_v32, %v10462_v35  ;;  %v8873_v35 = vor.u32 %v9489_v55, %v8870_v61  ;;  %v9491_v32 = vld [vmem:[#allocation7 + $0x5cc] sm:$0xf0]  ;;  %6101 = vmatpush.bf16.msrb.mxu0 %v8741_v56  ;;  %v8852_v56 = vld [vmem:[#allocation7 + $0x5a0] sm:$0xf] }
 0x435   : > { %5495 = vmatmul.bf16.gmra.mxu0 %v10597_v19  ;;  %5520 = vmatmul.bf16.gmra.mxu1 %v10599_v42  ;;  %v8869_v23 = vor.u32 %v9491_v32, %v8868_v45  ;;  %v9455_v45 = vld [vmem:[#allocation7 + $0x4ac] sm:$0xf0] }
 0x436   : > { %6158 = vmatpush.bf16.msrb.mxu3 %v8873_v35  ;;  %v8725_v32 = vor.u32 %v9455_v45, %v8724_v41  ;;  %v8694_v41 = vld [vmem:[#allocation7 + $0x470] sm:$0xf0]  ;;  %v9477_v45 = vld [vmem:[#allocation7 + $0x564] sm:$0xf] }
 0x437   : > { %v5344_v33 = vpop.f32.mrf.mxu2  ;;  %v5369_v7 = vpop.f32.mrf.mxu3  ;;  %6120 = vmatpush.bf16.msrb.mxu1 %v8869_v23  ;;  %v9487_v23 = vld [vmem:[#allocation7 + $0x5ac] sm:$0xf0] }
 0x438   : > { %6102 = vmatpush.bf16.msrb.mxu0 %v8725_v32  ;;  %v8822_v32 = vld [vmem:[#allocation7 + $0x570] sm:$0xf0] }
 0x43a   : > { %v5298_v59 = vpop.f32.mrf.mxu0  ;;  %v5323_v38 = vpop.f32.mrf.mxu1  ;;  %6159 = vmatpush.bf16.msrb.mxu3 %v8857_v51  ;;  %v8708_v51 = vld [vmem:[#allocation7 + $0x480] sm:$0xf] }
 0x43b   : > { %v9449_v59 = vld [vmem:[#allocation7 + $0x484] sm:$0xf]  ;;  %v8710_v38 = vld [vmem:[#allocation7 + $0x490] sm:$0xf0] }
 0x43c   : > { %5545 = vmatmul.bf16.gmra.mxu2 %v10607_v48  ;;  %5570 = vmatmul.bf16.gmra.mxu3 %v10609_v29  ;;  %v8713_v31 = vor.u32 %v9449_v59, %v8710_v38 }
 0x43e   : > { %6141 = vmatpush.bf16.msrb.mxu2 %v8713_v31 }
 0x43f   : > { %v5346_v26 = vpop.f32.mrf.mxu2  ;;  %v5371_v37 = vpop.f32.mrf.mxu3 }
 0x440   : > { %v5347_v55 = vadd.f32 %v5346_v26, %v5322_v52  ;;  %v8853_v52 = vor.u32 %v9487_v23, %v8852_v56  ;;  %v9451_v26 = vld [vmem:[#allocation7 + $0x48c] sm:$0xf0]  ;;  %v8825_v23 = vor.u32 %v9477_v45, %v8822_v32 }
 0x441   : > { %v9443_v45 = vld [vmem:[#allocation7 + $0x44c] sm:$0xf0] }
 0x442   : > { %v5372_v61 = vadd.f32 %v5371_v37, %v5347_v55  ;;  %v5384_v33 = vpop.f32.mrf.mxu0  ;;  %v5409_v7 = vpop.f32.mrf.mxu1  ;;  %v8836_v37 = vld [vmem:[#allocation7 + $0x580] sm:$0xf]  ;;  %6121 = vmatpush.bf16.msrb.mxu1 %v8853_v52  ;;  %v9483_v55 = vld [vmem:[#allocation7 + $0x58c] sm:$0xf0] }
 0x443   : > { %v5410_v35 = vadd.f32 %v5409_v7, %v5384_v33  ;;  %v9445_v7 = vld [vmem:[#allocation7 + $0x464] sm:$0xf]  ;;  %v9475_v32 = vld [vmem:[#allocation7 + $0x54c] sm:$0xf0] }
 0x444   : > { %v10709_v63 = vadd.f32 %v5372_v61, %v10469_v3  ;;  %v8841_v3 = vor.u32 %v9481_v49, %v8838_v13  ;;  %v8697_v56 = vor.u32 %v9445_v7, %v8694_v41  ;;  %v8676_v41 = vld [vmem:[#allocation7 + $0x440] sm:$0xf] }
 0x445   : > { %5583 = vmatmul.bf16.vlgmr.msra.gmra.mxu0 %v10359_v47  ;;  %5608 = vmatmul.bf16.vlgmr.msra.gmra.mxu1 %v10361_v57  ;;  %v8709_v47 = vor.u32 %v9451_v26, %v8708_v51  ;;  %v8837_v57 = vor.u32 %v9483_v55, %v8836_v37  ;;  %v9479_v26 = vld [vmem:[#allocation7 + $0x56c] sm:$0xf0]  ;;  %v9441_v37 = vld [vmem:[#allocation7 + $0x444] sm:$0xf] }
 0x446   : > { %6160 = vmatpush.bf16.msrb.mxu3 %v8841_v3  ;;  %6142 = vmatpush.bf16.msrb.mxu2 %v8697_v56  ;;  %v8820_v3 = vld [vmem:[#allocation7 + $0x560] sm:$0xf] }
 0x447   : > { %v5348_v46 = vpop.f32.mrf.mxu2  ;;  %v5373_v22 = vpop.f32.mrf.mxu3  ;;  %6103 = vmatpush.bf16.msrb.mxu0 %v8709_v47  ;;  %6122 = vmatpush.bf16.msrb.mxu1 %v8837_v57  ;;  %v8678_v47 = vld [vmem:[#allocation7 + $0x450] sm:$0xf0]  ;;  %v9473_v57 = vld [vmem:[#allocation7 + $0x544] sm:$0xf]  ;;  %v8804_v56 = vld [vmem:[#allocation7 + $0x540] sm:$0xf] }
 0x448   : > { %v9447_v22 = vld [vmem:[#allocation7 + $0x46c] sm:$0xf0]  ;;  %v8681_v55 = vor.u32 %v9441_v37, %v8678_v47 }
 0x449   : > { %v9471_v37 = vld [vmem:[#allocation7 + $0x52c] sm:$0xf0] }
 0x44a   : > { %v5386_v61 = vpop.f32.mrf.mxu0  ;;  %v5411_v33 = vpop.f32.mrf.mxu1  ;;  %6161 = vmatpush.bf16.msrb.mxu3 %v8825_v23  ;;  %6143 = vmatpush.bf16.msrb.mxu2 %v8681_v55 }
 0x44b   : > { %v8806_v61 = vld [vmem:[#allocation7 + $0x550] sm:$0xf0] }
 0x44c   : > { %5633 = vmatmul.bf16.vlgmr.msra.gmra.mxu2 %v10367_v0  ;;  %5658 = vmatmul.bf16.vlgmr.msra.gmra.mxu3 %v10369_v8  ;;  %v8692_v8 = vld [vmem:[#allocation7 + $0x460] sm:$0xf] }
 0x44d   : > { %v8693_v51 = vor.u32 %v9447_v22, %v8692_v8  ;;  %v8660_v8 = vld [vmem:[#allocation7 + $0x420] sm:$0xf]  ;;  %v9439_v22 = vld [vmem:[#allocation7 + $0x42c] sm:$0xf0] }
 0x44f   : > { %v5434_v59 = vpop.f32.mrf.mxu2  ;;  %v5459_v38 = vpop.f32.mrf.mxu3  ;;  %6104 = vmatpush.bf16.msrb.mxu0 %v8693_v51  ;;  %v8661_v51 = vor.u32 %v9439_v22, %v8660_v8  ;;  %v8892_v8 = vld [vmem:[#allocation7 + $0x5e8] sm:$0xf]  ;;  %v9496_v22 = vld [vmem:[#allocation7 + $0x5f4] sm:$0xf0] }
 0x450   : > { %v5435_v52 = vadd.f32 %v5434_v59, %v5410_v35  ;;  %v8821_v35 = vor.u32 %v9479_v26, %v8820_v3  ;;  %v8788_v26 = vld [vmem:[#allocation7 + $0x520] sm:$0xf] }
 0x451   : > { %v8789_v55 = vor.u32 %v9471_v37, %v8788_v26  ;;  %v8748_v26 = vld [vmem:[#allocation7 + $0x4c8] sm:$0xf]  ;;  %v9460_v37 = vld [vmem:[#allocation7 + $0x4d4] sm:$0xf0] }
 0x452   : > { %v5460_v31 = vadd.f32 %v5459_v38, %v5435_v52  ;;  %v5388_v49 = vpop.f32.mrf.mxu0  ;;  %v5413_v13 = vpop.f32.mrf.mxu1  ;;  %6123 = vmatpush.bf16.msrb.mxu1 %v8821_v35  ;;  %v9437_v38 = vld [vmem:[#allocation7 + $0x424] sm:$0xf]  ;;  %v8662_v52 = vld [vmem:[#allocation7 + $0x430] sm:$0xf0] }
 0x453   : > { %v5414_v46 = vadd.f32 %v5413_v13, %v5388_v49  ;;  %v8665_v49 = vor.u32 %v9437_v38, %v8662_v52  ;;  %v8790_v13 = vld [vmem:[#allocation7 + $0x530] sm:$0xf0]  ;;  %v8764_v52 = vld [vmem:[#allocation7 + $0x4e8] sm:$0xf] }
 0x454   : > { %v10716_v0 = vadd.f32 %v5460_v31, %v10476_v28  ;;  %v8809_v28 = vor.u32 %v9473_v57, %v8806_v61  ;;  %v9469_v31 = vld [vmem:[#allocation7 + $0x524] sm:$0xf]  ;;  %v8772_v61 = vld [vmem:[#allocation7 + $0x500] sm:$0xf]  ;;  %v8774_v38 = vld [vmem:[#allocation7 + $0x510] sm:$0xf0] }
 0x455   : > { %5587 = vmatmul.bf16.gmra.mxu0 %v10381_v27  ;;  %5612 = vmatmul.bf16.gmra.mxu1 %v10383_v21  ;;  %v8677_v27 = vor.u32 %v9443_v45, %v8676_v41  ;;  %v8805_v21 = vor.u32 %v9475_v32, %v8804_v56  ;;  %v8793_v3 = vor.u32 %v9469_v31, %v8790_v13  ;;  %v9464_v31 = vld [vmem:[#allocation7 + $0x4f4] sm:$0xf0] }
 0x456   : > { %6162 = vmatpush.bf16.msrb.mxu3 %v8809_v28  ;;  %6144 = vmatpush.bf16.msrb.mxu2 %v8665_v49  ;;  %v8765_v13 = vor.u32 %v9464_v31, %v8764_v52  ;;  %v9490_v52 = vld [vmem:[#allocation7 + $0x5cc] sm:$0xf] }
 0x457   : > { %v5436_v33 = vpop.f32.mrf.mxu2  ;;  %v5461_v7 = vpop.f32.mrf.mxu3  ;;  %6105 = vmatpush.bf16.msrb.mxu0 %v8677_v27  ;;  %6124 = vmatpush.bf16.msrb.mxu1 %v8805_v21  ;;  %v9433_v21 = vld [vmem:[#allocation7 + $0x404] sm:$0xf] }
 0x458   : > { %v9467_v7 = vld [vmem:[#allocation7 + $0x50c] sm:$0xf0] }
 0x459   : > { %v8773_v56 = vor.u32 %v9467_v7, %v8772_v61  ;;  %v9494_v61 = vld [vmem:[#allocation7 + $0x5ec] sm:$0xf]  ;;  %v8894_v7 = vld [vmem:[#allocation7 + $0x5f8] sm:$0xf0] }
 0x45a   : > { %v5390_v23 = vpop.f32.mrf.mxu0  ;;  %v5415_v59 = vpop.f32.mrf.mxu1  ;;  %6163 = vmatpush.bf16.msrb.mxu3 %v8793_v3 }
 0x45b   : > { %6106 = vmatpush.bf16.msrb.mxu0 %v8661_v51  ;;  %6125 = vmatpush.bf16.msrb.mxu1 %v8789_v55  ;;  %v8646_v23 = vld [vmem:[#allocation7 + $0x410] sm:$0xf0]  ;;  %v8893_v51 = vor.u32 %v9496_v22, %v8892_v8  ;;  %v8716_v22 = vld [vmem:[#allocation7 + $0x488] sm:$0xf] }
 0x45c   : > { %5637 = vmatmul.bf16.gmra.mxu2 %v10389_v53  ;;  %5662 = vmatmul.bf16.gmra.mxu3 %v10391_v20  ;;  %v8644_v53 = vld [vmem:[#allocation7 + $0x400] sm:$0xf]  ;;  %v9435_v20 = vld [vmem:[#allocation7 + $0x40c] sm:$0xf0]  ;;  %v8649_v59 = vor.u32 %v9433_v21, %v8646_v23  ;;  %v9488_v23 = vld [vmem:[#allocation7 + $0x5b4] sm:$0xf0] }
 0x45d   : > { %v8645_v33 = vor.u32 %v9435_v20, %v8644_v53  ;;  %v9462_v53 = vld [vmem:[#allocation7 + $0x4ec] sm:$0xf]  ;;  %v8766_v20 = vld [vmem:[#allocation7 + $0x4f8] sm:$0xf0] }
 0x45e   : > { %6145 = vmatpush.bf16.msrb.mxu2 %v8649_v59  ;;  %v9458_v59 = vld [vmem:[#allocation7 + $0x4cc] sm:$0xf] }
 0x45f   : > { %v5438_v47 = vpop.f32.mrf.mxu2  ;;  %v5463_v35 = vpop.f32.mrf.mxu3  ;;  %6107 = vmatpush.bf16.msrb.mxu0 %v8645_v33  ;;  %6126 = vmatpush.bf16.msrb.mxu1 %v8773_v56  ;;  %v8769_v33 = vor.u32 %v9462_v53, %v8766_v20  ;;  %v8860_v56 = vld [vmem:[#allocation7 + $0x5a8] sm:$0xf] }
 0x460   : > { %v5439_v57 = vadd.f32 %v5438_v47, %v5414_v46  ;;  %v9465_v46 = vld [vmem:[#allocation7 + $0x504] sm:$0xf]  ;;  %v9492_v47 = vld [vmem:[#allocation7 + $0x5d4] sm:$0xf0] }
 0x461   : > { %v8777_v49 = vor.u32 %v9465_v46, %v8774_v38  ;;  %v8861_v46 = vor.u32 %v9488_v23, %v8860_v56  ;;  %v8750_v38 = vld [vmem:[#allocation7 + $0x4d8] sm:$0xf0]  ;;  %v9450_v23 = vld [vmem:[#allocation7 + $0x48c] sm:$0xf] }
 0x462   : > { %v5464_v28 = vadd.f32 %v5463_v35, %v5439_v57  ;;  %v5392_v41 = vpop.f32.mrf.mxu0  ;;  %v5417_v45 = vpop.f32.mrf.mxu1  ;;  %6214 = vmatpush.bf16.msra.mxu2 %v8769_v33 }
 0x463   : > { %v5418_v27 = vadd.f32 %v5417_v45, %v5392_v41  ;;  %6164 = vmatpush.bf16.msrb.mxu3 %v8777_v49  ;;  %6176 = vmatpush.bf16.msra.mxu0 %v8765_v13  ;;  %v8732_v41 = vld [vmem:[#allocation7 + $0x4a8] sm:$0xf]  ;;  %v9456_v45 = vld [vmem:[#allocation7 + $0x4b4] sm:$0xf0]  ;;  %v8753_v13 = vor.u32 %v9458_v59, %v8750_v38  ;;  %v9482_v59 = vld [vmem:[#allocation7 + $0x58c] sm:$0xf] }
 0x464   : > { %v10723_v32 = vadd.f32 %v5464_v28, %v10483_v34  ;;  %6195 = vmatpush.bf16.msra.mxu1 %v8893_v51  ;;  %v8897_v28 = vor.u32 %v9494_v61, %v8894_v7  ;;  %v8733_v21 = vor.u32 %v9456_v45, %v8732_v41  ;;  %v9484_v51 = vld [vmem:[#allocation7 + $0x594] sm:$0xf0]  ;;  %v8700_v7 = vld [vmem:[#allocation7 + $0x468] sm:$0xf] }
 0x465   : > { %5591 = vmatmul.bf16.gmra.mxu0 %v10403_v2  ;;  %5616 = vmatmul.bf16.gmra.mxu1 %v10405_v4  ;;  %v8876_v2 = vld [vmem:[#allocation7 + $0x5c8] sm:$0xf]  ;;  %v8749_v4 = vor.u32 %v9460_v37, %v8748_v26  ;;  %v9480_v45 = vld [vmem:[#allocation7 + $0x574] sm:$0xf0] }
 0x466   : > { %v8877_v57 = vor.u32 %v9492_v47, %v8876_v2  ;;  %6215 = vmatpush.bf16.msra.mxu2 %v8753_v13  ;;  %v8828_v41 = vld [vmem:[#allocation7 + $0x568] sm:$0xf] }
 0x467   : > { %v5440_v3 = vpop.f32.mrf.mxu2  ;;  %v5465_v34 = vpop.f32.mrf.mxu3  ;;  %6177 = vmatpush.bf16.msra.mxu0 %v8749_v4  ;;  %6233 = vmatpush.bf16.msra.mxu3 %v8897_v28  ;;  %v9448_v28 = vld [vmem:[#allocation7 + $0x474] sm:$0xf0]  ;;  %v8684_v13 = vld [vmem:[#allocation7 + $0x448] sm:$0xf] }
 0x468   : > { %6196 = vmatpush.bf16.msra.mxu1 %v8877_v57  ;;  %v9452_v3 = vld [vmem:[#allocation7 + $0x494] sm:$0xf0]  ;;  %v8844_v34 = vld [vmem:[#allocation7 + $0x588] sm:$0xf]  ;;  %v9486_v57 = vld [vmem:[#allocation7 + $0x5ac] sm:$0xf]  ;;  %v8701_v56 = vor.u32 %v9448_v28, %v8700_v7 }
 0x469   : > { %v8717_v4 = vor.u32 %v9452_v3, %v8716_v22  ;;  %v8845_v47 = vor.u32 %v9484_v51, %v8844_v34  ;;  %v9446_v34 = vld [vmem:[#allocation7 + $0x46c] sm:$0xf]  ;;  %v8702_v51 = vld [vmem:[#allocation7 + $0x478] sm:$0xf0] }
 0x46a   : > { %v5394_v35 = vpop.f32.mrf.mxu0  ;;  %v5419_v55 = vpop.f32.mrf.mxu1  ;;  %v8686_v7 = vld [vmem:[#allocation7 + $0x458] sm:$0xf0]  ;;  %v9474_v28 = vld [vmem:[#allocation7 + $0x54c] sm:$0xf] }
 0x46b   : > { %6178 = vmatpush.bf16.msra.mxu0 %v8733_v21  ;;  %v9454_v35 = vld [vmem:[#allocation7 + $0x4ac] sm:$0xf]  ;;  %v8734_v55 = vld [vmem:[#allocation7 + $0x4b8] sm:$0xf0]  ;;  %v8829_v21 = vor.u32 %v9480_v45, %v8828_v41 }
 0x46c   : > { %5641 = vmatmul.bf16.gmra.mxu2 %v10411_v44  ;;  %5666 = vmatmul.bf16.gmra.mxu3 %v10413_v60  ;;  %v8878_v44 = vld [vmem:[#allocation7 + $0x5d8] sm:$0xf0]  ;;  %v8737_v20 = vor.u32 %v9454_v35, %v8734_v55  ;;  %v9440_v35 = vld [vmem:[#allocation7 + $0x434] sm:$0xf0]  ;;  %v8796_v55 = vld [vmem:[#allocation7 + $0x528] sm:$0xf] }
 0x46d   : > { %v8881_v60 = vor.u32 %v9490_v52, %v8878_v44  ;;  %6197 = vmatpush.bf16.msra.mxu1 %v8861_v46  ;;  %v8718_v46 = vld [vmem:[#allocation7 + $0x498] sm:$0xf0]  ;;  %v9444_v44 = vld [vmem:[#allocation7 + $0x454] sm:$0xf0] }
 0x46e   : > { %6216 = vmatpush.bf16.msra.mxu2 %v8737_v20  ;;  %v8685_v22 = vor.u32 %v9444_v44, %v8684_v13  ;;  %v9438_v44 = vld [vmem:[#allocation7 + $0x42c] sm:$0xf] }
 0x46f   : > { %v5442_v31 = vpop.f32.mrf.mxu2  ;;  %v5467_v49 = vpop.f32.mrf.mxu3  ;;  %6234 = vmatpush.bf16.msra.mxu3 %v8881_v60  ;;  %6179 = vmatpush.bf16.msra.mxu0 %v8717_v4 }
 0x470   : > { %v5443_v8 = vadd.f32 %v5442_v31, %v5418_v27  ;;  %v8862_v27 = vld [vmem:[#allocation7 + $0x5b8] sm:$0xf0] }
 0x471   : > { %v8865_v33 = vor.u32 %v9486_v57, %v8862_v27  ;;  %6198 = vmatpush.bf16.msra.mxu1 %v8845_v47  ;;  %v8846_v31 = vld [vmem:[#allocation7 + $0x598] sm:$0xf0]  ;;  %v8668_v47 = vld [vmem:[#allocation7 + $0x428] sm:$0xf]  ;;  %v9472_v57 = vld [vmem:[#allocation7 + $0x534] sm:$0xf0] }
 0x472   : > { %v5468_v26 = vadd.f32 %v5467_v49, %v5443_v8  ;;  %v5396_v37 = vpop.f32.mrf.mxu0  ;;  %v5421_v2 = vpop.f32.mrf.mxu1  ;;  %v8849_v49 = vor.u32 %v9482_v59, %v8846_v31  ;;  %v9476_v8 = vld [vmem:[#allocation7 + $0x554] sm:$0xf0]  ;;  %v8669_v20 = vor.u32 %v9440_v35, %v8668_v47  ;;  %v8797_v27 = vor.u32 %v9472_v57, %v8796_v55  ;;  %v8780_v59 = vld [vmem:[#allocation7 + $0x508] sm:$0xf]  ;;  %v8782_v55 = vld [vmem:[#allocation7 + $0x518] sm:$0xf0] }
 0x473   : > { %v5422_v53 = vadd.f32 %v5421_v2, %v5396_v37  ;;  %6235 = vmatpush.bf16.msra.mxu3 %v8865_v33  ;;  %6180 = vmatpush.bf16.msra.mxu0 %v8701_v56  ;;  %v8705_v37 = vor.u32 %v9446_v34, %v8702_v51  ;;  %v8830_v2 = vld [vmem:[#allocation7 + $0x578] sm:$0xf0]  ;;  %v9442_v33 = vld [vmem:[#allocation7 + $0x44c] sm:$0xf]  ;;  %v10949_v51 = vld [vmem:[#allocation24_spill] sm:$0xff] }
 0x474   : > { %v10730_v61 = vadd.f32 %v5468_v26, %v10490_v9  ;;  %v8721_v9 = vor.u32 %v9450_v23, %v8718_v46  ;;  %v9478_v26 = vld [vmem:[#allocation7 + $0x56c] sm:$0xf]  ;;  %v8689_v56 = vor.u32 %v9442_v33, %v8686_v7  ;;  %v8652_v23 = vld [vmem:[#allocation7 + $0x408] sm:$0xf]  ;;  %v9436_v46 = vld [vmem:[#allocation7 + $0x414] sm:$0xf0] }
 0x475   : > { %5595 = vmatmul.bf16.gmra.mxu0 %v10597_v19  ;;  %5620 = vmatmul.bf16.gmra.mxu1 %v10599_v42  ;;  %v8812_v19 = vld [vmem:[#allocation7 + $0x548] sm:$0xf]  ;;  %v8833_v4 = vor.u32 %v9478_v26, %v8830_v2  ;;  %v10948_v34 = vld [vmem:[#allocation23_spill] sm:$0xff]  ;;  %v9434_v26 = vld [vmem:[#allocation7 + $0x40c] sm:$0xf] }
 0x476   : > { %6199 = vmatpush.bf16.msra.mxu1 %v8829_v21  ;;  %v8813_v3 = vor.u32 %v9476_v8, %v8812_v19  ;;  %6217 = vmatpush.bf16.msra.mxu2 %v8721_v9  ;;  %v8670_v19 = vld [vmem:[#allocation7 + $0x438] sm:$0xf0]  ;;  %v9470_v8 = vld [vmem:[#allocation7 + $0x52c] sm:$0xf] }
 0x477   : > { %v5444_v38 = vpop.f32.mrf.mxu2  ;;  %v5469_v52 = vpop.f32.mrf.mxu3  ;;  %6236 = vmatpush.bf16.msra.mxu3 %v8849_v49  ;;  %6181 = vmatpush.bf16.msra.mxu0 %v8685_v22  ;;  %v8653_v49 = vor.u32 %v9436_v46, %v8652_v23  ;;  %v9466_v2 = vld [vmem:[#allocation7 + $0x50c] sm:$0xf] }
 0x478   : > { %v9468_v38 = vld [vmem:[#allocation7 + $0x514] sm:$0xf0]  ;;  %v8785_v57 = vor.u32 %v9466_v2, %v8782_v55 }
 0x479   : > { %v8781_v13 = vor.u32 %v9468_v38, %v8780_v59 }
 0x47a   : > { %v5398_v42 = vpop.f32.mrf.mxu0  ;;  %v5423_v60 = vpop.f32.mrf.mxu1  ;;  %6200 = vmatpush.bf16.msra.mxu1 %v8813_v3  ;;  %6218 = vmatpush.bf16.msra.mxu2 %v8705_v37  ;;  %v8654_v37 = vld [vmem:[#allocation7 + $0x418] sm:$0xf0] }
 0x47b   : > { %6237 = vmatpush.bf16.msra.mxu3 %v8833_v4  ;;  %6182 = vmatpush.bf16.msra.mxu0 %v8669_v20  ;;  %v8673_v60 = vor.u32 %v9438_v44, %v8670_v19  ;;  %v8657_v35 = vor.u32 %v9434_v26, %v8654_v37 }
 0x47c   : > { %5645 = vmatmul.bf16.gmra.mxu2 %v10607_v48  ;;  %5670 = vmatmul.bf16.gmra.mxu3 %v10609_v29  ;;  %v8814_v48 = vld [vmem:[#allocation7 + $0x558] sm:$0xf0] }
 0x47d   : > { %v8817_v29 = vor.u32 %v9474_v28, %v8814_v48 }
 0x47e   : > { %6201 = vmatpush.bf16.msra.mxu1 %v8797_v27  ;;  %6219 = vmatpush.bf16.msra.mxu2 %v8689_v56 }
 0x47f   : > { %v5446_v41 = vpop.f32.mrf.mxu2  ;;  %v5471_v45 = vpop.f32.mrf.mxu3  ;;  %6238 = vmatpush.bf16.msra.mxu3 %v8817_v29  ;;  %6183 = vmatpush.bf16.msra.mxu0 %v8653_v49  ;;  %v10951_v29 = vld [vmem:[#allocation32_spill] sm:$0xff] }
 0x480   : > { %v5447_v21 = vadd.f32 %v5446_v41, %v5422_v53  ;;  %v8798_v53 = vld [vmem:[#allocation7 + $0x538] sm:$0xf0] }
 0x481   : > { %v8801_v3 = vor.u32 %v9470_v8, %v8798_v53 }
 0x482   : > { %v5472_v52 = vadd.f32 %v5471_v45, %v5447_v21  ;;  %v5484_v9 = vpop.f32.mrf.mxu0  ;;  %v5509_v31 = vpop.f32.mrf.mxu1  ;;  %6202 = vmatpush.bf16.msra.mxu1 %v8781_v13  ;;  %6220 = vmatpush.bf16.msra.mxu2 %v8673_v60  ;;  %v10950_v21 = vld [vmem:[#allocation31_spill] sm:$0xff] }
 0x483   : > { %v5510_v42 = vadd.f32 %v5509_v31, %v5484_v9  ;;  %6239 = vmatpush.bf16.msra.mxu3 %v8801_v3 }
 0x484   : > { %v10737_v22 = vadd.f32 %v5472_v52, %v10497_v24 }
 0x485   : > { %6108 = vmatmul.bf16.vlgmr.msrb.gmra.mxu0 %v10948_v34  ;;  %6127 = vmatmul.bf16.vlgmr.msrb.gmra.mxu1 %v10949_v51 }
 0x486   : > { %6221 = vmatpush.bf16.msra.mxu2 %v8657_v35 }
 0x487   : > { %v5448_v4 = vpop.f32.mrf.mxu2  ;;  %v5473_v47 = vpop.f32.mrf.mxu3  ;;  %6240 = vmatpush.bf16.msra.mxu3 %v8785_v57 }
 0x48a   : > { %v5486_v20 = vpop.f32.mrf.mxu0  ;;  %v5511_v24 = vpop.f32.mrf.mxu1 }
 0x48c   : > { %6146 = vmatmul.bf16.vlgmr.msrb.gmra.mxu2 %v10948_v34  ;;  %6165 = vmatmul.bf16.vlgmr.msrb.gmra.mxu3 %v10949_v51 }
 0x48f   : > { %v5534_v27 = vpop.f32.mrf.mxu2  ;;  %v5559_v33 = vpop.f32.mrf.mxu3 }
 0x490   : > { %v5535_v7 = vadd.f32 %v5534_v27, %v5510_v42 }
 0x492   : > { %v5560_v28 = vadd.f32 %v5559_v33, %v5535_v7  ;;  %v5488_v41 = vpop.f32.mrf.mxu0  ;;  %v5513_v45 = vpop.f32.mrf.mxu1 }
 0x493   : > { %v5514_v56 = vadd.f32 %v5513_v45, %v5488_v41 }
 0x494   : > { %v10744_v48 = vadd.f32 %v5560_v28, %v10504_v43 }
 0x495   : > { %6113 = vmatmul.bf16.gmra.mxu0 %v10950_v21  ;;  %6132 = vmatmul.bf16.gmra.mxu1 %v10951_v29 }
 0x497   : > { %v5536_v23 = vpop.f32.mrf.mxu2  ;;  %v5561_v46 = vpop.f32.mrf.mxu3 }
 0x49a   : > { %v5490_v59 = vpop.f32.mrf.mxu0  ;;  %v5515_v38 = vpop.f32.mrf.mxu1 }
 0x49c   : > { %6151 = vmatmul.bf16.gmra.mxu2 %v10950_v21  ;;  %6170 = vmatmul.bf16.gmra.mxu3 %v10951_v29 }
 0x49f   : > { %v5538_v52 = vpop.f32.mrf.mxu2  ;;  %v5563_v9 = vpop.f32.mrf.mxu3 }
 0x4a0   : > { %v5539_v31 = vadd.f32 %v5538_v52, %v5514_v56 }
 0x4a2   : > { %v5564_v49 = vadd.f32 %v5563_v9, %v5539_v31  ;;  %v5492_v13 = vpop.f32.mrf.mxu0  ;;  %v5517_v44 = vpop.f32.mrf.mxu1 }
 0x4a3   : > { %v5518_v43 = vadd.f32 %v5517_v44, %v5492_v13 }
 0x4a4   : > { %v10751_v19 = vadd.f32 %v5564_v49, %v10511_v40 }
 0x4a5   : > { %6184 = vmatmul.bf16.vlgmr.msra.gmra.mxu0 %v10948_v34  ;;  %6203 = vmatmul.bf16.vlgmr.msra.gmra.mxu1 %v10949_v51 }
 0x4a7   : > { %v5540_v8 = vpop.f32.mrf.mxu2  ;;  %v5565_v42 = vpop.f32.mrf.mxu3 }
 0x4aa   : > { %v5494_v60 = vpop.f32.mrf.mxu0  ;;  %v5519_v53 = vpop.f32.mrf.mxu1 }
 0x4ac   : > { %6222 = vmatmul.bf16.vlgmr.msra.gmra.mxu2 %v10948_v34  ;;  %6241 = vmatmul.bf16.vlgmr.msra.gmra.mxu3 %v10949_v51 }
 0x4af   : > { %v5542_v3 = vpop.f32.mrf.mxu2  ;;  %v5567_v26 = vpop.f32.mrf.mxu3 }
 0x4b0   : > { %v5543_v37 = vadd.f32 %v5542_v3, %v5518_v43 }
 0x4b2   : > { %v5568_v2 = vadd.f32 %v5567_v26, %v5543_v37  ;;  %v5496_v4 = vpop.f32.mrf.mxu0  ;;  %v5521_v47 = vpop.f32.mrf.mxu1 }
 0x4b3   : > { %v5522_v40 = vadd.f32 %v5521_v47, %v5496_v4 }
 0x4b4   : > { %v10758_v35 = vadd.f32 %v5568_v2, %v10518_v11 }
 0x4b5   : > { %6189 = vmatmul.bf16.gmra.mxu0 %v10950_v21  ;;  %6208 = vmatmul.bf16.gmra.mxu1 %v10951_v29 }
 0x4b7   : > { %v5544_v55 = vpop.f32.mrf.mxu2  ;;  %v5569_v57 = vpop.f32.mrf.mxu3 }
 0x4ba   : > { %v5498_v20 = vpop.f32.mrf.mxu0  ;;  %v5523_v34 = vpop.f32.mrf.mxu1 }
 0x4bc   : > { %6227 = vmatmul.bf16.gmra.mxu2 %v10950_v21  ;;  %6246 = vmatmul.bf16.gmra.mxu3 %v10951_v29 }
 0x4bf   : > { %v5546_v51 = vpop.f32.mrf.mxu2  ;;  %v5571_v24 = vpop.f32.mrf.mxu3 }
 0x4c0   : > { %v5547_v27 = vadd.f32 %v5546_v51, %v5522_v40 }
 0x4c2   : > { %v5572_v33 = vadd.f32 %v5571_v24, %v5547_v27  ;;  %v5584_v7 = vpop.f32.mrf.mxu0  ;;  %v5609_v28 = vpop.f32.mrf.mxu1 }
 0x4c3   : > { %v5610_v11 = vadd.f32 %v5609_v28, %v5584_v7 }
 0x4c4   : > { %v10765_v41 = vadd.f32 %v5572_v33, %v10525_v17 }
 0x4c7   : > { %v5548_v45 = vpop.f32.mrf.mxu2  ;;  %v5573_v56 = vpop.f32.mrf.mxu3 }
 0x4ca   : > { %v5586_v23 = vpop.f32.mrf.mxu0  ;;  %v5611_v46 = vpop.f32.mrf.mxu1 }
 0x4cf   : > { %v5634_v59 = vpop.f32.mrf.mxu2  ;;  %v5659_v38 = vpop.f32.mrf.mxu3 }
 0x4d0   : > { %v5635_v52 = vadd.f32 %v5634_v59, %v5610_v11 }
 0x4d2   : > { %v5660_v21 = vadd.f32 %v5659_v38, %v5635_v52  ;;  %v5588_v9 = vpop.f32.mrf.mxu0  ;;  %v5613_v29 = vpop.f32.mrf.mxu1 }
 0x4d3   : > { %v5614_v31 = vadd.f32 %v5613_v29, %v5588_v9  ;;  %v10953_v29 = vld [vmem:[#allocation20_spill] sm:$0xff] }
 0x4d4   : > { %v10768_v49 = vadd.f32 %v5660_v21, %v10532_v14  ;;  %v10952_v21 = vld [vmem:[#allocation22_spill] sm:$0xff] }
 0x4d7   : > { %v5636_v13 = vpop.f32.mrf.mxu2  ;;  %v5661_v44 = vpop.f32.mrf.mxu3 }
 0x4da   : > { %v5590_v43 = vpop.f32.mrf.mxu0  ;;  %v5615_v8 = vpop.f32.mrf.mxu1 }
 0x4df   : > { %v5638_v17 = vpop.f32.mrf.mxu2  ;;  %v5663_v42 = vpop.f32.mrf.mxu3 }
 0x4e0   : > { %v5639_v60 = vadd.f32 %v5638_v17, %v5614_v31 }
 0x4e2   : > { %v5664_v53 = vadd.f32 %v5663_v42, %v5639_v60  ;;  %v5592_v3 = vpop.f32.mrf.mxu0  ;;  %v5617_v26 = vpop.f32.mrf.mxu1  ;;  %v10781_v42 = vld [vmem:[#allocation8] sm:$0xf] }
 0x4e3   : > { %v5618_v37 = vadd.f32 %v5617_v26, %v5592_v3 }
 0x4e4   : > { %v10771_v2 = vadd.f32 %v5664_v53, %v10539_v62 }
 0x4e7   : > { %v5640_v4 = vpop.f32.mrf.mxu2  ;;  %v5665_v47 = vpop.f32.mrf.mxu3 }
 0x4e8   : > { %v6287_v47 = vperm.slane %v10781_v42, 1 }
 0x4ea   : > { %v5594_v40 = vpop.f32.mrf.mxu0  ;;  %v5619_v55 = vpop.f32.mrf.mxu1 }
 0x4ef   : > { %v5642_v14 = vpop.f32.mrf.mxu2  ;;  %v5667_v57 = vpop.f32.mrf.mxu3 }
 0x4f0   : > { %v5643_v20 = vadd.f32 %v5642_v14, %v5618_v37  ;;  %v6286_v37 = vperm.slane %v10781_v42, 0 }
 0x4f2   : > { %v5668_v34 = vadd.f32 %v5667_v57, %v5643_v20  ;;  %v5596_v51 = vpop.f32.mrf.mxu0  ;;  %v5621_v24 = vpop.f32.mrf.mxu1 }
 0x4f3   : > { %v5622_v27 = vadd.f32 %v5621_v24, %v5596_v51 }
 0x4f4   : > { %v10774_v33 = vadd.f32 %v5668_v34, %v10546_v12  ;;  %v10954_v34 = vld [vmem:[#allocation21_spill] sm:$0xff] }
 0x4f7   : > { %v5644_v7 = vpop.f32.mrf.mxu2  ;;  %v5669_v28 = vpop.f32.mrf.mxu3 }
 0x4fa   : > { %v5598_v11 = vpop.f32.mrf.mxu0  ;;  %v5623_v45 = vpop.f32.mrf.mxu1 }
 0x4fb   : > { %v10955_v45 = vld [vmem:[#allocation25_spill] sm:$0xff] }
 0x4ff   : > { %v5646_v62 = vpop.f32.mrf.mxu2  ;;  %v5671_v56 = vpop.f32.mrf.mxu3 }
 0x500   : > { %v5647_v23 = vadd.f32 %v5646_v62, %v5622_v27 }
 0x502   : > { %v5672_v46 = vadd.f32 %v5671_v56, %v5647_v23  ;;  %v6109_v59 = vpop.f32.mrf.mxu0  ;;  %v6128_v38 = vpop.f32.mrf.mxu1 }
 0x503   : > { %v6129_v52 = vadd.f32 %v6128_v38, %v6109_v59 }
 0x504   : > { %v10777_v9 = vadd.f32 %v5672_v46, %v10952_v21 }
 0x505   : > { %v6252_v31 = vadd.f32 %v6129_v52, %v10953_v29 }
 0x507   : > { %v6268_v13 = vadd.f32 %v6252_v31, %v10688_v16  ;;  %v5648_v12 = vpop.f32.mrf.mxu2  ;;  %v5673_v44 = vpop.f32.mrf.mxu3 }
 0x509   : > { %v6294_v57 = vadd.f32 %v6286_v37, %v6268_v13 }
 0x50a   : > { %v6111_v43 = vpop.f32.mrf.mxu0  ;;  %v6130_v8 = vpop.f32.mrf.mxu1 }
 0x50b   : > { %v6131_v17 = vadd.f32 %v6130_v8, %v6111_v43  ;;  %v6310_v7 = vmax.f32 %v6294_v57, 0.0 }
 0x50d   : > { %v6256_v60 = vadd.f32 %v6131_v17, %v10627_v1 }
 0x50f   : > { %v6272_v53 = vadd.f32 %v6256_v60, %v10695_v58  ;;  %v6147_v3 = vpop.f32.mrf.mxu2  ;;  %v6166_v26 = vpop.f32.mrf.mxu3 }
 0x510   : > { %v6167_v4 = vadd.f32 %v6166_v26, %v6147_v3 }
 0x511   : > { %v6298_v59 = vadd.f32 %v6286_v37, %v6272_v53 }
 0x512   : > { %v6253_v16 = vadd.f32 %v6167_v4, %v10630_v6  ;;  %v6114_v40 = vpop.f32.mrf.mxu0  ;;  %v6133_v55 = vpop.f32.mrf.mxu1 }
 0x513   : > { %v6134_v14 = vadd.f32 %v6133_v55, %v6114_v40  ;;  %v6314_v13 = vmax.f32 %v6298_v59, 0.0 }
 0x514   : > { %v6269_v20 = vadd.f32 %v6253_v16, %v10716_v0 }
 0x515   : > { %v6260_v1 = vadd.f32 %v6134_v14, %v10954_v34 }
 0x516   : > { %v6295_v58 = vadd.f32 %v6287_v47, %v6269_v20 }
 0x517   : > { %v6276_v51 = vadd.f32 %v6260_v1, %v10702_v5  ;;  %v6149_v24 = vpop.f32.mrf.mxu2  ;;  %v6168_v27 = vpop.f32.mrf.mxu3  ;;  %v10956_v5 = vld [vmem:[#allocation26_spill] sm:$0xff] }
 0x518   : > { %v6311_v6 = vmax.f32 %v6295_v58, 0.0  ;;  %v6169_v28 = vadd.f32 %v6168_v27, %v6149_v24 }
 0x519   : > { %v6302_v3 = vadd.f32 %v6286_v37, %v6276_v51 }
 0x51a   : > { %v6326_v11 = vpack.c.bf16 %v6311_v6, %v6310_v7  ;;  %v6257_v62 = vadd.f32 %v6169_v28, %v10955_v45  ;;  %v6116_v56 = vpop.f32.mrf.mxu0  ;;  %v6135_v23 = vpop.f32.mrf.mxu1  ;;  %v6288_v28 = vperm.slane %v10781_v42, 2 }
 0x51b   : > { %v6136_v46 = vadd.f32 %v6135_v23, %v6116_v56  ;;  %v6318_v55 = vmax.f32 %v6302_v3, 0.0 }
 0x51c   : > { %6334 = vst [vmem:[%s10795_s9] sm:$0xff] %v6326_v11  ;;  %v6273_v0 = vadd.f32 %v6257_v62, %v10723_v32 }
 0x51d   : > { %v6264_v38 = vadd.f32 %v6136_v46, %v10956_v5 }
 0x51e   : > { %v6299_v52 = vadd.f32 %v6287_v47, %v6273_v0 }
 0x51f   : > { %v6280_v21 = vadd.f32 %v6264_v38, %v10709_v63  ;;  %v6152_v29 = vpop.f32.mrf.mxu2  ;;  %v6171_v31 = vpop.f32.mrf.mxu3 }
 0x520   : > { %v6315_v12 = vmax.f32 %v6299_v52, 0.0  ;;  %v6172_v44 = vadd.f32 %v6171_v31, %v6152_v29 }
 0x521   : > { %v6306_v51 = vadd.f32 %v6286_v37, %v6280_v21  ;;  %v6289_v37 = vperm.slane %v10781_v42, 3 }
 0x522   : > { %v6328_v43 = vpack.c.bf16 %v6315_v12, %v6314_v13  ;;  %v6261_v8 = vadd.f32 %v6172_v44, %v10646_v36  ;;  %v6185_v17 = vpop.f32.mrf.mxu0  ;;  %v6204_v60 = vpop.f32.mrf.mxu1 }
 0x523   : > { %v6205_v53 = vadd.f32 %v6204_v60, %v6185_v17  ;;  %v6322_v6 = vmax.f32 %v6306_v51, 0.0 }
 0x524   : > { %6336 = vst [vmem:[%s10795_s9 + $0x10] sm:$0xff] %v6328_v43  ;;  %v6277_v32 = vadd.f32 %v6261_v8, %v10730_v61 }
 0x525   : > { %v6254_v26 = vadd.f32 %v6205_v53, %v10649_v39 }
 0x526   : > { %v6303_v4 = vadd.f32 %v6287_v47, %v6277_v32 }
 0x527   : > { %v6270_v63 = vadd.f32 %v6254_v26, %v10744_v48  ;;  %v6154_v16 = vpop.f32.mrf.mxu2  ;;  %v6173_v40 = vpop.f32.mrf.mxu3 }
 0x528   : > { %v6319_v14 = vmax.f32 %v6303_v4, 0.0  ;;  %v6174_v57 = vadd.f32 %v6173_v40, %v6154_v16 }
 0x52a   : > { %v6330_v20 = vpack.c.bf16 %v6319_v14, %v6318_v55  ;;  %v6265_v36 = vadd.f32 %v6174_v57, %v10654_v54  ;;  %v6187_v34 = vpop.f32.mrf.mxu0  ;;  %v6206_v1 = vpop.f32.mrf.mxu1 }
 0x52b   : > { %v6207_v58 = vadd.f32 %v6206_v1, %v6187_v34 }
 0x52c   : > { %6338 = vst [vmem:[%s10795_s9 + $0x20] sm:$0xff] %v6330_v20  ;;  %v6281_v61 = vadd.f32 %v6265_v36, %v10737_v22 }
 0x52d   : > { %v6258_v39 = vadd.f32 %v6207_v58, %v10659_v18  ;;  %v6296_v18 = vadd.f32 %v6288_v28, %v6270_v63 }
 0x52e   : > { %v6307_v24 = vadd.f32 %v6287_v47, %v6281_v61 }
 0x52f   : > { %v6274_v48 = vadd.f32 %v6258_v39, %v10751_v19  ;;  %v6223_v27 = vpop.f32.mrf.mxu2  ;;  %v6242_v7 = vpop.f32.mrf.mxu3  ;;  %v6312_v38 = vmax.f32 %v6296_v18, 0.0 }
 0x530   : > { %v6323_v11 = vmax.f32 %v6307_v24, 0.0  ;;  %v6243_v54 = vadd.f32 %v6242_v7, %v6223_v27 }
 0x531   : > { %v6300_v12 = vadd.f32 %v6288_v28, %v6274_v48 }
 0x532   : > { %v6332_v45 = vpack.c.bf16 %v6323_v11, %v6322_v6  ;;  %v6255_v62 = vadd.f32 %v6243_v54, %v10662_v50  ;;  %v6190_v56 = vpop.f32.mrf.mxu0  ;;  %v6209_v22 = vpop.f32.mrf.mxu1 }
 0x533   : > { %v6210_v23 = vadd.f32 %v6209_v22, %v6190_v56  ;;  %v6316_v17 = vmax.f32 %v6300_v12, 0.0 }
 0x534   : > { %6340 = vst [vmem:[%s10795_s9 + $0x30] sm:$0xff] %v6332_v45  ;;  %v6271_v19 = vadd.f32 %v6255_v62, %v10768_v49 }
 0x535   : > { %v6262_v47 = vadd.f32 %v6210_v23, %v10665_v30 }
 0x536   : > { %v6297_v46 = vadd.f32 %v6289_v37, %v6271_v19 }
 0x537   : > { %v6278_v59 = vadd.f32 %v6262_v47, %v10758_v35  ;;  %v6225_v0 = vpop.f32.mrf.mxu2  ;;  %v6244_v5 = vpop.f32.mrf.mxu3 }
 0x538   : > { %v6313_v52 = vmax.f32 %v6297_v46, 0.0  ;;  %v6245_v50 = vadd.f32 %v6244_v5, %v6225_v0 }
 0x539   : > { %v6304_v32 = vadd.f32 %v6288_v28, %v6278_v59 }
 0x53a   : > { %v6327_v21 = vpack.c.bf16 %v6313_v52, %v6312_v38  ;;  %v6259_v42 = vadd.f32 %v6245_v50, %v10670_v15  ;;  %v6192_v29 = vpop.f32.mrf.mxu0  ;;  %v6211_v31 = vpop.f32.mrf.mxu1 }
 0x53b   : > { %v6212_v13 = vadd.f32 %v6211_v31, %v6192_v29  ;;  %v6320_v4 = vmax.f32 %v6304_v32, 0.0 }
 0x53c   : > { %6335 = vst [vmem:[%s10795_s9 + $0x8] sm:$0xff] %v6327_v21  ;;  %v6275_v30 = vadd.f32 %v6259_v42, %v10771_v2 }
 0x53d   : > { %v6266_v35 = vadd.f32 %v6212_v13, %v10675_v25 }
 0x53e   : > { %v6301_v49 = vadd.f32 %v6289_v37, %v6275_v30 }
 0x53f   : > { %v6282_v44 = vadd.f32 %v6266_v35, %v10765_v41  ;;  %v6228_v43 = vpop.f32.mrf.mxu2  ;;  %v6247_v8 = vpop.f32.mrf.mxu3 }
 0x540   : > { %v6317_v60 = vmax.f32 %v6301_v49, 0.0  ;;  %v6248_v15 = vadd.f32 %v6247_v8, %v6228_v43 }
 0x541   : > { %v6308_v14 = vadd.f32 %v6288_v28, %v6282_v44 }
 0x542   : > { %v6329_v53 = vpack.c.bf16 %v6317_v60, %v6316_v17  ;;  %v6263_v3 = vadd.f32 %v6248_v15, %v10678_v10  ;;  %v10957_v10 = vld [vmem:[#allocation29_spill] sm:$0xff] }
 0x543   : > { %v6324_v20 = vmax.f32 %v6308_v14, 0.0 }
 0x544   : > { %6337 = vst [vmem:[%s10795_s9 + $0x18] sm:$0xff] %v6329_v53  ;;  %v6279_v2 = vadd.f32 %v6263_v3, %v10774_v33 }
 0x546   : > { %v6305_v25 = vadd.f32 %v6289_v37, %v6279_v2 }
 0x547   : > { %v6230_v26 = vpop.f32.mrf.mxu2  ;;  %v6249_v41 = vpop.f32.mrf.mxu3 }
 0x548   : > { %v6321_v63 = vmax.f32 %v6305_v25, 0.0  ;;  %v6250_v16 = vadd.f32 %v6249_v41, %v6230_v26 }
 0x54a   : > { %v6331_v40 = vpack.c.bf16 %v6321_v63, %v6320_v4  ;;  %v6267_v55 = vadd.f32 %v6250_v16, %v10957_v10 }
 0x54c   : > { %6339 = vst [vmem:[%s10795_s9 + $0x28] sm:$0xff] %v6331_v40  ;;  %v6283_v33 = vadd.f32 %v6267_v55, %v10777_v9 }
 0x54e   : > { %v6309_v57 = vadd.f32 %v6289_v37, %v6283_v33 }
 0x550   : > { %v6325_v36 = vmax.f32 %v6309_v57, 0.0 }
 0x552   : > { %v6333_v34 = vpack.c.bf16 %v6325_v36, %v6324_v20 }
 0x554   : > { %6341 = vst [vmem:[%s10795_s9 + $0x38] sm:$0xff] %v6333_v34 }
 0x555   : > { %9762 = shalt.err (!%p9759_p10)
}
 0x556   : > { %s9849_s12 = smov 256   ;;  %s9850_s6 = smov 16  }
 0x557   : > { %9515 = dma.vmem_to_hbm [thread:$0]  (%p9933_p3), %s6359_s27, 1024, %s6361_s30, %s6343_s28, %s9849_s12, %s9849_s12, %s9850_s6  }
 0x558 PF: > { %p9542_p11 = scmp.ge.s32.totalorder %s9841_s25, 2  ;;  %s6375_s9 = sand.u32 1, %s9813_s18  }
 0x559   : > { %s6376_s10 = scalar_lea.sflag [#allocation4], %s6375_s9 }
 0x55a   : > { %p9531_p12 = pnand %p9542_p11, %p9942_p8 }
 0x55c   : > { %p9532_p13 = pneg %p9531_p12 }
 0x55e   : > { %9808 = dma.done.wait (%p9532_p13), %s6376_s10, 1024  }
 0x55f   : > { %9810 = vsyncadd (%p9532_p13), %s6376_s10, 4294966272  ;;  %s21_s25 = sadd.s32 1, %s9841_s25   ;;  %s10958_s15 = sld [smem:[#allocation19_spill]] }
 0x560   : > { %p18_p0 = scmp.ge.s32.totalorder %s21_s25, 6   ;;  %s10959_s21 = sld [smem:[#allocation15_spill]] }
 0x561   : > { %s10960_s22 = sld [smem:[#allocation16_spill]]  ;;  %s10963_s18 = smov %s9817_s19 }
 0x562   : > { %s10961_s23 = sld [smem:[#allocation17_spill]]  ;;  %s10964_s19 = smov %s9821_s20 }
 0x563   : > { %s10962_s24 = sld [smem:[#allocation18_spill]]  ;;  %20 = sbr.rel (!%p18_p0) target bundleno = 10 (0xa), region = 97 }
 0x565   : > { %s10965_s20 = smov %s10958_s15 }
 0x568   :  { %6382 = vsyncpa [#allocation3], 1 }
 0x569   :  { %6384 = vsyncpa [#allocation3 + $0x1], 1 }
 0x56a   :  { %6385 = vsyncpa [#allocation6], 1 }
 0x56b   :  { %6386 = vsyncpa [#allocation9], 1 }
 0x56c   :  { %6387 = vsyncpa [#allocation4], 1 }
 0x56d   :  { %6389 = vsyncpa [#allocation4 + $0x1], 1 }

</bundles_post_ra>
